<compile_context>
chip_gen: v7x
topology: tpu7x:2x2x1
jax: 0.10.0
libtpu: 0.0.40
codegen_flags: <defaults>
</compile_context>

<pallas_src>
import functools

import jax
import jax.numpy as jnp
from jax.experimental import pallas as pl
from jax.experimental.pallas import tpu as pltpu


# ----------------------- model configuration (instance) ---------------------
C_IN, H_IN, W_IN = 4, 16, 16          # D_shape_in (C, H, W)
CNN_HIDDENS = [8, 16]
KSIZE, STRIDE = 5, 2
LINEAR_HIDDENS = [32]
D_OUT = 6
BATCH = 2
BN_EPS = 1e-5

OH1 = (H_IN - KSIZE) // STRIDE + 1    # 6
OH2 = (OH1 - KSIZE) // STRIDE + 1     # 1
C1, C2 = CNN_HIDDENS                  # 8, 16
FEAT_SIZE = C2 * OH2 * OH2            # 16  (same as _get_feature_dim)
D_LIN = LINEAR_HIDDENS[0]             # 32

# Packed lane-dense output slab (N, 128) column layout.
_COL_VAL = 0
_COL_LOGITS = 8
_COL_PROB = 16
_COL_LOGP = 24


# ------------------------------ fused kernel --------------------------------
def _fused_forward_kernel(x_ref, w1_ref, b1_ref, g1_ref, be1_ref,
                          w2_ref, b2_ref, g2_ref, be2_ref,
                          w3_ref, b3_ref, wh_ref, bh_ref,
                          out_ref, p1_ref, p2_ref,
                          *, n_batch, only_value):
    """Entire forward pass in one kernel invocation; all operands in VMEM.

    x_ref  : (4*n_batch, H/2, W/2, C_IN) stride-2 parity-split input,
             x_ref[(p*2+q)*n_batch + n, i, j, c] == x[n, c, 2*i+p, 2*j+q]
    p1_ref : (n_batch, OH1, OH1, K*K*C_IN) conv1 im2col scratch (VMEM)
    p2_ref : (n_batch, K*K*C1)             conv2 im2col scratch (VMEM)
    out_ref: (n_batch, 128) packed [val | logits | prob | logp] slab
    """
    k = KSIZE

    # ---- conv1 im2col: build patch matrix in VMEM (no HBM round trip) ------
    for kh in range(k):
        a, p = divmod(kh, STRIDE)
        for kw in range(k):
            b, q = divmod(kw, STRIDE)
            col = (kh * k + kw) * C_IN
            for n in range(n_batch):
                src = x_ref[(p * STRIDE + q) * n_batch + n,
                            a:a + OH1, b:b + OH1, :]            # (OH1, OH1, C_IN)
                p1_ref[n, :, :, col:col + C_IN] = src

    # ---- conv1 matmul + bias + single-pass BatchNorm statistics ------------
    w1 = w1_ref[...]                                            # (k*k*C_IN, C1)
    b1 = b1_ref[...]                                            # (1, C1)
    s1 = jnp.zeros((1, C1), jnp.float32)
    q1 = jnp.zeros((1, C1), jnp.float32)
    h1 = []                                                     # n_batch x OH1 blocks (OH1, C1)
    for n in range(n_batch):
        rows = []
        for oh in range(OH1):
            z = jnp.dot(p1_ref[n, oh, :, :], w1,
                        preferred_element_type=jnp.float32) + b1
            rows.append(z)
            s1 = s1 + jnp.sum(z, axis=0, keepdims=True)
            q1 = q1 + jnp.sum(z * z, axis=0, keepdims=True)
        h1.append(rows)
    cnt1 = float(n_batch * OH1 * OH1)
    mean1 = s1 * (1.0 / cnt1)
    var1 = jnp.maximum(q1 * (1.0 / cnt1) - mean1 * mean1, 0.0)  # biased var
    scale1 = g1_ref[...] * jax.lax.rsqrt(var1 + BN_EPS)
    shift1 = be1_ref[...] - mean1 * scale1

    # ---- conv2 im2col from normalised + ReLU'd conv1 activations -----------
    # conv2 output is 1x1, so its patch uses conv1 output rows/cols [0, k).
    for n in range(n_batch):
        for kh in range(k):
            act = jnp.maximum(h1[n][kh] * scale1 + shift1, 0.0)  # (OH1, C1)
            for kw in range(k):
                col = (kh * k + kw) * C1
                p2_ref[n:n + 1, col:col + C1] = act[kw:kw + 1, :]

    # ---- conv2 matmul + bias + BatchNorm (two-pass: only n_batch rows) -----
    p2 = p2_ref[...]                                            # (n_batch, k*k*C1)
    h2 = jnp.dot(p2, w2_ref[...],
                 preferred_element_type=jnp.float32) + b2_ref[...]   # (n_batch, C2)
    mean2 = jnp.sum(h2, axis=0, keepdims=True) * (1.0 / n_batch)
    var2 = jnp.sum((h2 - mean2) ** 2, axis=0, keepdims=True) * (1.0 / n_batch)
    scale2 = g2_ref[...] * jax.lax.rsqrt(var2 + BN_EPS)
    feat = jnp.maximum((h2 - mean2) * scale2 + be2_ref[...], 0.0)    # flattened feature

    # ---- linear layer + ReLU ------------------------------------------------
    feat = jnp.maximum(jnp.dot(feat, w3_ref[...],
                               preferred_element_type=jnp.float32) + b3_ref[...],
                       0.0)                                      # (n_batch, D_LIN)

    # ---- heads: critic column folded in front of the policy weight ---------
    out_ref[...] = jnp.zeros_like(out_ref)
    if only_value:
        val = jnp.dot(feat, wh_ref[:, 0:1],
                      preferred_element_type=jnp.float32) + bh_ref[:, 0:1]
        out_ref[:, _COL_VAL:_COL_VAL + 1] = val
    else:
        z = jnp.dot(feat, wh_ref[...],
                    preferred_element_type=jnp.float32) + bh_ref[...]  # (n, 1+D_OUT)
        val = z[:, 0:1]
        logits = z[:, 1:1 + D_OUT]
        m = jnp.max(logits, axis=-1, keepdims=True)
        e = jnp.exp(logits - m)
        ssum = jnp.sum(e, axis=-1, keepdims=True)
        # Exact divide keeps sum(prob)==1 to ~1e-7 (pl.reciprocal(approx=True)
        # would loosen it to ~1e-3).
        prob = e / ssum
        logp = (logits - m) - jnp.log(ssum)
        out_ref[:, _COL_VAL:_COL_VAL + 1] = val
        out_ref[:, _COL_LOGITS:_COL_LOGITS + D_OUT] = logits
        out_ref[:, _COL_PROB:_COL_PROB + D_OUT] = prob
        out_ref[:, _COL_LOGP:_COL_LOGP + D_OUT] = logp


# ----------------------------- kernel wrapper --------------------------------
_VMEM = pl.BlockSpec(memory_space=pltpu.MemorySpace.VMEM)


def _packed_forward(kp, x_par, *, only_value=False):
    n_batch = x_par.shape[0] // (STRIDE * STRIDE)
    kernel = functools.partial(_fused_forward_kernel,
                               n_batch=n_batch, only_value=only_value)
    return pl.pallas_call(
        kernel,
        out_shape=jax.ShapeDtypeStruct((n_batch, 128), jnp.float32),
        in_specs=[_VMEM] * 13,
        out_specs=_VMEM,
        scratch_shapes=[
            pltpu.VMEM((n_batch, OH1, OH1, KSIZE * KSIZE * C_IN), jnp.float32),
            pltpu.VMEM((n_batch, KSIZE * KSIZE * C1), jnp.float32),
        ],
    )(x_par, kp['w1'], kp['b1'], kp['g1'], kp['beta1'],
      kp['w2'], kp['b2'], kp['g2'], kp['beta2'],
      kp['w3'], kp['b3'], kp['wh'], kp['bh'])


# --------------------------------- glue --------------------------------------
def _parity_split(x, stride):
    """(N, C, H, W) -> (stride*stride*N, H//s, W//s, C), a pure layout permute:
    out[(p*stride+q)*N + n, i, j, c] == x[n, c, stride*i + p, stride*j + q]."""
    n, c, h, w = x.shape
    hp, wp = h // stride, w // stride
    xp = x.reshape(n, c, hp, stride, wp, stride)
    xp = xp.transpose(3, 5, 0, 2, 4, 1)          # (p, q, n, i, j, c)
    return xp.reshape(stride * stride * n, hp, wp, c)


def init_params(key):
    """PyTorch-layout params (used by the pure-JAX reference) plus the
    kernel-layout (im2col / channels-last / folded-heads) versions."""
    k = KSIZE
    keys = jax.random.split(key, 8)
    w1 = jax.random.normal(keys[0], (C1, C_IN, k, k), jnp.float32) * 0.1
    b1 = jax.random.normal(keys[1], (C1,), jnp.float32) * 0.01
    w2 = jax.random.normal(keys[2], (C2, C1, k, k), jnp.float32) * 0.1
    b2 = jax.random.normal(keys[3], (C2,), jnp.float32) * 0.01
    g1 = jnp.ones((C1,), jnp.float32)
    beta1 = jnp.zeros((C1,), jnp.float32)
    g2 = jnp.ones((C2,), jnp.float32)
    beta2 = jnp.zeros((C2,), jnp.float32)
    w3 = jax.random.normal(keys[4], (D_LIN, FEAT_SIZE), jnp.float32) * 0.1
    b3 = jax.random.normal(keys[5], (D_LIN,), jnp.float32) * 0.01
    # heads use small_init
    wp_ = jax.random.normal(keys[6], (D_OUT, D_LIN), jnp.float32) * 0.01
    bp_ = jnp.zeros((D_OUT,), jnp.float32)
    wc_ = jax.random.normal(keys[7], (1, D_LIN), jnp.float32) * 0.01
    bc_ = jnp.zeros((1,), jnp.float32)

    torch_params = {
        'conv': [(w1, b1, g1, beta1), (w2, b2, g2, beta2)],
        'linear': [(w3, b3)],
        'policy': (wp_, bp_),
        'critic': (wc_, bc_),
    }
    kernel_params = {
        # im2col weight matrices: rows ordered (kh, kw, cin), cout on lanes
        'w1': w1.transpose(2, 3, 1, 0).reshape(k * k * C_IN, C1),
        'b1': b1.reshape(1, C1),
        'g1': g1.reshape(1, C1), 'beta1': beta1.reshape(1, C1),
        'w2': w2.transpose(2, 3, 1, 0).reshape(k * k * C1, C2),
        'b2': b2.reshape(1, C2),
        'g2': g2.reshape(1, C2), 'beta2': beta2.reshape(1, C2),
        'w3': w3.T, 'b3': b3.reshape(1, D_LIN),
        # [critic | policy] folded into a single head matmul
        'wh': jnp.concatenate([wc_.T, wp_.T], axis=1),        # (D_LIN, 1+D_OUT)
        'bh': jnp.concatenate([bc_, bp_]).reshape(1, 1 + D_OUT),
    }
    return torch_params, kernel_params


@functools.partial(jax.jit, static_argnames=("return_value", "only_value"))
def forward(kernel_params, x, sample_key, return_value=True, only_value=False):
    """Mirrors DiscreteCNNPolicyCritic.forward.  x: (N, C, H, W) float32."""
    x_par = _parity_split(x, STRIDE)
    packed = _packed_forward(kernel_params, x_par, only_value=only_value)
    val = packed[:, _COL_VAL:_COL_VAL + 1]
    if only_value:
        return val
    logits = packed[:, _COL_LOGITS:_COL_LOGITS + D_OUT]
    prob = packed[:, _COL_PROB:_COL_PROB + D_OUT]
    logp = packed[:, _COL_LOGP:_COL_LOGP + D_OUT]
    # TODO(synk): torch's prob.multinomial() sampling stream cannot be
    # bit-matched; sample the same categorical distribution with JAX PRNG.
    act = jax.random.categorical(sample_key, logits, axis=-1)
    if return_value:
        return act, val, logits, prob, logp
    return act


# ------------------------- pure-JAX reference (spec) -------------------------
def reference_forward(torch_params, x):
    hp = jax.lax.Precision.HIGHEST
    h = x
    for (w, b, g, beta) in torch_params['conv']:
        h = jax.lax.conv_general_dilated(
            h, w, window_strides=(STRIDE, STRIDE), padding='VALID',
            dimension_numbers=('NCHW', 'OIHW', 'NCHW'), precision=hp)
        h = h + b.reshape(1, -1, 1, 1)
        mean = jnp.mean(h, axis=(0, 2, 3), keepdims=True)
        var = jnp.mean((h - mean) ** 2, axis=(0, 2, 3), keepdims=True)
        h = (h - mean) * jax.lax.rsqrt(var + BN_EPS) * g.reshape(1, -1, 1, 1) \
            + beta.reshape(1, -1, 1, 1)
        h = jnp.maximum(h, 0.0)
    feat = h.reshape(h.shape[0], -1)
    for (w, b) in torch_params['linear']:
        feat = jnp.maximum(jnp.dot(feat, w.T, precision=hp) + b, 0.0)
    wc_, bc_ = torch_params['critic']
    wp_, bp_ = torch_params['policy']
    val = jnp.dot(feat, wc_.T, precision=hp) + bc_
    logits = jnp.dot(feat, wp_.T, precision=hp) + bp_
    m = jnp.max(logits, axis=-1, keepdims=True)
    e = jnp.exp(logits - m)
    z = jnp.sum(e, axis=-1, keepdims=True)
    return val, logits, e / z, (logits - m) - jnp.log(z)


if __name__ == "__main__":
    root = jax.random.PRNGKey(0)
    pkey, xkey, skey = jax.random.split(root, 3)
    torch_params, kernel_params = init_params(pkey)
    x = jax.random.normal(xkey, (BATCH, C_IN, H_IN, W_IN), jnp.float32)

    act, val, logits, prob, logp = forward(kernel_params, x, skey)
    val_only = forward(kernel_params, x, skey, only_value=True)
    jax.block_until_ready((act, val, logits, prob, logp, val_only))

    # shape / distribution sanity
    assert act.shape == (BATCH,)
    assert val.shape == (BATCH, 1)
    assert logits.shape == (BATCH, D_OUT)
    assert bool(jnp.all(jnp.abs(jnp.sum(prob, axis=-1) - 1.0) < 1e-5))
    assert bool(jnp.allclose(jnp.exp(logp), prob, atol=1e-5))

    # numerical check against a pure-JAX reference of the PyTorch module
    r_val, r_logits, r_prob, r_logp = reference_forward(torch_params, x)
    assert bool(jnp.allclose(val, r_val, rtol=1e-3, atol=1e-3))
    assert bool(jnp.allclose(logits, r_logits, rtol=1e-3, atol=1e-3))
    assert bool(jnp.allclose(prob, r_prob, rtol=1e-3, atol=1e-3))
    assert bool(jnp.allclose(logp, r_logp, rtol=1e-3, atol=1e-3))
    assert bool(jnp.allclose(val_only, val, rtol=1e-3, atol=1e-3))

    print("KERNEL_OK")
</pallas_src>

<mosaic_0001>
module attributes {stable_mosaic.version = 11 : i64} {
  func.func @_fused_forward_kernel(%arg0: memref<8x8x8x4xf32, #tpu.memory_space<vmem>>, %arg1: memref<100x8xf32, #tpu.memory_space<vmem>>, %arg2: memref<1x8xf32, #tpu.memory_space<vmem>>, %arg3: memref<1x8xf32, #tpu.memory_space<vmem>>, %arg4: memref<1x8xf32, #tpu.memory_space<vmem>>, %arg5: memref<200x16xf32, #tpu.memory_space<vmem>>, %arg6: memref<1x16xf32, #tpu.memory_space<vmem>>, %arg7: memref<1x16xf32, #tpu.memory_space<vmem>>, %arg8: memref<1x16xf32, #tpu.memory_space<vmem>>, %arg9: memref<16x32xf32, #tpu.memory_space<vmem>>, %arg10: memref<1x32xf32, #tpu.memory_space<vmem>>, %arg11: memref<32x7xf32, #tpu.memory_space<vmem>>, %arg12: memref<1x7xf32, #tpu.memory_space<vmem>>, %arg13: memref<2x128xf32, #tpu.memory_space<vmem>>, %arg14: memref<2x6x6x100xf32, #tpu.memory_space<vmem>>, %arg15: memref<2x200xf32, #tpu.memory_space<vmem>>) attributes {dimension_semantics = [], scalar_prefetch = 0 : i64, scratch_operands = 2 : i64, tpu.core_type = #tpu.core_type<tc>} {
    %c0 = arith.constant 0 : index
    %c0_0 = arith.constant 0 : index
    %c0_1 = arith.constant 0 : index
    %c0_2 = arith.constant 0 : index
    %0 = vector.load %arg0[%c0, %c0_0, %c0_1, %c0_2] : memref<8x8x8x4xf32, #tpu.memory_space<vmem>>, vector<1x6x6x4xf32>
    %1 = vector.shape_cast %0 : vector<1x6x6x4xf32> to vector<6x6x4xf32>
    %c0_3 = arith.constant 0 : index
    %c0_4 = arith.constant 0 : index
    %c0_5 = arith.constant 0 : index
    %c0_6 = arith.constant 0 : index
    %2 = vector.load %arg14[%c0_3, %c0_4, %c0_5, %c0_6] : memref<2x6x6x100xf32, #tpu.memory_space<vmem>>, vector<1x6x6x4xf32>
    %3 = vector.shape_cast %2 : vector<1x6x6x4xf32> to vector<6x6x4xf32>
    %4 = vector.shape_cast %1 : vector<6x6x4xf32> to vector<1x6x6x4xf32>
    tpu.vector_store %arg14[%c0_3, %c0_4, %c0_5, %c0_6], %4 {strides = array<i32>} : memref<2x6x6x100xf32, #tpu.memory_space<vmem>>, vector<1x6x6x4xf32>,
    %c1 = arith.constant 1 : index
    %c0_7 = arith.constant 0 : index
    %c0_8 = arith.constant 0 : index
    %c0_9 = arith.constant 0 : index
    %5 = vector.load %arg0[%c1, %c0_7, %c0_8, %c0_9] : memref<8x8x8x4xf32, #tpu.memory_space<vmem>>, vector<1x6x6x4xf32>
    %6 = vector.shape_cast %5 : vector<1x6x6x4xf32> to vector<6x6x4xf32>
    %c1_10 = arith.constant 1 : index
    %c0_11 = arith.constant 0 : index
    %c0_12 = arith.constant 0 : index
    %c0_13 = arith.constant 0 : index
    %7 = vector.load %arg14[%c1_10, %c0_11, %c0_12, %c0_13] : memref<2x6x6x100xf32, #tpu.memory_space<vmem>>, vector<1x6x6x4xf32>
    %8 = vector.shape_cast %7 : vector<1x6x6x4xf32> to vector<6x6x4xf32>
    %9 = vector.shape_cast %6 : vector<6x6x4xf32> to vector<1x6x6x4xf32>
    tpu.vector_store %arg14[%c1_10, %c0_11, %c0_12, %c0_13], %9 {strides = array<i32>} : memref<2x6x6x100xf32, #tpu.memory_space<vmem>>, vector<1x6x6x4xf32>,
    %c2 = arith.constant 2 : index
    %c0_14 = arith.constant 0 : index
    %c0_15 = arith.constant 0 : index
    %c0_16 = arith.constant 0 : index
    %10 = vector.load %arg0[%c2, %c0_14, %c0_15, %c0_16] : memref<8x8x8x4xf32, #tpu.memory_space<vmem>>, vector<1x6x6x4xf32>
    %11 = vector.shape_cast %10 : vector<1x6x6x4xf32> to vector<6x6x4xf32>
    %c0_17 = arith.constant 0 : index
    %c0_18 = arith.constant 0 : index
    %c0_19 = arith.constant 0 : index
    %c4 = arith.constant 4 : index
    %12 = vector.load %arg14[%c0_17, %c0_18, %c0_19, %c4] : memref<2x6x6x100xf32, #tpu.memory_space<vmem>>, vector<1x6x6x4xf32>
    %13 = vector.shape_cast %12 : vector<1x6x6x4xf32> to vector<6x6x4xf32>
    %14 = vector.shape_cast %11 : vector<6x6x4xf32> to vector<1x6x6x4xf32>
    tpu.vector_store %arg14[%c0_17, %c0_18, %c0_19, %c4], %14 {strides = array<i32>} : memref<2x6x6x100xf32, #tpu.memory_space<vmem>>, vector<1x6x6x4xf32>,
    %c3 = arith.constant 3 : index
    %c0_20 = arith.constant 0 : index
    %c0_21 = arith.constant 0 : index
    %c0_22 = arith.constant 0 : index
    %15 = vector.load %arg0[%c3, %c0_20, %c0_21, %c0_22] : memref<8x8x8x4xf32, #tpu.memory_space<vmem>>, vector<1x6x6x4xf32>
    %16 = vector.shape_cast %15 : vector<1x6x6x4xf32> to vector<6x6x4xf32>
    %c1_23 = arith.constant 1 : index
    %c0_24 = arith.constant 0 : index
    %c0_25 = arith.constant 0 : index
    %c4_26 = arith.constant 4 : index
    %17 = vector.load %arg14[%c1_23, %c0_24, %c0_25, %c4_26] : memref<2x6x6x100xf32, #tpu.memory_space<vmem>>, vector<1x6x6x4xf32>
    %18 = vector.shape_cast %17 : vector<1x6x6x4xf32> to vector<6x6x4xf32>
    %19 = vector.shape_cast %16 : vector<6x6x4xf32> to vector<1x6x6x4xf32>
    tpu.vector_store %arg14[%c1_23, %c0_24, %c0_25, %c4_26], %19 {strides = array<i32>} : memref<2x6x6x100xf32, #tpu.memory_space<vmem>>, vector<1x6x6x4xf32>,
    %c0_27 = arith.constant 0 : index
    %c0_28 = arith.constant 0 : index
    %c1_29 = arith.constant 1 : index
    %c0_30 = arith.constant 0 : index
    %20 = vector.load %arg0[%c0_27, %c0_28, %c1_29, %c0_30] : memref<8x8x8x4xf32, #tpu.memory_space<vmem>>, vector<1x6x6x4xf32>
    %21 = vector.shape_cast %20 : vector<1x6x6x4xf32> to vector<6x6x4xf32>
    %c0_31 = arith.constant 0 : index
    %c0_32 = arith.constant 0 : index
    %c0_33 = arith.constant 0 : index
    %c8 = arith.constant 8 : index
    %22 = vector.load %arg14[%c0_31, %c0_32, %c0_33, %c8] : memref<2x6x6x100xf32, #tpu.memory_space<vmem>>, vector<1x6x6x4xf32>
    %23 = vector.shape_cast %22 : vector<1x6x6x4xf32> to vector<6x6x4xf32>
    %24 = vector.shape_cast %21 : vector<6x6x4xf32> to vector<1x6x6x4xf32>
    tpu.vector_store %arg14[%c0_31, %c0_32, %c0_33, %c8], %24 {strides = array<i32>} : memref<2x6x6x100xf32, #tpu.memory_space<vmem>>, vector<1x6x6x4xf32>,
    %c1_34 = arith.constant 1 : index
    %c0_35 = arith.constant 0 : index
    %c1_36 = arith.constant 1 : index
    %c0_37 = arith.constant 0 : index
    %25 = vector.load %arg0[%c1_34, %c0_35, %c1_36, %c0_37] : memref<8x8x8x4xf32, #tpu.memory_space<vmem>>, vector<1x6x6x4xf32>
    %26 = vector.shape_cast %25 : vector<1x6x6x4xf32> to vector<6x6x4xf32>
    %c1_38 = arith.constant 1 : index
    %c0_39 = arith.constant 0 : index
    %c0_40 = arith.constant 0 : index
    %c8_41 = arith.constant 8 : index
    %27 = vector.load %arg14[%c1_38, %c0_39, %c0_40, %c8_41] : memref<2x6x6x100xf32, #tpu.memory_space<vmem>>, vector<1x6x6x4xf32>
    %28 = vector.shape_cast %27 : vector<1x6x6x4xf32> to vector<6x6x4xf32>
    %29 = vector.shape_cast %26 : vector<6x6x4xf32> to vector<1x6x6x4xf32>
    tpu.vector_store %arg14[%c1_38, %c0_39, %c0_40, %c8_41], %29 {strides = array<i32>} : memref<2x6x6x100xf32, #tpu.memory_space<vmem>>, vector<1x6x6x4xf32>,
    %c2_42 = arith.constant 2 : index
    %c0_43 = arith.constant 0 : index
    %c1_44 = arith.constant 1 : index
    %c0_45 = arith.constant 0 : index
    %30 = vector.load %arg0[%c2_42, %c0_43, %c1_44, %c0_45] : memref<8x8x8x4xf32, #tpu.memory_space<vmem>>, vector<1x6x6x4xf32>
    %31 = vector.shape_cast %30 : vector<1x6x6x4xf32> to vector<6x6x4xf32>
    %c0_46 = arith.constant 0 : index
    %c0_47 = arith.constant 0 : index
    %c0_48 = arith.constant 0 : index
    %c12 = arith.constant 12 : index
    %32 = vector.load %arg14[%c0_46, %c0_47, %c0_48, %c12] : memref<2x6x6x100xf32, #tpu.memory_space<vmem>>, vector<1x6x6x4xf32>
    %33 = vector.shape_cast %32 : vector<1x6x6x4xf32> to vector<6x6x4xf32>
    %34 = vector.shape_cast %31 : vector<6x6x4xf32> to vector<1x6x6x4xf32>
    tpu.vector_store %arg14[%c0_46, %c0_47, %c0_48, %c12], %34 {strides = array<i32>} : memref<2x6x6x100xf32, #tpu.memory_space<vmem>>, vector<1x6x6x4xf32>,
    %c3_49 = arith.constant 3 : index
    %c0_50 = arith.constant 0 : index
    %c1_51 = arith.constant 1 : index
    %c0_52 = arith.constant 0 : index
    %35 = vector.load %arg0[%c3_49, %c0_50, %c1_51, %c0_52] : memref<8x8x8x4xf32, #tpu.memory_space<vmem>>, vector<1x6x6x4xf32>
    %36 = vector.shape_cast %35 : vector<1x6x6x4xf32> to vector<6x6x4xf32>
    %c1_53 = arith.constant 1 : index
    %c0_54 = arith.constant 0 : index
    %c0_55 = arith.constant 0 : index
    %c12_56 = arith.constant 12 : index
    %37 = vector.load %arg14[%c1_53, %c0_54, %c0_55, %c12_56] : memref<2x6x6x100xf32, #tpu.memory_space<vmem>>, vector<1x6x6x4xf32>
    %38 = vector.shape_cast %37 : vector<1x6x6x4xf32> to vector<6x6x4xf32>
    %39 = vector.shape_cast %36 : vector<6x6x4xf32> to vector<1x6x6x4xf32>
    tpu.vector_store %arg14[%c1_53, %c0_54, %c0_55, %c12_56], %39 {strides = array<i32>} : memref<2x6x6x100xf32, #tpu.memory_space<vmem>>, vector<1x6x6x4xf32>,
    %c0_57 = arith.constant 0 : index
    %c0_58 = arith.constant 0 : index
    %c2_59 = arith.constant 2 : index
    %c0_60 = arith.constant 0 : index
    %40 = vector.load %arg0[%c0_57, %c0_58, %c2_59, %c0_60] : memref<8x8x8x4xf32, #tpu.memory_space<vmem>>, vector<1x6x6x4xf32>
    %41 = vector.shape_cast %40 : vector<1x6x6x4xf32> to vector<6x6x4xf32>
    %c0_61 = arith.constant 0 : index
    %c0_62 = arith.constant 0 : index
    %c0_63 = arith.constant 0 : index
    %c16 = arith.constant 16 : index
    %42 = vector.load %arg14[%c0_61, %c0_62, %c0_63, %c16] : memref<2x6x6x100xf32, #tpu.memory_space<vmem>>, vector<1x6x6x4xf32>
    %43 = vector.shape_cast %42 : vector<1x6x6x4xf32> to vector<6x6x4xf32>
    %44 = vector.shape_cast %41 : vector<6x6x4xf32> to vector<1x6x6x4xf32>
    tpu.vector_store %arg14[%c0_61, %c0_62, %c0_63, %c16], %44 {strides = array<i32>} : memref<2x6x6x100xf32, #tpu.memory_space<vmem>>, vector<1x6x6x4xf32>,
    %c1_64 = arith.constant 1 : index
    %c0_65 = arith.constant 0 : index
    %c2_66 = arith.constant 2 : index
    %c0_67 = arith.constant 0 : index
    %45 = vector.load %arg0[%c1_64, %c0_65, %c2_66, %c0_67] : memref<8x8x8x4xf32, #tpu.memory_space<vmem>>, vector<1x6x6x4xf32>
    %46 = vector.shape_cast %45 : vector<1x6x6x4xf32> to vector<6x6x4xf32>
    %c1_68 = arith.constant 1 : index
    %c0_69 = arith.constant 0 : index
    %c0_70 = arith.constant 0 : index
    %c16_71 = arith.constant 16 : index
    %47 = vector.load %arg14[%c1_68, %c0_69, %c0_70, %c16_71] : memref<2x6x6x100xf32, #tpu.memory_space<vmem>>, vector<1x6x6x4xf32>
    %48 = vector.shape_cast %47 : vector<1x6x6x4xf32> to vector<6x6x4xf32>
    %49 = vector.shape_cast %46 : vector<6x6x4xf32> to vector<1x6x6x4xf32>
    tpu.vector_store %arg14[%c1_68, %c0_69, %c0_70, %c16_71], %49 {strides = array<i32>} : memref<2x6x6x100xf32, #tpu.memory_space<vmem>>, vector<1x6x6x4xf32>,
    %c4_72 = arith.constant 4 : index
    %c0_73 = arith.constant 0 : index
    %c0_74 = arith.constant 0 : index
    %c0_75 = arith.constant 0 : index
    %50 = vector.load %arg0[%c4_72, %c0_73, %c0_74, %c0_75] : memref<8x8x8x4xf32, #tpu.memory_space<vmem>>, vector<1x6x6x4xf32>
    %51 = vector.shape_cast %50 : vector<1x6x6x4xf32> to vector<6x6x4xf32>
    %c0_76 = arith.constant 0 : index
    %c0_77 = arith.constant 0 : index
    %c0_78 = arith.constant 0 : index
    %c20 = arith.constant 20 : index
    %52 = vector.load %arg14[%c0_76, %c0_77, %c0_78, %c20] : memref<2x6x6x100xf32, #tpu.memory_space<vmem>>, vector<1x6x6x4xf32>
    %53 = vector.shape_cast %52 : vector<1x6x6x4xf32> to vector<6x6x4xf32>
    %54 = vector.shape_cast %51 : vector<6x6x4xf32> to vector<1x6x6x4xf32>
    tpu.vector_store %arg14[%c0_76, %c0_77, %c0_78, %c20], %54 {strides = array<i32>} : memref<2x6x6x100xf32, #tpu.memory_space<vmem>>, vector<1x6x6x4xf32>,
    %c5 = arith.constant 5 : index
    %c0_79 = arith.constant 0 : index
    %c0_80 = arith.constant 0 : index
    %c0_81 = arith.constant 0 : index
    %55 = vector.load %arg0[%c5, %c0_79, %c0_80, %c0_81] : memref<8x8x8x4xf32, #tpu.memory_space<vmem>>, vector<1x6x6x4xf32>
    %56 = vector.shape_cast %55 : vector<1x6x6x4xf32> to vector<6x6x4xf32>
    %c1_82 = arith.constant 1 : index
    %c0_83 = arith.constant 0 : index
    %c0_84 = arith.constant 0 : index
    %c20_85 = arith.constant 20 : index
    %57 = vector.load %arg14[%c1_82, %c0_83, %c0_84, %c20_85] : memref<2x6x6x100xf32, #tpu.memory_space<vmem>>, vector<1x6x6x4xf32>
    %58 = vector.shape_cast %57 : vector<1x6x6x4xf32> to vector<6x6x4xf32>
    %59 = vector.shape_cast %56 : vector<6x6x4xf32> to vector<1x6x6x4xf32>
    tpu.vector_store %arg14[%c1_82, %c0_83, %c0_84, %c20_85], %59 {strides = array<i32>} : memref<2x6x6x100xf32, #tpu.memory_space<vmem>>, vector<1x6x6x4xf32>,
    %c6 = arith.constant 6 : index
    %c0_86 = arith.constant 0 : index
    %c0_87 = arith.constant 0 : index
    %c0_88 = arith.constant 0 : index
    %60 = vector.load %arg0[%c6, %c0_86, %c0_87, %c0_88] : memref<8x8x8x4xf32, #tpu.memory_space<vmem>>, vector<1x6x6x4xf32>
    %61 = vector.shape_cast %60 : vector<1x6x6x4xf32> to vector<6x6x4xf32>
    %c0_89 = arith.constant 0 : index
    %c0_90 = arith.constant 0 : index
    %c0_91 = arith.constant 0 : index
    %c24 = arith.constant 24 : index
    %62 = vector.load %arg14[%c0_89, %c0_90, %c0_91, %c24] : memref<2x6x6x100xf32, #tpu.memory_space<vmem>>, vector<1x6x6x4xf32>
    %63 = vector.shape_cast %62 : vector<1x6x6x4xf32> to vector<6x6x4xf32>
    %64 = vector.shape_cast %61 : vector<6x6x4xf32> to vector<1x6x6x4xf32>
    tpu.vector_store %arg14[%c0_89, %c0_90, %c0_91, %c24], %64 {strides = array<i32>} : memref<2x6x6x100xf32, #tpu.memory_space<vmem>>, vector<1x6x6x4xf32>,
    %c7 = arith.constant 7 : index
    %c0_92 = arith.constant 0 : index
    %c0_93 = arith.constant 0 : index
    %c0_94 = arith.constant 0 : index
    %65 = vector.load %arg0[%c7, %c0_92, %c0_93, %c0_94] : memref<8x8x8x4xf32, #tpu.memory_space<vmem>>, vector<1x6x6x4xf32>
    %66 = vector.shape_cast %65 : vector<1x6x6x4xf32> to vector<6x6x4xf32>
    %c1_95 = arith.constant 1 : index
    %c0_96 = arith.constant 0 : index
    %c0_97 = arith.constant 0 : index
    %c24_98 = arith.constant 24 : index
    %67 = vector.load %arg14[%c1_95, %c0_96, %c0_97, %c24_98] : memref<2x6x6x100xf32, #tpu.memory_space<vmem>>, vector<1x6x6x4xf32>
    %68 = vector.shape_cast %67 : vector<1x6x6x4xf32> to vector<6x6x4xf32>
    %69 = vector.shape_cast %66 : vector<6x6x4xf32> to vector<1x6x6x4xf32>
    tpu.vector_store %arg14[%c1_95, %c0_96, %c0_97, %c24_98], %69 {strides = array<i32>} : memref<2x6x6x100xf32, #tpu.memory_space<vmem>>, vector<1x6x6x4xf32>,
    %c4_99 = arith.constant 4 : index
    %c0_100 = arith.constant 0 : index
    %c1_101 = arith.constant 1 : index
    %c0_102 = arith.constant 0 : index
    %70 = vector.load %arg0[%c4_99, %c0_100, %c1_101, %c0_102] : memref<8x8x8x4xf32, #tpu.memory_space<vmem>>, vector<1x6x6x4xf32>
    %71 = vector.shape_cast %70 : vector<1x6x6x4xf32> to vector<6x6x4xf32>
    %c0_103 = arith.constant 0 : index
    %c0_104 = arith.constant 0 : index
    %c0_105 = arith.constant 0 : index
    %c28 = arith.constant 28 : index
    %72 = vector.load %arg14[%c0_103, %c0_104, %c0_105, %c28] : memref<2x6x6x100xf32, #tpu.memory_space<vmem>>, vector<1x6x6x4xf32>
    %73 = vector.shape_cast %72 : vector<1x6x6x4xf32> to vector<6x6x4xf32>
    %74 = vector.shape_cast %71 : vector<6x6x4xf32> to vector<1x6x6x4xf32>
    tpu.vector_store %arg14[%c0_103, %c0_104, %c0_105, %c28], %74 {strides = array<i32>} : memref<2x6x6x100xf32, #tpu.memory_space<vmem>>, vector<1x6x6x4xf32>,
    %c5_106 = arith.constant 5 : index
    %c0_107 = arith.constant 0 : index
    %c1_108 = arith.constant 1 : index
    %c0_109 = arith.constant 0 : index
    %75 = vector.load %arg0[%c5_106, %c0_107, %c1_108, %c0_109] : memref<8x8x8x4xf32, #tpu.memory_space<vmem>>, vector<1x6x6x4xf32>
    %76 = vector.shape_cast %75 : vector<1x6x6x4xf32> to vector<6x6x4xf32>
    %c1_110 = arith.constant 1 : index
    %c0_111 = arith.constant 0 : index
    %c0_112 = arith.constant 0 : index
    %c28_113 = arith.constant 28 : index
    %77 = vector.load %arg14[%c1_110, %c0_111, %c0_112, %c28_113] : memref<2x6x6x100xf32, #tpu.memory_space<vmem>>, vector<1x6x6x4xf32>
    %78 = vector.shape_cast %77 : vector<1x6x6x4xf32> to vector<6x6x4xf32>
    %79 = vector.shape_cast %76 : vector<6x6x4xf32> to vector<1x6x6x4xf32>
    tpu.vector_store %arg14[%c1_110, %c0_111, %c0_112, %c28_113], %79 {strides = array<i32>} : memref<2x6x6x100xf32, #tpu.memory_space<vmem>>, vector<1x6x6x4xf32>,
    %c6_114 = arith.constant 6 : index
    %c0_115 = arith.constant 0 : index
    %c1_116 = arith.constant 1 : index
    %c0_117 = arith.constant 0 : index
    %80 = vector.load %arg0[%c6_114, %c0_115, %c1_116, %c0_117] : memref<8x8x8x4xf32, #tpu.memory_space<vmem>>, vector<1x6x6x4xf32>
    %81 = vector.shape_cast %80 : vector<1x6x6x4xf32> to vector<6x6x4xf32>
    %c0_118 = arith.constant 0 : index
    %c0_119 = arith.constant 0 : index
    %c0_120 = arith.constant 0 : index
    %c32 = arith.constant 32 : index
    %82 = vector.load %arg14[%c0_118, %c0_119, %c0_120, %c32] : memref<2x6x6x100xf32, #tpu.memory_space<vmem>>, vector<1x6x6x4xf32>
    %83 = vector.shape_cast %82 : vector<1x6x6x4xf32> to vector<6x6x4xf32>
    %84 = vector.shape_cast %81 : vector<6x6x4xf32> to vector<1x6x6x4xf32>
    tpu.vector_store %arg14[%c0_118, %c0_119, %c0_120, %c32], %84 {strides = array<i32>} : memref<2x6x6x100xf32, #tpu.memory_space<vmem>>, vector<1x6x6x4xf32>,
    %c7_121 = arith.constant 7 : index
    %c0_122 = arith.constant 0 : index
    %c1_123 = arith.constant 1 : index
    %c0_124 = arith.constant 0 : index
    %85 = vector.load %arg0[%c7_121, %c0_122, %c1_123, %c0_124] : memref<8x8x8x4xf32, #tpu.memory_space<vmem>>, vector<1x6x6x4xf32>
    %86 = vector.shape_cast %85 : vector<1x6x6x4xf32> to vector<6x6x4xf32>
    %c1_125 = arith.constant 1 : index
    %c0_126 = arith.constant 0 : index
    %c0_127 = arith.constant 0 : index
    %c32_128 = arith.constant 32 : index
    %87 = vector.load %arg14[%c1_125, %c0_126, %c0_127, %c32_128] : memref<2x6x6x100xf32, #tpu.memory_space<vmem>>, vector<1x6x6x4xf32>
    %88 = vector.shape_cast %87 : vector<1x6x6x4xf32> to vector<6x6x4xf32>
    %89 = vector.shape_cast %86 : vector<6x6x4xf32> to vector<1x6x6x4xf32>
    tpu.vector_store %arg14[%c1_125, %c0_126, %c0_127, %c32_128], %89 {strides = array<i32>} : memref<2x6x6x100xf32, #tpu.memory_space<vmem>>, vector<1x6x6x4xf32>,
    %c4_129 = arith.constant 4 : index
    %c0_130 = arith.constant 0 : index
    %c2_131 = arith.constant 2 : index
    %c0_132 = arith.constant 0 : index
    %90 = vector.load %arg0[%c4_129, %c0_130, %c2_131, %c0_132] : memref<8x8x8x4xf32, #tpu.memory_space<vmem>>, vector<1x6x6x4xf32>
    %91 = vector.shape_cast %90 : vector<1x6x6x4xf32> to vector<6x6x4xf32>
    %c0_133 = arith.constant 0 : index
    %c0_134 = arith.constant 0 : index
    %c0_135 = arith.constant 0 : index
    %c36 = arith.constant 36 : index
    %92 = vector.load %arg14[%c0_133, %c0_134, %c0_135, %c36] : memref<2x6x6x100xf32, #tpu.memory_space<vmem>>, vector<1x6x6x4xf32>
    %93 = vector.shape_cast %92 : vector<1x6x6x4xf32> to vector<6x6x4xf32>
    %94 = vector.shape_cast %91 : vector<6x6x4xf32> to vector<1x6x6x4xf32>
    tpu.vector_store %arg14[%c0_133, %c0_134, %c0_135, %c36], %94 {strides = array<i32>} : memref<2x6x6x100xf32, #tpu.memory_space<vmem>>, vector<1x6x6x4xf32>,
    %c5_136 = arith.constant 5 : index
    %c0_137 = arith.constant 0 : index
    %c2_138 = arith.constant 2 : index
    %c0_139 = arith.constant 0 : index
    %95 = vector.load %arg0[%c5_136, %c0_137, %c2_138, %c0_139] : memref<8x8x8x4xf32, #tpu.memory_space<vmem>>, vector<1x6x6x4xf32>
    %96 = vector.shape_cast %95 : vector<1x6x6x4xf32> to vector<6x6x4xf32>
    %c1_140 = arith.constant 1 : index
    %c0_141 = arith.constant 0 : index
    %c0_142 = arith.constant 0 : index
    %c36_143 = arith.constant 36 : index
    %97 = vector.load %arg14[%c1_140, %c0_141, %c0_142, %c36_143] : memref<2x6x6x100xf32, #tpu.memory_space<vmem>>, vector<1x6x6x4xf32>
    %98 = vector.shape_cast %97 : vector<1x6x6x4xf32> to vector<6x6x4xf32>
    %99 = vector.shape_cast %96 : vector<6x6x4xf32> to vector<1x6x6x4xf32>
    tpu.vector_store %arg14[%c1_140, %c0_141, %c0_142, %c36_143], %99 {strides = array<i32>} : memref<2x6x6x100xf32, #tpu.memory_space<vmem>>, vector<1x6x6x4xf32>,
    %c0_144 = arith.constant 0 : index
    %c1_145 = arith.constant 1 : index
    %c0_146 = arith.constant 0 : index
    %c0_147 = arith.constant 0 : index
    %100 = vector.load %arg0[%c0_144, %c1_145, %c0_146, %c0_147] : memref<8x8x8x4xf32, #tpu.memory_space<vmem>>, vector<1x6x6x4xf32>
    %101 = vector.shape_cast %100 : vector<1x6x6x4xf32> to vector<6x6x4xf32>
    %c0_148 = arith.constant 0 : index
    %c0_149 = arith.constant 0 : index
    %c0_150 = arith.constant 0 : index
    %c40 = arith.constant 40 : index
    %102 = vector.load %arg14[%c0_148, %c0_149, %c0_150, %c40] : memref<2x6x6x100xf32, #tpu.memory_space<vmem>>, vector<1x6x6x4xf32>
    %103 = vector.shape_cast %102 : vector<1x6x6x4xf32> to vector<6x6x4xf32>
    %104 = vector.shape_cast %101 : vector<6x6x4xf32> to vector<1x6x6x4xf32>
    tpu.vector_store %arg14[%c0_148, %c0_149, %c0_150, %c40], %104 {strides = array<i32>} : memref<2x6x6x100xf32, #tpu.memory_space<vmem>>, vector<1x6x6x4xf32>,
    %c1_151 = arith.constant 1 : index
    %c1_152 = arith.constant 1 : index
    %c0_153 = arith.constant 0 : index
    %c0_154 = arith.constant 0 : index
    %105 = vector.load %arg0[%c1_151, %c1_152, %c0_153, %c0_154] : memref<8x8x8x4xf32, #tpu.memory_space<vmem>>, vector<1x6x6x4xf32>
    %106 = vector.shape_cast %105 : vector<1x6x6x4xf32> to vector<6x6x4xf32>
    %c1_155 = arith.constant 1 : index
    %c0_156 = arith.constant 0 : index
    %c0_157 = arith.constant 0 : index
    %c40_158 = arith.constant 40 : index
    %107 = vector.load %arg14[%c1_155, %c0_156, %c0_157, %c40_158] : memref<2x6x6x100xf32, #tpu.memory_space<vmem>>, vector<1x6x6x4xf32>
    %108 = vector.shape_cast %107 : vector<1x6x6x4xf32> to vector<6x6x4xf32>
    %109 = vector.shape_cast %106 : vector<6x6x4xf32> to vector<1x6x6x4xf32>
    tpu.vector_store %arg14[%c1_155, %c0_156, %c0_157, %c40_158], %109 {strides = array<i32>} : memref<2x6x6x100xf32, #tpu.memory_space<vmem>>, vector<1x6x6x4xf32>,
    %c2_159 = arith.constant 2 : index
    %c1_160 = arith.constant 1 : index
    %c0_161 = arith.constant 0 : index
    %c0_162 = arith.constant 0 : index
    %110 = vector.load %arg0[%c2_159, %c1_160, %c0_161, %c0_162] : memref<8x8x8x4xf32, #tpu.memory_space<vmem>>, vector<1x6x6x4xf32>
    %111 = vector.shape_cast %110 : vector<1x6x6x4xf32> to vector<6x6x4xf32>
    %c0_163 = arith.constant 0 : index
    %c0_164 = arith.constant 0 : index
    %c0_165 = arith.constant 0 : index
    %c44 = arith.constant 44 : index
    %112 = vector.load %arg14[%c0_163, %c0_164, %c0_165, %c44] : memref<2x6x6x100xf32, #tpu.memory_space<vmem>>, vector<1x6x6x4xf32>
    %113 = vector.shape_cast %112 : vector<1x6x6x4xf32> to vector<6x6x4xf32>
    %114 = vector.shape_cast %111 : vector<6x6x4xf32> to vector<1x6x6x4xf32>
    tpu.vector_store %arg14[%c0_163, %c0_164, %c0_165, %c44], %114 {strides = array<i32>} : memref<2x6x6x100xf32, #tpu.memory_space<vmem>>, vector<1x6x6x4xf32>,
    %c3_166 = arith.constant 3 : index
    %c1_167 = arith.constant 1 : index
    %c0_168 = arith.constant 0 : index
    %c0_169 = arith.constant 0 : index
    %115 = vector.load %arg0[%c3_166, %c1_167, %c0_168, %c0_169] : memref<8x8x8x4xf32, #tpu.memory_space<vmem>>, vector<1x6x6x4xf32>
    %116 = vector.shape_cast %115 : vector<1x6x6x4xf32> to vector<6x6x4xf32>
    %c1_170 = arith.constant 1 : index
    %c0_171 = arith.constant 0 : index
    %c0_172 = arith.constant 0 : index
    %c44_173 = arith.constant 44 : index
    %117 = vector.load %arg14[%c1_170, %c0_171, %c0_172, %c44_173] : memref<2x6x6x100xf32, #tpu.memory_space<vmem>>, vector<1x6x6x4xf32>
    %118 = vector.shape_cast %117 : vector<1x6x6x4xf32> to vector<6x6x4xf32>
    %119 = vector.shape_cast %116 : vector<6x6x4xf32> to vector<1x6x6x4xf32>
    tpu.vector_store %arg14[%c1_170, %c0_171, %c0_172, %c44_173], %119 {strides = array<i32>} : memref<2x6x6x100xf32, #tpu.memory_space<vmem>>, vector<1x6x6x4xf32>,
    %c0_174 = arith.constant 0 : index
    %c1_175 = arith.constant 1 : index
    %c1_176 = arith.constant 1 : index
    %c0_177 = arith.constant 0 : index
    %120 = vector.load %arg0[%c0_174, %c1_175, %c1_176, %c0_177] : memref<8x8x8x4xf32, #tpu.memory_space<vmem>>, vector<1x6x6x4xf32>
    %121 = vector.shape_cast %120 : vector<1x6x6x4xf32> to vector<6x6x4xf32>
    %c0_178 = arith.constant 0 : index
    %c0_179 = arith.constant 0 : index
    %c0_180 = arith.constant 0 : index
    %c48 = arith.constant 48 : index
    %122 = vector.load %arg14[%c0_178, %c0_179, %c0_180, %c48] : memref<2x6x6x100xf32, #tpu.memory_space<vmem>>, vector<1x6x6x4xf32>
    %123 = vector.shape_cast %122 : vector<1x6x6x4xf32> to vector<6x6x4xf32>
    %124 = vector.shape_cast %121 : vector<6x6x4xf32> to vector<1x6x6x4xf32>
    tpu.vector_store %arg14[%c0_178, %c0_179, %c0_180, %c48], %124 {strides = array<i32>} : memref<2x6x6x100xf32, #tpu.memory_space<vmem>>, vector<1x6x6x4xf32>,
    %c1_181 = arith.constant 1 : index
    %c1_182 = arith.constant 1 : index
    %c1_183 = arith.constant 1 : index
    %c0_184 = arith.constant 0 : index
    %125 = vector.load %arg0[%c1_181, %c1_182, %c1_183, %c0_184] : memref<8x8x8x4xf32, #tpu.memory_space<vmem>>, vector<1x6x6x4xf32>
    %126 = vector.shape_cast %125 : vector<1x6x6x4xf32> to vector<6x6x4xf32>
    %c1_185 = arith.constant 1 : index
    %c0_186 = arith.constant 0 : index
    %c0_187 = arith.constant 0 : index
    %c48_188 = arith.constant 48 : index
    %127 = vector.load %arg14[%c1_185, %c0_186, %c0_187, %c48_188] : memref<2x6x6x100xf32, #tpu.memory_space<vmem>>, vector<1x6x6x4xf32>
    %128 = vector.shape_cast %127 : vector<1x6x6x4xf32> to vector<6x6x4xf32>
    %129 = vector.shape_cast %126 : vector<6x6x4xf32> to vector<1x6x6x4xf32>
    tpu.vector_store %arg14[%c1_185, %c0_186, %c0_187, %c48_188], %129 {strides = array<i32>} : memref<2x6x6x100xf32, #tpu.memory_space<vmem>>, vector<1x6x6x4xf32>,
    %c2_189 = arith.constant 2 : index
    %c1_190 = arith.constant 1 : index
    %c1_191 = arith.constant 1 : index
    %c0_192 = arith.constant 0 : index
    %130 = vector.load %arg0[%c2_189, %c1_190, %c1_191, %c0_192] : memref<8x8x8x4xf32, #tpu.memory_space<vmem>>, vector<1x6x6x4xf32>
    %131 = vector.shape_cast %130 : vector<1x6x6x4xf32> to vector<6x6x4xf32>
    %c0_193 = arith.constant 0 : index
    %c0_194 = arith.constant 0 : index
    %c0_195 = arith.constant 0 : index
    %c52 = arith.constant 52 : index
    %132 = vector.load %arg14[%c0_193, %c0_194, %c0_195, %c52] : memref<2x6x6x100xf32, #tpu.memory_space<vmem>>, vector<1x6x6x4xf32>
    %133 = vector.shape_cast %132 : vector<1x6x6x4xf32> to vector<6x6x4xf32>
    %134 = vector.shape_cast %131 : vector<6x6x4xf32> to vector<1x6x6x4xf32>
    tpu.vector_store %arg14[%c0_193, %c0_194, %c0_195, %c52], %134 {strides = array<i32>} : memref<2x6x6x100xf32, #tpu.memory_space<vmem>>, vector<1x6x6x4xf32>,
    %c3_196 = arith.constant 3 : index
    %c1_197 = arith.constant 1 : index
    %c1_198 = arith.constant 1 : index
    %c0_199 = arith.constant 0 : index
    %135 = vector.load %arg0[%c3_196, %c1_197, %c1_198, %c0_199] : memref<8x8x8x4xf32, #tpu.memory_space<vmem>>, vector<1x6x6x4xf32>
    %136 = vector.shape_cast %135 : vector<1x6x6x4xf32> to vector<6x6x4xf32>
    %c1_200 = arith.constant 1 : index
    %c0_201 = arith.constant 0 : index
    %c0_202 = arith.constant 0 : index
    %c52_203 = arith.constant 52 : index
    %137 = vector.load %arg14[%c1_200, %c0_201, %c0_202, %c52_203] : memref<2x6x6x100xf32, #tpu.memory_space<vmem>>, vector<1x6x6x4xf32>
    %138 = vector.shape_cast %137 : vector<1x6x6x4xf32> to vector<6x6x4xf32>
    %139 = vector.shape_cast %136 : vector<6x6x4xf32> to vector<1x6x6x4xf32>
    tpu.vector_store %arg14[%c1_200, %c0_201, %c0_202, %c52_203], %139 {strides = array<i32>} : memref<2x6x6x100xf32, #tpu.memory_space<vmem>>, vector<1x6x6x4xf32>,
    %c0_204 = arith.constant 0 : index
    %c1_205 = arith.constant 1 : index
    %c2_206 = arith.constant 2 : index
    %c0_207 = arith.constant 0 : index
    %140 = vector.load %arg0[%c0_204, %c1_205, %c2_206, %c0_207] : memref<8x8x8x4xf32, #tpu.memory_space<vmem>>, vector<1x6x6x4xf32>
    %141 = vector.shape_cast %140 : vector<1x6x6x4xf32> to vector<6x6x4xf32>
    %c0_208 = arith.constant 0 : index
    %c0_209 = arith.constant 0 : index
    %c0_210 = arith.constant 0 : index
    %c56 = arith.constant 56 : index
    %142 = vector.load %arg14[%c0_208, %c0_209, %c0_210, %c56] : memref<2x6x6x100xf32, #tpu.memory_space<vmem>>, vector<1x6x6x4xf32>
    %143 = vector.shape_cast %142 : vector<1x6x6x4xf32> to vector<6x6x4xf32>
    %144 = vector.shape_cast %141 : vector<6x6x4xf32> to vector<1x6x6x4xf32>
    tpu.vector_store %arg14[%c0_208, %c0_209, %c0_210, %c56], %144 {strides = array<i32>} : memref<2x6x6x100xf32, #tpu.memory_space<vmem>>, vector<1x6x6x4xf32>,
    %c1_211 = arith.constant 1 : index
    %c1_212 = arith.constant 1 : index
    %c2_213 = arith.constant 2 : index
    %c0_214 = arith.constant 0 : index
    %145 = vector.load %arg0[%c1_211, %c1_212, %c2_213, %c0_214] : memref<8x8x8x4xf32, #tpu.memory_space<vmem>>, vector<1x6x6x4xf32>
    %146 = vector.shape_cast %145 : vector<1x6x6x4xf32> to vector<6x6x4xf32>
    %c1_215 = arith.constant 1 : index
    %c0_216 = arith.constant 0 : index
    %c0_217 = arith.constant 0 : index
    %c56_218 = arith.constant 56 : index
    %147 = vector.load %arg14[%c1_215, %c0_216, %c0_217, %c56_218] : memref<2x6x6x100xf32, #tpu.memory_space<vmem>>, vector<1x6x6x4xf32>
    %148 = vector.shape_cast %147 : vector<1x6x6x4xf32> to vector<6x6x4xf32>
    %149 = vector.shape_cast %146 : vector<6x6x4xf32> to vector<1x6x6x4xf32>
    tpu.vector_store %arg14[%c1_215, %c0_216, %c0_217, %c56_218], %149 {strides = array<i32>} : memref<2x6x6x100xf32, #tpu.memory_space<vmem>>, vector<1x6x6x4xf32>,
    %c4_219 = arith.constant 4 : index
    %c1_220 = arith.constant 1 : index
    %c0_221 = arith.constant 0 : index
    %c0_222 = arith.constant 0 : index
    %150 = vector.load %arg0[%c4_219, %c1_220, %c0_221, %c0_222] : memref<8x8x8x4xf32, #tpu.memory_space<vmem>>, vector<1x6x6x4xf32>
    %151 = vector.shape_cast %150 : vector<1x6x6x4xf32> to vector<6x6x4xf32>
    %c0_223 = arith.constant 0 : index
    %c0_224 = arith.constant 0 : index
    %c0_225 = arith.constant 0 : index
    %c60 = arith.constant 60 : index
    %152 = vector.load %arg14[%c0_223, %c0_224, %c0_225, %c60] : memref<2x6x6x100xf32, #tpu.memory_space<vmem>>, vector<1x6x6x4xf32>
    %153 = vector.shape_cast %152 : vector<1x6x6x4xf32> to vector<6x6x4xf32>
    %154 = vector.shape_cast %151 : vector<6x6x4xf32> to vector<1x6x6x4xf32>
    tpu.vector_store %arg14[%c0_223, %c0_224, %c0_225, %c60], %154 {strides = array<i32>} : memref<2x6x6x100xf32, #tpu.memory_space<vmem>>, vector<1x6x6x4xf32>,
    %c5_226 = arith.constant 5 : index
    %c1_227 = arith.constant 1 : index
    %c0_228 = arith.constant 0 : index
    %c0_229 = arith.constant 0 : index
    %155 = vector.load %arg0[%c5_226, %c1_227, %c0_228, %c0_229] : memref<8x8x8x4xf32, #tpu.memory_space<vmem>>, vector<1x6x6x4xf32>
    %156 = vector.shape_cast %155 : vector<1x6x6x4xf32> to vector<6x6x4xf32>
    %c1_230 = arith.constant 1 : index
    %c0_231 = arith.constant 0 : index
    %c0_232 = arith.constant 0 : index
    %c60_233 = arith.constant 60 : index
    %157 = vector.load %arg14[%c1_230, %c0_231, %c0_232, %c60_233] : memref<2x6x6x100xf32, #tpu.memory_space<vmem>>, vector<1x6x6x4xf32>
    %158 = vector.shape_cast %157 : vector<1x6x6x4xf32> to vector<6x6x4xf32>
    %159 = vector.shape_cast %156 : vector<6x6x4xf32> to vector<1x6x6x4xf32>
    tpu.vector_store %arg14[%c1_230, %c0_231, %c0_232, %c60_233], %159 {strides = array<i32>} : memref<2x6x6x100xf32, #tpu.memory_space<vmem>>, vector<1x6x6x4xf32>,
    %c6_234 = arith.constant 6 : index
    %c1_235 = arith.constant 1 : index
    %c0_236 = arith.constant 0 : index
    %c0_237 = arith.constant 0 : index
    %160 = vector.load %arg0[%c6_234, %c1_235, %c0_236, %c0_237] : memref<8x8x8x4xf32, #tpu.memory_space<vmem>>, vector<1x6x6x4xf32>
    %161 = vector.shape_cast %160 : vector<1x6x6x4xf32> to vector<6x6x4xf32>
    %c0_238 = arith.constant 0 : index
    %c0_239 = arith.constant 0 : index
    %c0_240 = arith.constant 0 : index
    %c64 = arith.constant 64 : index
    %162 = vector.load %arg14[%c0_238, %c0_239, %c0_240, %c64] : memref<2x6x6x100xf32, #tpu.memory_space<vmem>>, vector<1x6x6x4xf32>
    %163 = vector.shape_cast %162 : vector<1x6x6x4xf32> to vector<6x6x4xf32>
    %164 = vector.shape_cast %161 : vector<6x6x4xf32> to vector<1x6x6x4xf32>
    tpu.vector_store %arg14[%c0_238, %c0_239, %c0_240, %c64], %164 {strides = array<i32>} : memref<2x6x6x100xf32, #tpu.memory_space<vmem>>, vector<1x6x6x4xf32>,
    %c7_241 = arith.constant 7 : index
    %c1_242 = arith.constant 1 : index
    %c0_243 = arith.constant 0 : index
    %c0_244 = arith.constant 0 : index
    %165 = vector.load %arg0[%c7_241, %c1_242, %c0_243, %c0_244] : memref<8x8x8x4xf32, #tpu.memory_space<vmem>>, vector<1x6x6x4xf32>
    %166 = vector.shape_cast %165 : vector<1x6x6x4xf32> to vector<6x6x4xf32>
    %c1_245 = arith.constant 1 : index
    %c0_246 = arith.constant 0 : index
    %c0_247 = arith.constant 0 : index
    %c64_248 = arith.constant 64 : index
    %167 = vector.load %arg14[%c1_245, %c0_246, %c0_247, %c64_248] : memref<2x6x6x100xf32, #tpu.memory_space<vmem>>, vector<1x6x6x4xf32>
    %168 = vector.shape_cast %167 : vector<1x6x6x4xf32> to vector<6x6x4xf32>
    %169 = vector.shape_cast %166 : vector<6x6x4xf32> to vector<1x6x6x4xf32>
    tpu.vector_store %arg14[%c1_245, %c0_246, %c0_247, %c64_248], %169 {strides = array<i32>} : memref<2x6x6x100xf32, #tpu.memory_space<vmem>>, vector<1x6x6x4xf32>,
    %c4_249 = arith.constant 4 : index
    %c1_250 = arith.constant 1 : index
    %c1_251 = arith.constant 1 : index
    %c0_252 = arith.constant 0 : index
    %170 = vector.load %arg0[%c4_249, %c1_250, %c1_251, %c0_252] : memref<8x8x8x4xf32, #tpu.memory_space<vmem>>, vector<1x6x6x4xf32>
    %171 = vector.shape_cast %170 : vector<1x6x6x4xf32> to vector<6x6x4xf32>
    %c0_253 = arith.constant 0 : index
    %c0_254 = arith.constant 0 : index
    %c0_255 = arith.constant 0 : index
    %c68 = arith.constant 68 : index
    %172 = vector.load %arg14[%c0_253, %c0_254, %c0_255, %c68] : memref<2x6x6x100xf32, #tpu.memory_space<vmem>>, vector<1x6x6x4xf32>
    %173 = vector.shape_cast %172 : vector<1x6x6x4xf32> to vector<6x6x4xf32>
    %174 = vector.shape_cast %171 : vector<6x6x4xf32> to vector<1x6x6x4xf32>
    tpu.vector_store %arg14[%c0_253, %c0_254, %c0_255, %c68], %174 {strides = array<i32>} : memref<2x6x6x100xf32, #tpu.memory_space<vmem>>, vector<1x6x6x4xf32>,
    %c5_256 = arith.constant 5 : index
    %c1_257 = arith.constant 1 : index
    %c1_258 = arith.constant 1 : index
    %c0_259 = arith.constant 0 : index
    %175 = vector.load %arg0[%c5_256, %c1_257, %c1_258, %c0_259] : memref<8x8x8x4xf32, #tpu.memory_space<vmem>>, vector<1x6x6x4xf32>
    %176 = vector.shape_cast %175 : vector<1x6x6x4xf32> to vector<6x6x4xf32>
    %c1_260 = arith.constant 1 : index
    %c0_261 = arith.constant 0 : index
    %c0_262 = arith.constant 0 : index
    %c68_263 = arith.constant 68 : index
    %177 = vector.load %arg14[%c1_260, %c0_261, %c0_262, %c68_263] : memref<2x6x6x100xf32, #tpu.memory_space<vmem>>, vector<1x6x6x4xf32>
    %178 = vector.shape_cast %177 : vector<1x6x6x4xf32> to vector<6x6x4xf32>
    %179 = vector.shape_cast %176 : vector<6x6x4xf32> to vector<1x6x6x4xf32>
    tpu.vector_store %arg14[%c1_260, %c0_261, %c0_262, %c68_263], %179 {strides = array<i32>} : memref<2x6x6x100xf32, #tpu.memory_space<vmem>>, vector<1x6x6x4xf32>,
    %c6_264 = arith.constant 6 : index
    %c1_265 = arith.constant 1 : index
    %c1_266 = arith.constant 1 : index
    %c0_267 = arith.constant 0 : index
    %180 = vector.load %arg0[%c6_264, %c1_265, %c1_266, %c0_267] : memref<8x8x8x4xf32, #tpu.memory_space<vmem>>, vector<1x6x6x4xf32>
    %181 = vector.shape_cast %180 : vector<1x6x6x4xf32> to vector<6x6x4xf32>
    %c0_268 = arith.constant 0 : index
    %c0_269 = arith.constant 0 : index
    %c0_270 = arith.constant 0 : index
    %c72 = arith.constant 72 : index
    %182 = vector.load %arg14[%c0_268, %c0_269, %c0_270, %c72] : memref<2x6x6x100xf32, #tpu.memory_space<vmem>>, vector<1x6x6x4xf32>
    %183 = vector.shape_cast %182 : vector<1x6x6x4xf32> to vector<6x6x4xf32>
    %184 = vector.shape_cast %181 : vector<6x6x4xf32> to vector<1x6x6x4xf32>
    tpu.vector_store %arg14[%c0_268, %c0_269, %c0_270, %c72], %184 {strides = array<i32>} : memref<2x6x6x100xf32, #tpu.memory_space<vmem>>, vector<1x6x6x4xf32>,
    %c7_271 = arith.constant 7 : index
    %c1_272 = arith.constant 1 : index
    %c1_273 = arith.constant 1 : index
    %c0_274 = arith.constant 0 : index
    %185 = vector.load %arg0[%c7_271, %c1_272, %c1_273, %c0_274] : memref<8x8x8x4xf32, #tpu.memory_space<vmem>>, vector<1x6x6x4xf32>
    %186 = vector.shape_cast %185 : vector<1x6x6x4xf32> to vector<6x6x4xf32>
    %c1_275 = arith.constant 1 : index
    %c0_276 = arith.constant 0 : index
    %c0_277 = arith.constant 0 : index
    %c72_278 = arith.constant 72 : index
    %187 = vector.load %arg14[%c1_275, %c0_276, %c0_277, %c72_278] : memref<2x6x6x100xf32, #tpu.memory_space<vmem>>, vector<1x6x6x4xf32>
    %188 = vector.shape_cast %187 : vector<1x6x6x4xf32> to vector<6x6x4xf32>
    %189 = vector.shape_cast %186 : vector<6x6x4xf32> to vector<1x6x6x4xf32>
    tpu.vector_store %arg14[%c1_275, %c0_276, %c0_277, %c72_278], %189 {strides = array<i32>} : memref<2x6x6x100xf32, #tpu.memory_space<vmem>>, vector<1x6x6x4xf32>,
    %c4_279 = arith.constant 4 : index
    %c1_280 = arith.constant 1 : index
    %c2_281 = arith.constant 2 : index
    %c0_282 = arith.constant 0 : index
    %190 = vector.load %arg0[%c4_279, %c1_280, %c2_281, %c0_282] : memref<8x8x8x4xf32, #tpu.memory_space<vmem>>, vector<1x6x6x4xf32>
    %191 = vector.shape_cast %190 : vector<1x6x6x4xf32> to vector<6x6x4xf32>
    %c0_283 = arith.constant 0 : index
    %c0_284 = arith.constant 0 : index
    %c0_285 = arith.constant 0 : index
    %c76 = arith.constant 76 : index
    %192 = vector.load %arg14[%c0_283, %c0_284, %c0_285, %c76] : memref<2x6x6x100xf32, #tpu.memory_space<vmem>>, vector<1x6x6x4xf32>
    %193 = vector.shape_cast %192 : vector<1x6x6x4xf32> to vector<6x6x4xf32>
    %194 = vector.shape_cast %191 : vector<6x6x4xf32> to vector<1x6x6x4xf32>
    tpu.vector_store %arg14[%c0_283, %c0_284, %c0_285, %c76], %194 {strides = array<i32>} : memref<2x6x6x100xf32, #tpu.memory_space<vmem>>, vector<1x6x6x4xf32>,
    %c5_286 = arith.constant 5 : index
    %c1_287 = arith.constant 1 : index
    %c2_288 = arith.constant 2 : index
    %c0_289 = arith.constant 0 : index
    %195 = vector.load %arg0[%c5_286, %c1_287, %c2_288, %c0_289] : memref<8x8x8x4xf32, #tpu.memory_space<vmem>>, vector<1x6x6x4xf32>
    %196 = vector.shape_cast %195 : vector<1x6x6x4xf32> to vector<6x6x4xf32>
    %c1_290 = arith.constant 1 : index
    %c0_291 = arith.constant 0 : index
    %c0_292 = arith.constant 0 : index
    %c76_293 = arith.constant 76 : index
    %197 = vector.load %arg14[%c1_290, %c0_291, %c0_292, %c76_293] : memref<2x6x6x100xf32, #tpu.memory_space<vmem>>, vector<1x6x6x4xf32>
    %198 = vector.shape_cast %197 : vector<1x6x6x4xf32> to vector<6x6x4xf32>
    %199 = vector.shape_cast %196 : vector<6x6x4xf32> to vector<1x6x6x4xf32>
    tpu.vector_store %arg14[%c1_290, %c0_291, %c0_292, %c76_293], %199 {strides = array<i32>} : memref<2x6x6x100xf32, #tpu.memory_space<vmem>>, vector<1x6x6x4xf32>,
    %c0_294 = arith.constant 0 : index
    %c2_295 = arith.constant 2 : index
    %c0_296 = arith.constant 0 : index
    %c0_297 = arith.constant 0 : index
    %200 = vector.load %arg0[%c0_294, %c2_295, %c0_296, %c0_297] : memref<8x8x8x4xf32, #tpu.memory_space<vmem>>, vector<1x6x6x4xf32>
    %201 = vector.shape_cast %200 : vector<1x6x6x4xf32> to vector<6x6x4xf32>
    %c0_298 = arith.constant 0 : index
    %c0_299 = arith.constant 0 : index
    %c0_300 = arith.constant 0 : index
    %c80 = arith.constant 80 : index
    %202 = vector.load %arg14[%c0_298, %c0_299, %c0_300, %c80] : memref<2x6x6x100xf32, #tpu.memory_space<vmem>>, vector<1x6x6x4xf32>
    %203 = vector.shape_cast %202 : vector<1x6x6x4xf32> to vector<6x6x4xf32>
    %204 = vector.shape_cast %201 : vector<6x6x4xf32> to vector<1x6x6x4xf32>
    tpu.vector_store %arg14[%c0_298, %c0_299, %c0_300, %c80], %204 {strides = array<i32>} : memref<2x6x6x100xf32, #tpu.memory_space<vmem>>, vector<1x6x6x4xf32>,
    %c1_301 = arith.constant 1 : index
    %c2_302 = arith.constant 2 : index
    %c0_303 = arith.constant 0 : index
    %c0_304 = arith.constant 0 : index
    %205 = vector.load %arg0[%c1_301, %c2_302, %c0_303, %c0_304] : memref<8x8x8x4xf32, #tpu.memory_space<vmem>>, vector<1x6x6x4xf32>
    %206 = vector.shape_cast %205 : vector<1x6x6x4xf32> to vector<6x6x4xf32>
    %c1_305 = arith.constant 1 : index
    %c0_306 = arith.constant 0 : index
    %c0_307 = arith.constant 0 : index
    %c80_308 = arith.constant 80 : index
    %207 = vector.load %arg14[%c1_305, %c0_306, %c0_307, %c80_308] : memref<2x6x6x100xf32, #tpu.memory_space<vmem>>, vector<1x6x6x4xf32>
    %208 = vector.shape_cast %207 : vector<1x6x6x4xf32> to vector<6x6x4xf32>
    %209 = vector.shape_cast %206 : vector<6x6x4xf32> to vector<1x6x6x4xf32>
    tpu.vector_store %arg14[%c1_305, %c0_306, %c0_307, %c80_308], %209 {strides = array<i32>} : memref<2x6x6x100xf32, #tpu.memory_space<vmem>>, vector<1x6x6x4xf32>,
    %c2_309 = arith.constant 2 : index
    %c2_310 = arith.constant 2 : index
    %c0_311 = arith.constant 0 : index
    %c0_312 = arith.constant 0 : index
    %210 = vector.load %arg0[%c2_309, %c2_310, %c0_311, %c0_312] : memref<8x8x8x4xf32, #tpu.memory_space<vmem>>, vector<1x6x6x4xf32>
    %211 = vector.shape_cast %210 : vector<1x6x6x4xf32> to vector<6x6x4xf32>
    %c0_313 = arith.constant 0 : index
    %c0_314 = arith.constant 0 : index
    %c0_315 = arith.constant 0 : index
    %c84 = arith.constant 84 : index
    %212 = vector.load %arg14[%c0_313, %c0_314, %c0_315, %c84] : memref<2x6x6x100xf32, #tpu.memory_space<vmem>>, vector<1x6x6x4xf32>
    %213 = vector.shape_cast %212 : vector<1x6x6x4xf32> to vector<6x6x4xf32>
    %214 = vector.shape_cast %211 : vector<6x6x4xf32> to vector<1x6x6x4xf32>
    tpu.vector_store %arg14[%c0_313, %c0_314, %c0_315, %c84], %214 {strides = array<i32>} : memref<2x6x6x100xf32, #tpu.memory_space<vmem>>, vector<1x6x6x4xf32>,
    %c3_316 = arith.constant 3 : index
    %c2_317 = arith.constant 2 : index
    %c0_318 = arith.constant 0 : index
    %c0_319 = arith.constant 0 : index
    %215 = vector.load %arg0[%c3_316, %c2_317, %c0_318, %c0_319] : memref<8x8x8x4xf32, #tpu.memory_space<vmem>>, vector<1x6x6x4xf32>
    %216 = vector.shape_cast %215 : vector<1x6x6x4xf32> to vector<6x6x4xf32>
    %c1_320 = arith.constant 1 : index
    %c0_321 = arith.constant 0 : index
    %c0_322 = arith.constant 0 : index
    %c84_323 = arith.constant 84 : index
    %217 = vector.load %arg14[%c1_320, %c0_321, %c0_322, %c84_323] : memref<2x6x6x100xf32, #tpu.memory_space<vmem>>, vector<1x6x6x4xf32>
    %218 = vector.shape_cast %217 : vector<1x6x6x4xf32> to vector<6x6x4xf32>
    %219 = vector.shape_cast %216 : vector<6x6x4xf32> to vector<1x6x6x4xf32>
    tpu.vector_store %arg14[%c1_320, %c0_321, %c0_322, %c84_323], %219 {strides = array<i32>} : memref<2x6x6x100xf32, #tpu.memory_space<vmem>>, vector<1x6x6x4xf32>,
    %c0_324 = arith.constant 0 : index
    %c2_325 = arith.constant 2 : index
    %c1_326 = arith.constant 1 : index
    %c0_327 = arith.constant 0 : index
    %220 = vector.load %arg0[%c0_324, %c2_325, %c1_326, %c0_327] : memref<8x8x8x4xf32, #tpu.memory_space<vmem>>, vector<1x6x6x4xf32>
    %221 = vector.shape_cast %220 : vector<1x6x6x4xf32> to vector<6x6x4xf32>
    %c0_328 = arith.constant 0 : index
    %c0_329 = arith.constant 0 : index
    %c0_330 = arith.constant 0 : index
    %c88 = arith.constant 88 : index
    %222 = vector.load %arg14[%c0_328, %c0_329, %c0_330, %c88] : memref<2x6x6x100xf32, #tpu.memory_space<vmem>>, vector<1x6x6x4xf32>
    %223 = vector.shape_cast %222 : vector<1x6x6x4xf32> to vector<6x6x4xf32>
    %224 = vector.shape_cast %221 : vector<6x6x4xf32> to vector<1x6x6x4xf32>
    tpu.vector_store %arg14[%c0_328, %c0_329, %c0_330, %c88], %224 {strides = array<i32>} : memref<2x6x6x100xf32, #tpu.memory_space<vmem>>, vector<1x6x6x4xf32>,
    %c1_331 = arith.constant 1 : index
    %c2_332 = arith.constant 2 : index
    %c1_333 = arith.constant 1 : index
    %c0_334 = arith.constant 0 : index
    %225 = vector.load %arg0[%c1_331, %c2_332, %c1_333, %c0_334] : memref<8x8x8x4xf32, #tpu.memory_space<vmem>>, vector<1x6x6x4xf32>
    %226 = vector.shape_cast %225 : vector<1x6x6x4xf32> to vector<6x6x4xf32>
    %c1_335 = arith.constant 1 : index
    %c0_336 = arith.constant 0 : index
    %c0_337 = arith.constant 0 : index
    %c88_338 = arith.constant 88 : index
    %227 = vector.load %arg14[%c1_335, %c0_336, %c0_337, %c88_338] : memref<2x6x6x100xf32, #tpu.memory_space<vmem>>, vector<1x6x6x4xf32>
    %228 = vector.shape_cast %227 : vector<1x6x6x4xf32> to vector<6x6x4xf32>
    %229 = vector.shape_cast %226 : vector<6x6x4xf32> to vector<1x6x6x4xf32>
    tpu.vector_store %arg14[%c1_335, %c0_336, %c0_337, %c88_338], %229 {strides = array<i32>} : memref<2x6x6x100xf32, #tpu.memory_space<vmem>>, vector<1x6x6x4xf32>,
    %c2_339 = arith.constant 2 : index
    %c2_340 = arith.constant 2 : index
    %c1_341 = arith.constant 1 : index
    %c0_342 = arith.constant 0 : index
    %230 = vector.load %arg0[%c2_339, %c2_340, %c1_341, %c0_342] : memref<8x8x8x4xf32, #tpu.memory_space<vmem>>, vector<1x6x6x4xf32>
    %231 = vector.shape_cast %230 : vector<1x6x6x4xf32> to vector<6x6x4xf32>
    %c0_343 = arith.constant 0 : index
    %c0_344 = arith.constant 0 : index
    %c0_345 = arith.constant 0 : index
    %c92 = arith.constant 92 : index
    %232 = vector.load %arg14[%c0_343, %c0_344, %c0_345, %c92] : memref<2x6x6x100xf32, #tpu.memory_space<vmem>>, vector<1x6x6x4xf32>
    %233 = vector.shape_cast %232 : vector<1x6x6x4xf32> to vector<6x6x4xf32>
    %234 = vector.shape_cast %231 : vector<6x6x4xf32> to vector<1x6x6x4xf32>
    tpu.vector_store %arg14[%c0_343, %c0_344, %c0_345, %c92], %234 {strides = array<i32>} : memref<2x6x6x100xf32, #tpu.memory_space<vmem>>, vector<1x6x6x4xf32>,
    %c3_346 = arith.constant 3 : index
    %c2_347 = arith.constant 2 : index
    %c1_348 = arith.constant 1 : index
    %c0_349 = arith.constant 0 : index
    %235 = vector.load %arg0[%c3_346, %c2_347, %c1_348, %c0_349] : memref<8x8x8x4xf32, #tpu.memory_space<vmem>>, vector<1x6x6x4xf32>
    %236 = vector.shape_cast %235 : vector<1x6x6x4xf32> to vector<6x6x4xf32>
    %c1_350 = arith.constant 1 : index
    %c0_351 = arith.constant 0 : index
    %c0_352 = arith.constant 0 : index
    %c92_353 = arith.constant 92 : index
    %237 = vector.load %arg14[%c1_350, %c0_351, %c0_352, %c92_353] : memref<2x6x6x100xf32, #tpu.memory_space<vmem>>, vector<1x6x6x4xf32>
    %238 = vector.shape_cast %237 : vector<1x6x6x4xf32> to vector<6x6x4xf32>
    %239 = vector.shape_cast %236 : vector<6x6x4xf32> to vector<1x6x6x4xf32>
    tpu.vector_store %arg14[%c1_350, %c0_351, %c0_352, %c92_353], %239 {strides = array<i32>} : memref<2x6x6x100xf32, #tpu.memory_space<vmem>>, vector<1x6x6x4xf32>,
    %c0_354 = arith.constant 0 : index
    %c2_355 = arith.constant 2 : index
    %c2_356 = arith.constant 2 : index
    %c0_357 = arith.constant 0 : index
    %240 = vector.load %arg0[%c0_354, %c2_355, %c2_356, %c0_357] : memref<8x8x8x4xf32, #tpu.memory_space<vmem>>, vector<1x6x6x4xf32>
    %241 = vector.shape_cast %240 : vector<1x6x6x4xf32> to vector<6x6x4xf32>
    %c0_358 = arith.constant 0 : index
    %c0_359 = arith.constant 0 : index
    %c0_360 = arith.constant 0 : index
    %c96 = arith.constant 96 : index
    %242 = vector.load %arg14[%c0_358, %c0_359, %c0_360, %c96] : memref<2x6x6x100xf32, #tpu.memory_space<vmem>>, vector<1x6x6x4xf32>
    %243 = vector.shape_cast %242 : vector<1x6x6x4xf32> to vector<6x6x4xf32>
    %244 = vector.shape_cast %241 : vector<6x6x4xf32> to vector<1x6x6x4xf32>
    tpu.vector_store %arg14[%c0_358, %c0_359, %c0_360, %c96], %244 {strides = array<i32>} : memref<2x6x6x100xf32, #tpu.memory_space<vmem>>, vector<1x6x6x4xf32>,
    %c1_361 = arith.constant 1 : index
    %c2_362 = arith.constant 2 : index
    %c2_363 = arith.constant 2 : index
    %c0_364 = arith.constant 0 : index
    %245 = vector.load %arg0[%c1_361, %c2_362, %c2_363, %c0_364] : memref<8x8x8x4xf32, #tpu.memory_space<vmem>>, vector<1x6x6x4xf32>
    %246 = vector.shape_cast %245 : vector<1x6x6x4xf32> to vector<6x6x4xf32>
    %c1_365 = arith.constant 1 : index
    %c0_366 = arith.constant 0 : index
    %c0_367 = arith.constant 0 : index
    %c96_368 = arith.constant 96 : index
    %247 = vector.load %arg14[%c1_365, %c0_366, %c0_367, %c96_368] : memref<2x6x6x100xf32, #tpu.memory_space<vmem>>, vector<1x6x6x4xf32>
    %248 = vector.shape_cast %247 : vector<1x6x6x4xf32> to vector<6x6x4xf32>
    %249 = vector.shape_cast %246 : vector<6x6x4xf32> to vector<1x6x6x4xf32>
    tpu.vector_store %arg14[%c1_365, %c0_366, %c0_367, %c96_368], %249 {strides = array<i32>} : memref<2x6x6x100xf32, #tpu.memory_space<vmem>>, vector<1x6x6x4xf32>,
    %c0_369 = arith.constant 0 : index
    %c0_370 = arith.constant 0 : index
    %250 = vector.load %arg1[%c0_369, %c0_370] : memref<100x8xf32, #tpu.memory_space<vmem>>, vector<100x8xf32>
    %c0_371 = arith.constant 0 : index
    %c0_372 = arith.constant 0 : index
    %251 = vector.load %arg2[%c0_371, %c0_372] : memref<1x8xf32, #tpu.memory_space<vmem>>, vector<1x8xf32>
    %cst = arith.constant 0.000000e+00 : f32
    %252 = vector.broadcast %cst : f32 to vector<1x8xf32>
    %cst_373 = arith.constant 0.000000e+00 : f32
    %253 = vector.broadcast %cst_373 : f32 to vector<1x8xf32>
    %c0_374 = arith.constant 0 : index
    %c0_375 = arith.constant 0 : index
    %c0_376 = arith.constant 0 : index
    %c0_377 = arith.constant 0 : index
    %254 = vector.load %arg14[%c0_374, %c0_375, %c0_376, %c0_377] : memref<2x6x6x100xf32, #tpu.memory_space<vmem>>, vector<1x1x6x100xf32>
    %255 = vector.shape_cast %254 : vector<1x1x6x100xf32> to vector<6x100xf32>
    %cst_378 = arith.constant dense<0.000000e+00> : vector<6x8xf32>
    %256 = tpu.matmul %255, %250, %cst_378 {dimension_numbers = #tpu.dot_dimension_numbers<[1], [0], [0], [1], [0, 0, 1, 1], [], []>} : vector<6x100xf32>, vector<100x8xf32>, vector<6x8xf32> -> vector<6x8xf32>
    %257 = vector.broadcast %251 : vector<1x8xf32> to vector<6x8xf32>
    %258 = arith.addf %256, %257 : vector<6x8xf32>
    %cst_379 = arith.constant dense<0.000000e+00> : vector<8xf32>
    %259 = vector.multi_reduction <add>, %258, %cst_379 [0] : vector<6x8xf32> to vector<8xf32>
    %260 = vector.shape_cast %259 : vector<8xf32> to vector<1x8xf32>
    %261 = arith.addf %252, %260 : vector<1x8xf32>
    %262 = arith.mulf %258, %258 : vector<6x8xf32>
    %cst_380 = arith.constant dense<0.000000e+00> : vector<8xf32>
    %263 = vector.multi_reduction <add>, %262, %cst_380 [0] : vector<6x8xf32> to vector<8xf32>
    %264 = vector.shape_cast %263 : vector<8xf32> to vector<1x8xf32>
    %265 = arith.addf %253, %264 : vector<1x8xf32>
    %c0_381 = arith.constant 0 : index
    %c1_382 = arith.constant 1 : index
    %c0_383 = arith.constant 0 : index
    %c0_384 = arith.constant 0 : index
    %266 = vector.load %arg14[%c0_381, %c1_382, %c0_383, %c0_384] : memref<2x6x6x100xf32, #tpu.memory_space<vmem>>, vector<1x1x6x100xf32>
    %267 = vector.shape_cast %266 : vector<1x1x6x100xf32> to vector<6x100xf32>
    %cst_385 = arith.constant dense<0.000000e+00> : vector<6x8xf32>
    %268 = tpu.matmul %267, %250, %cst_385 {dimension_numbers = #tpu.dot_dimension_numbers<[1], [0], [0], [1], [0, 0, 1, 1], [], []>} : vector<6x100xf32>, vector<100x8xf32>, vector<6x8xf32> -> vector<6x8xf32>
    %269 = vector.broadcast %251 : vector<1x8xf32> to vector<6x8xf32>
    %270 = arith.addf %268, %269 : vector<6x8xf32>
    %cst_386 = arith.constant dense<0.000000e+00> : vector<8xf32>
    %271 = vector.multi_reduction <add>, %270, %cst_386 [0] : vector<6x8xf32> to vector<8xf32>
    %272 = vector.shape_cast %271 : vector<8xf32> to vector<1x8xf32>
    %273 = arith.addf %261, %272 : vector<1x8xf32>
    %274 = arith.mulf %270, %270 : vector<6x8xf32>
    %cst_387 = arith.constant dense<0.000000e+00> : vector<8xf32>
    %275 = vector.multi_reduction <add>, %274, %cst_387 [0] : vector<6x8xf32> to vector<8xf32>
    %276 = vector.shape_cast %275 : vector<8xf32> to vector<1x8xf32>
    %277 = arith.addf %265, %276 : vector<1x8xf32>
    %c0_388 = arith.constant 0 : index
    %c2_389 = arith.constant 2 : index
    %c0_390 = arith.constant 0 : index
    %c0_391 = arith.constant 0 : index
    %278 = vector.load %arg14[%c0_388, %c2_389, %c0_390, %c0_391] : memref<2x6x6x100xf32, #tpu.memory_space<vmem>>, vector<1x1x6x100xf32>
    %279 = vector.shape_cast %278 : vector<1x1x6x100xf32> to vector<6x100xf32>
    %cst_392 = arith.constant dense<0.000000e+00> : vector<6x8xf32>
    %280 = tpu.matmul %279, %250, %cst_392 {dimension_numbers = #tpu.dot_dimension_numbers<[1], [0], [0], [1], [0, 0, 1, 1], [], []>} : vector<6x100xf32>, vector<100x8xf32>, vector<6x8xf32> -> vector<6x8xf32>
    %281 = vector.broadcast %251 : vector<1x8xf32> to vector<6x8xf32>
    %282 = arith.addf %280, %281 : vector<6x8xf32>
    %cst_393 = arith.constant dense<0.000000e+00> : vector<8xf32>
    %283 = vector.multi_reduction <add>, %282, %cst_393 [0] : vector<6x8xf32> to vector<8xf32>
    %284 = vector.shape_cast %283 : vector<8xf32> to vector<1x8xf32>
    %285 = arith.addf %273, %284 : vector<1x8xf32>
    %286 = arith.mulf %282, %282 : vector<6x8xf32>
    %cst_394 = arith.constant dense<0.000000e+00> : vector<8xf32>
    %287 = vector.multi_reduction <add>, %286, %cst_394 [0] : vector<6x8xf32> to vector<8xf32>
    %288 = vector.shape_cast %287 : vector<8xf32> to vector<1x8xf32>
    %289 = arith.addf %277, %288 : vector<1x8xf32>
    %c0_395 = arith.constant 0 : index
    %c3_396 = arith.constant 3 : index
    %c0_397 = arith.constant 0 : index
    %c0_398 = arith.constant 0 : index
    %290 = vector.load %arg14[%c0_395, %c3_396, %c0_397, %c0_398] : memref<2x6x6x100xf32, #tpu.memory_space<vmem>>, vector<1x1x6x100xf32>
    %291 = vector.shape_cast %290 : vector<1x1x6x100xf32> to vector<6x100xf32>
    %cst_399 = arith.constant dense<0.000000e+00> : vector<6x8xf32>
    %292 = tpu.matmul %291, %250, %cst_399 {dimension_numbers = #tpu.dot_dimension_numbers<[1], [0], [0], [1], [0, 0, 1, 1], [], []>} : vector<6x100xf32>, vector<100x8xf32>, vector<6x8xf32> -> vector<6x8xf32>
    %293 = vector.broadcast %251 : vector<1x8xf32> to vector<6x8xf32>
    %294 = arith.addf %292, %293 : vector<6x8xf32>
    %cst_400 = arith.constant dense<0.000000e+00> : vector<8xf32>
    %295 = vector.multi_reduction <add>, %294, %cst_400 [0] : vector<6x8xf32> to vector<8xf32>
    %296 = vector.shape_cast %295 : vector<8xf32> to vector<1x8xf32>
    %297 = arith.addf %285, %296 : vector<1x8xf32>
    %298 = arith.mulf %294, %294 : vector<6x8xf32>
    %cst_401 = arith.constant dense<0.000000e+00> : vector<8xf32>
    %299 = vector.multi_reduction <add>, %298, %cst_401 [0] : vector<6x8xf32> to vector<8xf32>
    %300 = vector.shape_cast %299 : vector<8xf32> to vector<1x8xf32>
    %301 = arith.addf %289, %300 : vector<1x8xf32>
    %c0_402 = arith.constant 0 : index
    %c4_403 = arith.constant 4 : index
    %c0_404 = arith.constant 0 : index
    %c0_405 = arith.constant 0 : index
    %302 = vector.load %arg14[%c0_402, %c4_403, %c0_404, %c0_405] : memref<2x6x6x100xf32, #tpu.memory_space<vmem>>, vector<1x1x6x100xf32>
    %303 = vector.shape_cast %302 : vector<1x1x6x100xf32> to vector<6x100xf32>
    %cst_406 = arith.constant dense<0.000000e+00> : vector<6x8xf32>
    %304 = tpu.matmul %303, %250, %cst_406 {dimension_numbers = #tpu.dot_dimension_numbers<[1], [0], [0], [1], [0, 0, 1, 1], [], []>} : vector<6x100xf32>, vector<100x8xf32>, vector<6x8xf32> -> vector<6x8xf32>
    %305 = vector.broadcast %251 : vector<1x8xf32> to vector<6x8xf32>
    %306 = arith.addf %304, %305 : vector<6x8xf32>
    %cst_407 = arith.constant dense<0.000000e+00> : vector<8xf32>
    %307 = vector.multi_reduction <add>, %306, %cst_407 [0] : vector<6x8xf32> to vector<8xf32>
    %308 = vector.shape_cast %307 : vector<8xf32> to vector<1x8xf32>
    %309 = arith.addf %297, %308 : vector<1x8xf32>
    %310 = arith.mulf %306, %306 : vector<6x8xf32>
    %cst_408 = arith.constant dense<0.000000e+00> : vector<8xf32>
    %311 = vector.multi_reduction <add>, %310, %cst_408 [0] : vector<6x8xf32> to vector<8xf32>
    %312 = vector.shape_cast %311 : vector<8xf32> to vector<1x8xf32>
    %313 = arith.addf %301, %312 : vector<1x8xf32>
    %c0_409 = arith.constant 0 : index
    %c5_410 = arith.constant 5 : index
    %c0_411 = arith.constant 0 : index
    %c0_412 = arith.constant 0 : index
    %314 = vector.load %arg14[%c0_409, %c5_410, %c0_411, %c0_412] : memref<2x6x6x100xf32, #tpu.memory_space<vmem>>, vector<1x1x6x100xf32>
    %315 = vector.shape_cast %314 : vector<1x1x6x100xf32> to vector<6x100xf32>
    %cst_413 = arith.constant dense<0.000000e+00> : vector<6x8xf32>
    %316 = tpu.matmul %315, %250, %cst_413 {dimension_numbers = #tpu.dot_dimension_numbers<[1], [0], [0], [1], [0, 0, 1, 1], [], []>} : vector<6x100xf32>, vector<100x8xf32>, vector<6x8xf32> -> vector<6x8xf32>
    %317 = vector.broadcast %251 : vector<1x8xf32> to vector<6x8xf32>
    %318 = arith.addf %316, %317 : vector<6x8xf32>
    %cst_414 = arith.constant dense<0.000000e+00> : vector<8xf32>
    %319 = vector.multi_reduction <add>, %318, %cst_414 [0] : vector<6x8xf32> to vector<8xf32>
    %320 = vector.shape_cast %319 : vector<8xf32> to vector<1x8xf32>
    %321 = arith.addf %309, %320 : vector<1x8xf32>
    %322 = arith.mulf %318, %318 : vector<6x8xf32>
    %cst_415 = arith.constant dense<0.000000e+00> : vector<8xf32>
    %323 = vector.multi_reduction <add>, %322, %cst_415 [0] : vector<6x8xf32> to vector<8xf32>
    %324 = vector.shape_cast %323 : vector<8xf32> to vector<1x8xf32>
    %325 = arith.addf %313, %324 : vector<1x8xf32>
    %c1_416 = arith.constant 1 : index
    %c0_417 = arith.constant 0 : index
    %c0_418 = arith.constant 0 : index
    %c0_419 = arith.constant 0 : index
    %326 = vector.load %arg14[%c1_416, %c0_417, %c0_418, %c0_419] : memref<2x6x6x100xf32, #tpu.memory_space<vmem>>, vector<1x1x6x100xf32>
    %327 = vector.shape_cast %326 : vector<1x1x6x100xf32> to vector<6x100xf32>
    %cst_420 = arith.constant dense<0.000000e+00> : vector<6x8xf32>
    %328 = tpu.matmul %327, %250, %cst_420 {dimension_numbers = #tpu.dot_dimension_numbers<[1], [0], [0], [1], [0, 0, 1, 1], [], []>} : vector<6x100xf32>, vector<100x8xf32>, vector<6x8xf32> -> vector<6x8xf32>
    %329 = vector.broadcast %251 : vector<1x8xf32> to vector<6x8xf32>
    %330 = arith.addf %328, %329 : vector<6x8xf32>
    %cst_421 = arith.constant dense<0.000000e+00> : vector<8xf32>
    %331 = vector.multi_reduction <add>, %330, %cst_421 [0] : vector<6x8xf32> to vector<8xf32>
    %332 = vector.shape_cast %331 : vector<8xf32> to vector<1x8xf32>
    %333 = arith.addf %321, %332 : vector<1x8xf32>
    %334 = arith.mulf %330, %330 : vector<6x8xf32>
    %cst_422 = arith.constant dense<0.000000e+00> : vector<8xf32>
    %335 = vector.multi_reduction <add>, %334, %cst_422 [0] : vector<6x8xf32> to vector<8xf32>
    %336 = vector.shape_cast %335 : vector<8xf32> to vector<1x8xf32>
    %337 = arith.addf %325, %336 : vector<1x8xf32>
    %c1_423 = arith.constant 1 : index
    %c1_424 = arith.constant 1 : index
    %c0_425 = arith.constant 0 : index
    %c0_426 = arith.constant 0 : index
    %338 = vector.load %arg14[%c1_423, %c1_424, %c0_425, %c0_426] : memref<2x6x6x100xf32, #tpu.memory_space<vmem>>, vector<1x1x6x100xf32>
    %339 = vector.shape_cast %338 : vector<1x1x6x100xf32> to vector<6x100xf32>
    %cst_427 = arith.constant dense<0.000000e+00> : vector<6x8xf32>
    %340 = tpu.matmul %339, %250, %cst_427 {dimension_numbers = #tpu.dot_dimension_numbers<[1], [0], [0], [1], [0, 0, 1, 1], [], []>} : vector<6x100xf32>, vector<100x8xf32>, vector<6x8xf32> -> vector<6x8xf32>
    %341 = vector.broadcast %251 : vector<1x8xf32> to vector<6x8xf32>
    %342 = arith.addf %340, %341 : vector<6x8xf32>
    %cst_428 = arith.constant dense<0.000000e+00> : vector<8xf32>
    %343 = vector.multi_reduction <add>, %342, %cst_428 [0] : vector<6x8xf32> to vector<8xf32>
    %344 = vector.shape_cast %343 : vector<8xf32> to vector<1x8xf32>
    %345 = arith.addf %333, %344 : vector<1x8xf32>
    %346 = arith.mulf %342, %342 : vector<6x8xf32>
    %cst_429 = arith.constant dense<0.000000e+00> : vector<8xf32>
    %347 = vector.multi_reduction <add>, %346, %cst_429 [0] : vector<6x8xf32> to vector<8xf32>
    %348 = vector.shape_cast %347 : vector<8xf32> to vector<1x8xf32>
    %349 = arith.addf %337, %348 : vector<1x8xf32>
    %c1_430 = arith.constant 1 : index
    %c2_431 = arith.constant 2 : index
    %c0_432 = arith.constant 0 : index
    %c0_433 = arith.constant 0 : index
    %350 = vector.load %arg14[%c1_430, %c2_431, %c0_432, %c0_433] : memref<2x6x6x100xf32, #tpu.memory_space<vmem>>, vector<1x1x6x100xf32>
    %351 = vector.shape_cast %350 : vector<1x1x6x100xf32> to vector<6x100xf32>
    %cst_434 = arith.constant dense<0.000000e+00> : vector<6x8xf32>
    %352 = tpu.matmul %351, %250, %cst_434 {dimension_numbers = #tpu.dot_dimension_numbers<[1], [0], [0], [1], [0, 0, 1, 1], [], []>} : vector<6x100xf32>, vector<100x8xf32>, vector<6x8xf32> -> vector<6x8xf32>
    %353 = vector.broadcast %251 : vector<1x8xf32> to vector<6x8xf32>
    %354 = arith.addf %352, %353 : vector<6x8xf32>
    %cst_435 = arith.constant dense<0.000000e+00> : vector<8xf32>
    %355 = vector.multi_reduction <add>, %354, %cst_435 [0] : vector<6x8xf32> to vector<8xf32>
    %356 = vector.shape_cast %355 : vector<8xf32> to vector<1x8xf32>
    %357 = arith.addf %345, %356 : vector<1x8xf32>
    %358 = arith.mulf %354, %354 : vector<6x8xf32>
    %cst_436 = arith.constant dense<0.000000e+00> : vector<8xf32>
    %359 = vector.multi_reduction <add>, %358, %cst_436 [0] : vector<6x8xf32> to vector<8xf32>
    %360 = vector.shape_cast %359 : vector<8xf32> to vector<1x8xf32>
    %361 = arith.addf %349, %360 : vector<1x8xf32>
    %c1_437 = arith.constant 1 : index
    %c3_438 = arith.constant 3 : index
    %c0_439 = arith.constant 0 : index
    %c0_440 = arith.constant 0 : index
    %362 = vector.load %arg14[%c1_437, %c3_438, %c0_439, %c0_440] : memref<2x6x6x100xf32, #tpu.memory_space<vmem>>, vector<1x1x6x100xf32>
    %363 = vector.shape_cast %362 : vector<1x1x6x100xf32> to vector<6x100xf32>
    %cst_441 = arith.constant dense<0.000000e+00> : vector<6x8xf32>
    %364 = tpu.matmul %363, %250, %cst_441 {dimension_numbers = #tpu.dot_dimension_numbers<[1], [0], [0], [1], [0, 0, 1, 1], [], []>} : vector<6x100xf32>, vector<100x8xf32>, vector<6x8xf32> -> vector<6x8xf32>
    %365 = vector.broadcast %251 : vector<1x8xf32> to vector<6x8xf32>
    %366 = arith.addf %364, %365 : vector<6x8xf32>
    %cst_442 = arith.constant dense<0.000000e+00> : vector<8xf32>
    %367 = vector.multi_reduction <add>, %366, %cst_442 [0] : vector<6x8xf32> to vector<8xf32>
    %368 = vector.shape_cast %367 : vector<8xf32> to vector<1x8xf32>
    %369 = arith.addf %357, %368 : vector<1x8xf32>
    %370 = arith.mulf %366, %366 : vector<6x8xf32>
    %cst_443 = arith.constant dense<0.000000e+00> : vector<8xf32>
    %371 = vector.multi_reduction <add>, %370, %cst_443 [0] : vector<6x8xf32> to vector<8xf32>
    %372 = vector.shape_cast %371 : vector<8xf32> to vector<1x8xf32>
    %373 = arith.addf %361, %372 : vector<1x8xf32>
    %c1_444 = arith.constant 1 : index
    %c4_445 = arith.constant 4 : index
    %c0_446 = arith.constant 0 : index
    %c0_447 = arith.constant 0 : index
    %374 = vector.load %arg14[%c1_444, %c4_445, %c0_446, %c0_447] : memref<2x6x6x100xf32, #tpu.memory_space<vmem>>, vector<1x1x6x100xf32>
    %375 = vector.shape_cast %374 : vector<1x1x6x100xf32> to vector<6x100xf32>
    %cst_448 = arith.constant dense<0.000000e+00> : vector<6x8xf32>
    %376 = tpu.matmul %375, %250, %cst_448 {dimension_numbers = #tpu.dot_dimension_numbers<[1], [0], [0], [1], [0, 0, 1, 1], [], []>} : vector<6x100xf32>, vector<100x8xf32>, vector<6x8xf32> -> vector<6x8xf32>
    %377 = vector.broadcast %251 : vector<1x8xf32> to vector<6x8xf32>
    %378 = arith.addf %376, %377 : vector<6x8xf32>
    %cst_449 = arith.constant dense<0.000000e+00> : vector<8xf32>
    %379 = vector.multi_reduction <add>, %378, %cst_449 [0] : vector<6x8xf32> to vector<8xf32>
    %380 = vector.shape_cast %379 : vector<8xf32> to vector<1x8xf32>
    %381 = arith.addf %369, %380 : vector<1x8xf32>
    %382 = arith.mulf %378, %378 : vector<6x8xf32>
    %cst_450 = arith.constant dense<0.000000e+00> : vector<8xf32>
    %383 = vector.multi_reduction <add>, %382, %cst_450 [0] : vector<6x8xf32> to vector<8xf32>
    %384 = vector.shape_cast %383 : vector<8xf32> to vector<1x8xf32>
    %385 = arith.addf %373, %384 : vector<1x8xf32>
    %c1_451 = arith.constant 1 : index
    %c5_452 = arith.constant 5 : index
    %c0_453 = arith.constant 0 : index
    %c0_454 = arith.constant 0 : index
    %386 = vector.load %arg14[%c1_451, %c5_452, %c0_453, %c0_454] : memref<2x6x6x100xf32, #tpu.memory_space<vmem>>, vector<1x1x6x100xf32>
    %387 = vector.shape_cast %386 : vector<1x1x6x100xf32> to vector<6x100xf32>
    %cst_455 = arith.constant dense<0.000000e+00> : vector<6x8xf32>
    %388 = tpu.matmul %387, %250, %cst_455 {dimension_numbers = #tpu.dot_dimension_numbers<[1], [0], [0], [1], [0, 0, 1, 1], [], []>} : vector<6x100xf32>, vector<100x8xf32>, vector<6x8xf32> -> vector<6x8xf32>
    %389 = vector.broadcast %251 : vector<1x8xf32> to vector<6x8xf32>
    %390 = arith.addf %388, %389 : vector<6x8xf32>
    %cst_456 = arith.constant dense<0.000000e+00> : vector<8xf32>
    %391 = vector.multi_reduction <add>, %390, %cst_456 [0] : vector<6x8xf32> to vector<8xf32>
    %392 = vector.shape_cast %391 : vector<8xf32> to vector<1x8xf32>
    %393 = arith.addf %381, %392 : vector<1x8xf32>
    %394 = arith.mulf %390, %390 : vector<6x8xf32>
    %cst_457 = arith.constant dense<0.000000e+00> : vector<8xf32>
    %395 = vector.multi_reduction <add>, %394, %cst_457 [0] : vector<6x8xf32> to vector<8xf32>
    %396 = vector.shape_cast %395 : vector<8xf32> to vector<1x8xf32>
    %397 = arith.addf %385, %396 : vector<1x8xf32>
    %cst_458 = arith.constant 0.013888889 : f32
    %398 = vector.broadcast %cst_458 : f32 to vector<1x8xf32>
    %399 = arith.mulf %393, %398 : vector<1x8xf32>
    %cst_459 = arith.constant 0.013888889 : f32
    %400 = vector.broadcast %cst_459 : f32 to vector<1x8xf32>
    %401 = arith.mulf %397, %400 : vector<1x8xf32>
    %402 = arith.mulf %399, %399 : vector<1x8xf32>
    %403 = arith.subf %401, %402 : vector<1x8xf32>
    %cst_460 = arith.constant 0.000000e+00 : f32
    %404 = vector.broadcast %cst_460 : f32 to vector<1x8xf32>
    %405 = arith.maximumf %403, %404 : vector<1x8xf32>
    %c0_461 = arith.constant 0 : index
    %c0_462 = arith.constant 0 : index
    %406 = vector.load %arg3[%c0_461, %c0_462] : memref<1x8xf32, #tpu.memory_space<vmem>>, vector<1x8xf32>
    %cst_463 = arith.constant 9.99999974E-6 : f32
    %407 = vector.broadcast %cst_463 : f32 to vector<1x8xf32>
    %408 = arith.addf %405, %407 : vector<1x8xf32>
    %409 = math.rsqrt %408 : vector<1x8xf32>
    %410 = arith.mulf %406, %409 : vector<1x8xf32>
    %c0_464 = arith.constant 0 : index
    %c0_465 = arith.constant 0 : index
    %411 = vector.load %arg4[%c0_464, %c0_465] : memref<1x8xf32, #tpu.memory_space<vmem>>, vector<1x8xf32>
    %412 = arith.mulf %399, %410 : vector<1x8xf32>
    %413 = arith.subf %411, %412 : vector<1x8xf32>
    %414 = vector.broadcast %410 : vector<1x8xf32> to vector<6x8xf32>
    %415 = arith.mulf %258, %414 : vector<6x8xf32>
    %416 = vector.broadcast %413 : vector<1x8xf32> to vector<6x8xf32>
    %417 = arith.addf %415, %416 : vector<6x8xf32>
    %cst_466 = arith.constant 0.000000e+00 : f32
    %418 = vector.broadcast %cst_466 : f32 to vector<6x8xf32>
    %419 = arith.maximumf %417, %418 : vector<6x8xf32>
    %420 = vector.extract_strided_slice %419 {offsets = [0, 0], sizes = [1, 8], strides = [1, 1]} : vector<6x8xf32> to vector<1x8xf32>
    %c0_467 = arith.constant 0 : index
    %c0_468 = arith.constant 0 : index
    %421 = vector.load %arg15[%c0_467, %c0_468] : memref<2x200xf32, #tpu.memory_space<vmem>>, vector<1x8xf32>
    tpu.vector_store %arg15[%c0_467, %c0_468], %420 {strides = array<i32>} : memref<2x200xf32, #tpu.memory_space<vmem>>, vector<1x8xf32>,
    %422 = vector.extract_strided_slice %419 {offsets = [1, 0], sizes = [1, 8], strides = [1, 1]} : vector<6x8xf32> to vector<1x8xf32>
    %c0_469 = arith.constant 0 : index
    %c8_470 = arith.constant 8 : index
    %423 = vector.load %arg15[%c0_469, %c8_470] : memref<2x200xf32, #tpu.memory_space<vmem>>, vector<1x8xf32>
    tpu.vector_store %arg15[%c0_469, %c8_470], %422 {strides = array<i32>} : memref<2x200xf32, #tpu.memory_space<vmem>>, vector<1x8xf32>,
    %424 = vector.extract_strided_slice %419 {offsets = [2, 0], sizes = [1, 8], strides = [1, 1]} : vector<6x8xf32> to vector<1x8xf32>
    %c0_471 = arith.constant 0 : index
    %c16_472 = arith.constant 16 : index
    %425 = vector.load %arg15[%c0_471, %c16_472] : memref<2x200xf32, #tpu.memory_space<vmem>>, vector<1x8xf32>
    tpu.vector_store %arg15[%c0_471, %c16_472], %424 {strides = array<i32>} : memref<2x200xf32, #tpu.memory_space<vmem>>, vector<1x8xf32>,
    %426 = vector.extract_strided_slice %419 {offsets = [3, 0], sizes = [1, 8], strides = [1, 1]} : vector<6x8xf32> to vector<1x8xf32>
    %c0_473 = arith.constant 0 : index
    %c24_474 = arith.constant 24 : index
    %427 = vector.load %arg15[%c0_473, %c24_474] : memref<2x200xf32, #tpu.memory_space<vmem>>, vector<1x8xf32>
    tpu.vector_store %arg15[%c0_473, %c24_474], %426 {strides = array<i32>} : memref<2x200xf32, #tpu.memory_space<vmem>>, vector<1x8xf32>,
    %428 = vector.extract_strided_slice %419 {offsets = [4, 0], sizes = [1, 8], strides = [1, 1]} : vector<6x8xf32> to vector<1x8xf32>
    %c0_475 = arith.constant 0 : index
    %c32_476 = arith.constant 32 : index
    %429 = vector.load %arg15[%c0_475, %c32_476] : memref<2x200xf32, #tpu.memory_space<vmem>>, vector<1x8xf32>
    tpu.vector_store %arg15[%c0_475, %c32_476], %428 {strides = array<i32>} : memref<2x200xf32, #tpu.memory_space<vmem>>, vector<1x8xf32>,
    %430 = vector.broadcast %410 : vector<1x8xf32> to vector<6x8xf32>
    %431 = arith.mulf %270, %430 : vector<6x8xf32>
    %432 = vector.broadcast %413 : vector<1x8xf32> to vector<6x8xf32>
    %433 = arith.addf %431, %432 : vector<6x8xf32>
    %cst_477 = arith.constant 0.000000e+00 : f32
    %434 = vector.broadcast %cst_477 : f32 to vector<6x8xf32>
    %435 = arith.maximumf %433, %434 : vector<6x8xf32>
    %436 = vector.extract_strided_slice %435 {offsets = [0, 0], sizes = [1, 8], strides = [1, 1]} : vector<6x8xf32> to vector<1x8xf32>
    %c0_478 = arith.constant 0 : index
    %c40_479 = arith.constant 40 : index
    %437 = vector.load %arg15[%c0_478, %c40_479] : memref<2x200xf32, #tpu.memory_space<vmem>>, vector<1x8xf32>
    tpu.vector_store %arg15[%c0_478, %c40_479], %436 {strides = array<i32>} : memref<2x200xf32, #tpu.memory_space<vmem>>, vector<1x8xf32>,
    %438 = vector.extract_strided_slice %435 {offsets = [1, 0], sizes = [1, 8], strides = [1, 1]} : vector<6x8xf32> to vector<1x8xf32>
    %c0_480 = arith.constant 0 : index
    %c48_481 = arith.constant 48 : index
    %439 = vector.load %arg15[%c0_480, %c48_481] : memref<2x200xf32, #tpu.memory_space<vmem>>, vector<1x8xf32>
    tpu.vector_store %arg15[%c0_480, %c48_481], %438 {strides = array<i32>} : memref<2x200xf32, #tpu.memory_space<vmem>>, vector<1x8xf32>,
    %440 = vector.extract_strided_slice %435 {offsets = [2, 0], sizes = [1, 8], strides = [1, 1]} : vector<6x8xf32> to vector<1x8xf32>
    %c0_482 = arith.constant 0 : index
    %c56_483 = arith.constant 56 : index
    %441 = vector.load %arg15[%c0_482, %c56_483] : memref<2x200xf32, #tpu.memory_space<vmem>>, vector<1x8xf32>
    tpu.vector_store %arg15[%c0_482, %c56_483], %440 {strides = array<i32>} : memref<2x200xf32, #tpu.memory_space<vmem>>, vector<1x8xf32>,
    %442 = vector.extract_strided_slice %435 {offsets = [3, 0], sizes = [1, 8], strides = [1, 1]} : vector<6x8xf32> to vector<1x8xf32>
    %c0_484 = arith.constant 0 : index
    %c64_485 = arith.constant 64 : index
    %443 = vector.load %arg15[%c0_484, %c64_485] : memref<2x200xf32, #tpu.memory_space<vmem>>, vector<1x8xf32>
    tpu.vector_store %arg15[%c0_484, %c64_485], %442 {strides = array<i32>} : memref<2x200xf32, #tpu.memory_space<vmem>>, vector<1x8xf32>,
    %444 = vector.extract_strided_slice %435 {offsets = [4, 0], sizes = [1, 8], strides = [1, 1]} : vector<6x8xf32> to vector<1x8xf32>
    %c0_486 = arith.constant 0 : index
    %c72_487 = arith.constant 72 : index
    %445 = vector.load %arg15[%c0_486, %c72_487] : memref<2x200xf32, #tpu.memory_space<vmem>>, vector<1x8xf32>
    tpu.vector_store %arg15[%c0_486, %c72_487], %444 {strides = array<i32>} : memref<2x200xf32, #tpu.memory_space<vmem>>, vector<1x8xf32>,
    %446 = vector.broadcast %410 : vector<1x8xf32> to vector<6x8xf32>
    %447 = arith.mulf %282, %446 : vector<6x8xf32>
    %448 = vector.broadcast %413 : vector<1x8xf32> to vector<6x8xf32>
    %449 = arith.addf %447, %448 : vector<6x8xf32>
    %cst_488 = arith.constant 0.000000e+00 : f32
    %450 = vector.broadcast %cst_488 : f32 to vector<6x8xf32>
    %451 = arith.maximumf %449, %450 : vector<6x8xf32>
    %452 = vector.extract_strided_slice %451 {offsets = [0, 0], sizes = [1, 8], strides = [1, 1]} : vector<6x8xf32> to vector<1x8xf32>
    %c0_489 = arith.constant 0 : index
    %c80_490 = arith.constant 80 : index
    %453 = vector.load %arg15[%c0_489, %c80_490] : memref<2x200xf32, #tpu.memory_space<vmem>>, vector<1x8xf32>
    tpu.vector_store %arg15[%c0_489, %c80_490], %452 {strides = array<i32>} : memref<2x200xf32, #tpu.memory_space<vmem>>, vector<1x8xf32>,
    %454 = vector.extract_strided_slice %451 {offsets = [1, 0], sizes = [1, 8], strides = [1, 1]} : vector<6x8xf32> to vector<1x8xf32>
    %c0_491 = arith.constant 0 : index
    %c88_492 = arith.constant 88 : index
    %455 = vector.load %arg15[%c0_491, %c88_492] : memref<2x200xf32, #tpu.memory_space<vmem>>, vector<1x8xf32>
    tpu.vector_store %arg15[%c0_491, %c88_492], %454 {strides = array<i32>} : memref<2x200xf32, #tpu.memory_space<vmem>>, vector<1x8xf32>,
    %456 = vector.extract_strided_slice %451 {offsets = [2, 0], sizes = [1, 8], strides = [1, 1]} : vector<6x8xf32> to vector<1x8xf32>
    %c0_493 = arith.constant 0 : index
    %c96_494 = arith.constant 96 : index
    %457 = vector.load %arg15[%c0_493, %c96_494] : memref<2x200xf32, #tpu.memory_space<vmem>>, vector<1x8xf32>
    tpu.vector_store %arg15[%c0_493, %c96_494], %456 {strides = array<i32>} : memref<2x200xf32, #tpu.memory_space<vmem>>, vector<1x8xf32>,
    %458 = vector.extract_strided_slice %451 {offsets = [3, 0], sizes = [1, 8], strides = [1, 1]} : vector<6x8xf32> to vector<1x8xf32>
    %c0_495 = arith.constant 0 : index
    %c104 = arith.constant 104 : index
    %459 = vector.load %arg15[%c0_495, %c104] : memref<2x200xf32, #tpu.memory_space<vmem>>, vector<1x8xf32>
    tpu.vector_store %arg15[%c0_495, %c104], %458 {strides = array<i32>} : memref<2x200xf32, #tpu.memory_space<vmem>>, vector<1x8xf32>,
    %460 = vector.extract_strided_slice %451 {offsets = [4, 0], sizes = [1, 8], strides = [1, 1]} : vector<6x8xf32> to vector<1x8xf32>
    %c0_496 = arith.constant 0 : index
    %c112 = arith.constant 112 : index
    %461 = vector.load %arg15[%c0_496, %c112] : memref<2x200xf32, #tpu.memory_space<vmem>>, vector<1x8xf32>
    tpu.vector_store %arg15[%c0_496, %c112], %460 {strides = array<i32>} : memref<2x200xf32, #tpu.memory_space<vmem>>, vector<1x8xf32>,
    %462 = vector.broadcast %410 : vector<1x8xf32> to vector<6x8xf32>
    %463 = arith.mulf %294, %462 : vector<6x8xf32>
    %464 = vector.broadcast %413 : vector<1x8xf32> to vector<6x8xf32>
    %465 = arith.addf %463, %464 : vector<6x8xf32>
    %cst_497 = arith.constant 0.000000e+00 : f32
    %466 = vector.broadcast %cst_497 : f32 to vector<6x8xf32>
    %467 = arith.maximumf %465, %466 : vector<6x8xf32>
    %468 = vector.extract_strided_slice %467 {offsets = [0, 0], sizes = [1, 8], strides = [1, 1]} : vector<6x8xf32> to vector<1x8xf32>
    %c0_498 = arith.constant 0 : index
    %c120 = arith.constant 120 : index
    %469 = vector.load %arg15[%c0_498, %c120] : memref<2x200xf32, #tpu.memory_space<vmem>>, vector<1x8xf32>
    tpu.vector_store %arg15[%c0_498, %c120], %468 {strides = array<i32>} : memref<2x200xf32, #tpu.memory_space<vmem>>, vector<1x8xf32>,
    %470 = vector.extract_strided_slice %467 {offsets = [1, 0], sizes = [1, 8], strides = [1, 1]} : vector<6x8xf32> to vector<1x8xf32>
    %c0_499 = arith.constant 0 : index
    %c128 = arith.constant 128 : index
    %471 = vector.load %arg15[%c0_499, %c128] : memref<2x200xf32, #tpu.memory_space<vmem>>, vector<1x8xf32>
    tpu.vector_store %arg15[%c0_499, %c128], %470 {strides = array<i32>} : memref<2x200xf32, #tpu.memory_space<vmem>>, vector<1x8xf32>,
    %472 = vector.extract_strided_slice %467 {offsets = [2, 0], sizes = [1, 8], strides = [1, 1]} : vector<6x8xf32> to vector<1x8xf32>
    %c0_500 = arith.constant 0 : index
    %c136 = arith.constant 136 : index
    %473 = vector.load %arg15[%c0_500, %c136] : memref<2x200xf32, #tpu.memory_space<vmem>>, vector<1x8xf32>
    tpu.vector_store %arg15[%c0_500, %c136], %472 {strides = array<i32>} : memref<2x200xf32, #tpu.memory_space<vmem>>, vector<1x8xf32>,
    %474 = vector.extract_strided_slice %467 {offsets = [3, 0], sizes = [1, 8], strides = [1, 1]} : vector<6x8xf32> to vector<1x8xf32>
    %c0_501 = arith.constant 0 : index
    %c144 = arith.constant 144 : index
    %475 = vector.load %arg15[%c0_501, %c144] : memref<2x200xf32, #tpu.memory_space<vmem>>, vector<1x8xf32>
    tpu.vector_store %arg15[%c0_501, %c144], %474 {strides = array<i32>} : memref<2x200xf32, #tpu.memory_space<vmem>>, vector<1x8xf32>,
    %476 = vector.extract_strided_slice %467 {offsets = [4, 0], sizes = [1, 8], strides = [1, 1]} : vector<6x8xf32> to vector<1x8xf32>
    %c0_502 = arith.constant 0 : index
    %c152 = arith.constant 152 : index
    %477 = vector.load %arg15[%c0_502, %c152] : memref<2x200xf32, #tpu.memory_space<vmem>>, vector<1x8xf32>
    tpu.vector_store %arg15[%c0_502, %c152], %476 {strides = array<i32>} : memref<2x200xf32, #tpu.memory_space<vmem>>, vector<1x8xf32>,
    %478 = vector.broadcast %410 : vector<1x8xf32> to vector<6x8xf32>
    %479 = arith.mulf %306, %478 : vector<6x8xf32>
    %480 = vector.broadcast %413 : vector<1x8xf32> to vector<6x8xf32>
    %481 = arith.addf %479, %480 : vector<6x8xf32>
    %cst_503 = arith.constant 0.000000e+00 : f32
    %482 = vector.broadcast %cst_503 : f32 to vector<6x8xf32>
    %483 = arith.maximumf %481, %482 : vector<6x8xf32>
    %484 = vector.extract_strided_slice %483 {offsets = [0, 0], sizes = [1, 8], strides = [1, 1]} : vector<6x8xf32> to vector<1x8xf32>
    %c0_504 = arith.constant 0 : index
    %c160 = arith.constant 160 : index
    %485 = vector.load %arg15[%c0_504, %c160] : memref<2x200xf32, #tpu.memory_space<vmem>>, vector<1x8xf32>
    tpu.vector_store %arg15[%c0_504, %c160], %484 {strides = array<i32>} : memref<2x200xf32, #tpu.memory_space<vmem>>, vector<1x8xf32>,
    %486 = vector.extract_strided_slice %483 {offsets = [1, 0], sizes = [1, 8], strides = [1, 1]} : vector<6x8xf32> to vector<1x8xf32>
    %c0_505 = arith.constant 0 : index
    %c168 = arith.constant 168 : index
    %487 = vector.load %arg15[%c0_505, %c168] : memref<2x200xf32, #tpu.memory_space<vmem>>, vector<1x8xf32>
    tpu.vector_store %arg15[%c0_505, %c168], %486 {strides = array<i32>} : memref<2x200xf32, #tpu.memory_space<vmem>>, vector<1x8xf32>,
    %488 = vector.extract_strided_slice %483 {offsets = [2, 0], sizes = [1, 8], strides = [1, 1]} : vector<6x8xf32> to vector<1x8xf32>
    %c0_506 = arith.constant 0 : index
    %c176 = arith.constant 176 : index
    %489 = vector.load %arg15[%c0_506, %c176] : memref<2x200xf32, #tpu.memory_space<vmem>>, vector<1x8xf32>
    tpu.vector_store %arg15[%c0_506, %c176], %488 {strides = array<i32>} : memref<2x200xf32, #tpu.memory_space<vmem>>, vector<1x8xf32>,
    %490 = vector.extract_strided_slice %483 {offsets = [3, 0], sizes = [1, 8], strides = [1, 1]} : vector<6x8xf32> to vector<1x8xf32>
    %c0_507 = arith.constant 0 : index
    %c184 = arith.constant 184 : index
    %491 = vector.load %arg15[%c0_507, %c184] : memref<2x200xf32, #tpu.memory_space<vmem>>, vector<1x8xf32>
    tpu.vector_store %arg15[%c0_507, %c184], %490 {strides = array<i32>} : memref<2x200xf32, #tpu.memory_space<vmem>>, vector<1x8xf32>,
    %492 = vector.extract_strided_slice %483 {offsets = [4, 0], sizes = [1, 8], strides = [1, 1]} : vector<6x8xf32> to vector<1x8xf32>
    %c0_508 = arith.constant 0 : index
    %c192 = arith.constant 192 : index
    %493 = vector.load %arg15[%c0_508, %c192] : memref<2x200xf32, #tpu.memory_space<vmem>>, vector<1x8xf32>
    tpu.vector_store %arg15[%c0_508, %c192], %492 {strides = array<i32>} : memref<2x200xf32, #tpu.memory_space<vmem>>, vector<1x8xf32>,
    %494 = vector.broadcast %410 : vector<1x8xf32> to vector<6x8xf32>
    %495 = arith.mulf %330, %494 : vector<6x8xf32>
    %496 = vector.broadcast %413 : vector<1x8xf32> to vector<6x8xf32>
    %497 = arith.addf %495, %496 : vector<6x8xf32>
    %cst_509 = arith.constant 0.000000e+00 : f32
    %498 = vector.broadcast %cst_509 : f32 to vector<6x8xf32>
    %499 = arith.maximumf %497, %498 : vector<6x8xf32>
    %500 = vector.extract_strided_slice %499 {offsets = [0, 0], sizes = [1, 8], strides = [1, 1]} : vector<6x8xf32> to vector<1x8xf32>
    %c1_510 = arith.constant 1 : index
    %c0_511 = arith.constant 0 : index
    %501 = vector.load %arg15[%c1_510, %c0_511] : memref<2x200xf32, #tpu.memory_space<vmem>>, vector<1x8xf32>
    tpu.vector_store %arg15[%c1_510, %c0_511], %500 {strides = array<i32>} : memref<2x200xf32, #tpu.memory_space<vmem>>, vector<1x8xf32>,
    %502 = vector.extract_strided_slice %499 {offsets = [1, 0], sizes = [1, 8], strides = [1, 1]} : vector<6x8xf32> to vector<1x8xf32>
    %c1_512 = arith.constant 1 : index
    %c8_513 = arith.constant 8 : index
    %503 = vector.load %arg15[%c1_512, %c8_513] : memref<2x200xf32, #tpu.memory_space<vmem>>, vector<1x8xf32>
    tpu.vector_store %arg15[%c1_512, %c8_513], %502 {strides = array<i32>} : memref<2x200xf32, #tpu.memory_space<vmem>>, vector<1x8xf32>,
    %504 = vector.extract_strided_slice %499 {offsets = [2, 0], sizes = [1, 8], strides = [1, 1]} : vector<6x8xf32> to vector<1x8xf32>
    %c1_514 = arith.constant 1 : index
    %c16_515 = arith.constant 16 : index
    %505 = vector.load %arg15[%c1_514, %c16_515] : memref<2x200xf32, #tpu.memory_space<vmem>>, vector<1x8xf32>
    tpu.vector_store %arg15[%c1_514, %c16_515], %504 {strides = array<i32>} : memref<2x200xf32, #tpu.memory_space<vmem>>, vector<1x8xf32>,
    %506 = vector.extract_strided_slice %499 {offsets = [3, 0], sizes = [1, 8], strides = [1, 1]} : vector<6x8xf32> to vector<1x8xf32>
    %c1_516 = arith.constant 1 : index
    %c24_517 = arith.constant 24 : index
    %507 = vector.load %arg15[%c1_516, %c24_517] : memref<2x200xf32, #tpu.memory_space<vmem>>, vector<1x8xf32>
    tpu.vector_store %arg15[%c1_516, %c24_517], %506 {strides = array<i32>} : memref<2x200xf32, #tpu.memory_space<vmem>>, vector<1x8xf32>,
    %508 = vector.extract_strided_slice %499 {offsets = [4, 0], sizes = [1, 8], strides = [1, 1]} : vector<6x8xf32> to vector<1x8xf32>
    %c1_518 = arith.constant 1 : index
    %c32_519 = arith.constant 32 : index
    %509 = vector.load %arg15[%c1_518, %c32_519] : memref<2x200xf32, #tpu.memory_space<vmem>>, vector<1x8xf32>
    tpu.vector_store %arg15[%c1_518, %c32_519], %508 {strides = array<i32>} : memref<2x200xf32, #tpu.memory_space<vmem>>, vector<1x8xf32>,
    %510 = vector.broadcast %410 : vector<1x8xf32> to vector<6x8xf32>
    %511 = arith.mulf %342, %510 : vector<6x8xf32>
    %512 = vector.broadcast %413 : vector<1x8xf32> to vector<6x8xf32>
    %513 = arith.addf %511, %512 : vector<6x8xf32>
    %cst_520 = arith.constant 0.000000e+00 : f32
    %514 = vector.broadcast %cst_520 : f32 to vector<6x8xf32>
    %515 = arith.maximumf %513, %514 : vector<6x8xf32>
    %516 = vector.extract_strided_slice %515 {offsets = [0, 0], sizes = [1, 8], strides = [1, 1]} : vector<6x8xf32> to vector<1x8xf32>
    %c1_521 = arith.constant 1 : index
    %c40_522 = arith.constant 40 : index
    %517 = vector.load %arg15[%c1_521, %c40_522] : memref<2x200xf32, #tpu.memory_space<vmem>>, vector<1x8xf32>
    tpu.vector_store %arg15[%c1_521, %c40_522], %516 {strides = array<i32>} : memref<2x200xf32, #tpu.memory_space<vmem>>, vector<1x8xf32>,
    %518 = vector.extract_strided_slice %515 {offsets = [1, 0], sizes = [1, 8], strides = [1, 1]} : vector<6x8xf32> to vector<1x8xf32>
    %c1_523 = arith.constant 1 : index
    %c48_524 = arith.constant 48 : index
    %519 = vector.load %arg15[%c1_523, %c48_524] : memref<2x200xf32, #tpu.memory_space<vmem>>, vector<1x8xf32>
    tpu.vector_store %arg15[%c1_523, %c48_524], %518 {strides = array<i32>} : memref<2x200xf32, #tpu.memory_space<vmem>>, vector<1x8xf32>,
    %520 = vector.extract_strided_slice %515 {offsets = [2, 0], sizes = [1, 8], strides = [1, 1]} : vector<6x8xf32> to vector<1x8xf32>
    %c1_525 = arith.constant 1 : index
    %c56_526 = arith.constant 56 : index
    %521 = vector.load %arg15[%c1_525, %c56_526] : memref<2x200xf32, #tpu.memory_space<vmem>>, vector<1x8xf32>
    tpu.vector_store %arg15[%c1_525, %c56_526], %520 {strides = array<i32>} : memref<2x200xf32, #tpu.memory_space<vmem>>, vector<1x8xf32>,
    %522 = vector.extract_strided_slice %515 {offsets = [3, 0], sizes = [1, 8], strides = [1, 1]} : vector<6x8xf32> to vector<1x8xf32>
    %c1_527 = arith.constant 1 : index
    %c64_528 = arith.constant 64 : index
    %523 = vector.load %arg15[%c1_527, %c64_528] : memref<2x200xf32, #tpu.memory_space<vmem>>, vector<1x8xf32>
    tpu.vector_store %arg15[%c1_527, %c64_528], %522 {strides = array<i32>} : memref<2x200xf32, #tpu.memory_space<vmem>>, vector<1x8xf32>,
    %524 = vector.extract_strided_slice %515 {offsets = [4, 0], sizes = [1, 8], strides = [1, 1]} : vector<6x8xf32> to vector<1x8xf32>
    %c1_529 = arith.constant 1 : index
    %c72_530 = arith.constant 72 : index
    %525 = vector.load %arg15[%c1_529, %c72_530] : memref<2x200xf32, #tpu.memory_space<vmem>>, vector<1x8xf32>
    tpu.vector_store %arg15[%c1_529, %c72_530], %524 {strides = array<i32>} : memref<2x200xf32, #tpu.memory_space<vmem>>, vector<1x8xf32>,
    %526 = vector.broadcast %410 : vector<1x8xf32> to vector<6x8xf32>
    %527 = arith.mulf %354, %526 : vector<6x8xf32>
    %528 = vector.broadcast %413 : vector<1x8xf32> to vector<6x8xf32>
    %529 = arith.addf %527, %528 : vector<6x8xf32>
    %cst_531 = arith.constant 0.000000e+00 : f32
    %530 = vector.broadcast %cst_531 : f32 to vector<6x8xf32>
    %531 = arith.maximumf %529, %530 : vector<6x8xf32>
    %532 = vector.extract_strided_slice %531 {offsets = [0, 0], sizes = [1, 8], strides = [1, 1]} : vector<6x8xf32> to vector<1x8xf32>
    %c1_532 = arith.constant 1 : index
    %c80_533 = arith.constant 80 : index
    %533 = vector.load %arg15[%c1_532, %c80_533] : memref<2x200xf32, #tpu.memory_space<vmem>>, vector<1x8xf32>
    tpu.vector_store %arg15[%c1_532, %c80_533], %532 {strides = array<i32>} : memref<2x200xf32, #tpu.memory_space<vmem>>, vector<1x8xf32>,
    %534 = vector.extract_strided_slice %531 {offsets = [1, 0], sizes = [1, 8], strides = [1, 1]} : vector<6x8xf32> to vector<1x8xf32>
    %c1_534 = arith.constant 1 : index
    %c88_535 = arith.constant 88 : index
    %535 = vector.load %arg15[%c1_534, %c88_535] : memref<2x200xf32, #tpu.memory_space<vmem>>, vector<1x8xf32>
    tpu.vector_store %arg15[%c1_534, %c88_535], %534 {strides = array<i32>} : memref<2x200xf32, #tpu.memory_space<vmem>>, vector<1x8xf32>,
    %536 = vector.extract_strided_slice %531 {offsets = [2, 0], sizes = [1, 8], strides = [1, 1]} : vector<6x8xf32> to vector<1x8xf32>
    %c1_536 = arith.constant 1 : index
    %c96_537 = arith.constant 96 : index
    %537 = vector.load %arg15[%c1_536, %c96_537] : memref<2x200xf32, #tpu.memory_space<vmem>>, vector<1x8xf32>
    tpu.vector_store %arg15[%c1_536, %c96_537], %536 {strides = array<i32>} : memref<2x200xf32, #tpu.memory_space<vmem>>, vector<1x8xf32>,
    %538 = vector.extract_strided_slice %531 {offsets = [3, 0], sizes = [1, 8], strides = [1, 1]} : vector<6x8xf32> to vector<1x8xf32>
    %c1_538 = arith.constant 1 : index
    %c104_539 = arith.constant 104 : index
    %539 = vector.load %arg15[%c1_538, %c104_539] : memref<2x200xf32, #tpu.memory_space<vmem>>, vector<1x8xf32>
    tpu.vector_store %arg15[%c1_538, %c104_539], %538 {strides = array<i32>} : memref<2x200xf32, #tpu.memory_space<vmem>>, vector<1x8xf32>,
    %540 = vector.extract_strided_slice %531 {offsets = [4, 0], sizes = [1, 8], strides = [1, 1]} : vector<6x8xf32> to vector<1x8xf32>
    %c1_540 = arith.constant 1 : index
    %c112_541 = arith.constant 112 : index
    %541 = vector.load %arg15[%c1_540, %c112_541] : memref<2x200xf32, #tpu.memory_space<vmem>>, vector<1x8xf32>
    tpu.vector_store %arg15[%c1_540, %c112_541], %540 {strides = array<i32>} : memref<2x200xf32, #tpu.memory_space<vmem>>, vector<1x8xf32>,
    %542 = vector.broadcast %410 : vector<1x8xf32> to vector<6x8xf32>
    %543 = arith.mulf %366, %542 : vector<6x8xf32>
    %544 = vector.broadcast %413 : vector<1x8xf32> to vector<6x8xf32>
    %545 = arith.addf %543, %544 : vector<6x8xf32>
    %cst_542 = arith.constant 0.000000e+00 : f32
    %546 = vector.broadcast %cst_542 : f32 to vector<6x8xf32>
    %547 = arith.maximumf %545, %546 : vector<6x8xf32>
    %548 = vector.extract_strided_slice %547 {offsets = [0, 0], sizes = [1, 8], strides = [1, 1]} : vector<6x8xf32> to vector<1x8xf32>
    %c1_543 = arith.constant 1 : index
    %c120_544 = arith.constant 120 : index
    %549 = vector.load %arg15[%c1_543, %c120_544] : memref<2x200xf32, #tpu.memory_space<vmem>>, vector<1x8xf32>
    tpu.vector_store %arg15[%c1_543, %c120_544], %548 {strides = array<i32>} : memref<2x200xf32, #tpu.memory_space<vmem>>, vector<1x8xf32>,
    %550 = vector.extract_strided_slice %547 {offsets = [1, 0], sizes = [1, 8], strides = [1, 1]} : vector<6x8xf32> to vector<1x8xf32>
    %c1_545 = arith.constant 1 : index
    %c128_546 = arith.constant 128 : index
    %551 = vector.load %arg15[%c1_545, %c128_546] : memref<2x200xf32, #tpu.memory_space<vmem>>, vector<1x8xf32>
    tpu.vector_store %arg15[%c1_545, %c128_546], %550 {strides = array<i32>} : memref<2x200xf32, #tpu.memory_space<vmem>>, vector<1x8xf32>,
    %552 = vector.extract_strided_slice %547 {offsets = [2, 0], sizes = [1, 8], strides = [1, 1]} : vector<6x8xf32> to vector<1x8xf32>
    %c1_547 = arith.constant 1 : index
    %c136_548 = arith.constant 136 : index
    %553 = vector.load %arg15[%c1_547, %c136_548] : memref<2x200xf32, #tpu.memory_space<vmem>>, vector<1x8xf32>
    tpu.vector_store %arg15[%c1_547, %c136_548], %552 {strides = array<i32>} : memref<2x200xf32, #tpu.memory_space<vmem>>, vector<1x8xf32>,
    %554 = vector.extract_strided_slice %547 {offsets = [3, 0], sizes = [1, 8], strides = [1, 1]} : vector<6x8xf32> to vector<1x8xf32>
    %c1_549 = arith.constant 1 : index
    %c144_550 = arith.constant 144 : index
    %555 = vector.load %arg15[%c1_549, %c144_550] : memref<2x200xf32, #tpu.memory_space<vmem>>, vector<1x8xf32>
    tpu.vector_store %arg15[%c1_549, %c144_550], %554 {strides = array<i32>} : memref<2x200xf32, #tpu.memory_space<vmem>>, vector<1x8xf32>,
    %556 = vector.extract_strided_slice %547 {offsets = [4, 0], sizes = [1, 8], strides = [1, 1]} : vector<6x8xf32> to vector<1x8xf32>
    %c1_551 = arith.constant 1 : index
    %c152_552 = arith.constant 152 : index
    %557 = vector.load %arg15[%c1_551, %c152_552] : memref<2x200xf32, #tpu.memory_space<vmem>>, vector<1x8xf32>
    tpu.vector_store %arg15[%c1_551, %c152_552], %556 {strides = array<i32>} : memref<2x200xf32, #tpu.memory_space<vmem>>, vector<1x8xf32>,
    %558 = vector.broadcast %410 : vector<1x8xf32> to vector<6x8xf32>
    %559 = arith.mulf %378, %558 : vector<6x8xf32>
    %560 = vector.broadcast %413 : vector<1x8xf32> to vector<6x8xf32>
    %561 = arith.addf %559, %560 : vector<6x8xf32>
    %cst_553 = arith.constant 0.000000e+00 : f32
    %562 = vector.broadcast %cst_553 : f32 to vector<6x8xf32>
    %563 = arith.maximumf %561, %562 : vector<6x8xf32>
    %564 = vector.extract_strided_slice %563 {offsets = [0, 0], sizes = [1, 8], strides = [1, 1]} : vector<6x8xf32> to vector<1x8xf32>
    %c1_554 = arith.constant 1 : index
    %c160_555 = arith.constant 160 : index
    %565 = vector.load %arg15[%c1_554, %c160_555] : memref<2x200xf32, #tpu.memory_space<vmem>>, vector<1x8xf32>
    tpu.vector_store %arg15[%c1_554, %c160_555], %564 {strides = array<i32>} : memref<2x200xf32, #tpu.memory_space<vmem>>, vector<1x8xf32>,
    %566 = vector.extract_strided_slice %563 {offsets = [1, 0], sizes = [1, 8], strides = [1, 1]} : vector<6x8xf32> to vector<1x8xf32>
    %c1_556 = arith.constant 1 : index
    %c168_557 = arith.constant 168 : index
    %567 = vector.load %arg15[%c1_556, %c168_557] : memref<2x200xf32, #tpu.memory_space<vmem>>, vector<1x8xf32>
    tpu.vector_store %arg15[%c1_556, %c168_557], %566 {strides = array<i32>} : memref<2x200xf32, #tpu.memory_space<vmem>>, vector<1x8xf32>,
    %568 = vector.extract_strided_slice %563 {offsets = [2, 0], sizes = [1, 8], strides = [1, 1]} : vector<6x8xf32> to vector<1x8xf32>
    %c1_558 = arith.constant 1 : index
    %c176_559 = arith.constant 176 : index
    %569 = vector.load %arg15[%c1_558, %c176_559] : memref<2x200xf32, #tpu.memory_space<vmem>>, vector<1x8xf32>
    tpu.vector_store %arg15[%c1_558, %c176_559], %568 {strides = array<i32>} : memref<2x200xf32, #tpu.memory_space<vmem>>, vector<1x8xf32>,
    %570 = vector.extract_strided_slice %563 {offsets = [3, 0], sizes = [1, 8], strides = [1, 1]} : vector<6x8xf32> to vector<1x8xf32>
    %c1_560 = arith.constant 1 : index
    %c184_561 = arith.constant 184 : index
    %571 = vector.load %arg15[%c1_560, %c184_561] : memref<2x200xf32, #tpu.memory_space<vmem>>, vector<1x8xf32>
    tpu.vector_store %arg15[%c1_560, %c184_561], %570 {strides = array<i32>} : memref<2x200xf32, #tpu.memory_space<vmem>>, vector<1x8xf32>,
    %572 = vector.extract_strided_slice %563 {offsets = [4, 0], sizes = [1, 8], strides = [1, 1]} : vector<6x8xf32> to vector<1x8xf32>
    %c1_562 = arith.constant 1 : index
    %c192_563 = arith.constant 192 : index
    %573 = vector.load %arg15[%c1_562, %c192_563] : memref<2x200xf32, #tpu.memory_space<vmem>>, vector<1x8xf32>
    tpu.vector_store %arg15[%c1_562, %c192_563], %572 {strides = array<i32>} : memref<2x200xf32, #tpu.memory_space<vmem>>, vector<1x8xf32>,
    %c0_564 = arith.constant 0 : index
    %c0_565 = arith.constant 0 : index
    %574 = vector.load %arg15[%c0_564, %c0_565] : memref<2x200xf32, #tpu.memory_space<vmem>>, vector<2x200xf32>
    %c0_566 = arith.constant 0 : index
    %c0_567 = arith.constant 0 : index
    %575 = vector.load %arg5[%c0_566, %c0_567] : memref<200x16xf32, #tpu.memory_space<vmem>>, vector<200x16xf32>
    %cst_568 = arith.constant dense<0.000000e+00> : vector<2x16xf32>
    %576 = tpu.matmul %574, %575, %cst_568 {dimension_numbers = #tpu.dot_dimension_numbers<[1], [0], [0], [1], [0, 0, 1, 1], [], []>} : vector<2x200xf32>, vector<200x16xf32>, vector<2x16xf32> -> vector<2x16xf32>
    %c0_569 = arith.constant 0 : index
    %c0_570 = arith.constant 0 : index
    %577 = vector.load %arg6[%c0_569, %c0_570] : memref<1x16xf32, #tpu.memory_space<vmem>>, vector<1x16xf32>
    %578 = vector.broadcast %577 : vector<1x16xf32> to vector<2x16xf32>
    %579 = arith.addf %576, %578 : vector<2x16xf32>
    %cst_571 = arith.constant dense<0.000000e+00> : vector<16xf32>
    %580 = vector.multi_reduction <add>, %579, %cst_571 [0] : vector<2x16xf32> to vector<16xf32>
    %581 = vector.shape_cast %580 : vector<16xf32> to vector<1x16xf32>
    %cst_572 = arith.constant 5.000000e-01 : f32
    %582 = vector.broadcast %cst_572 : f32 to vector<1x16xf32>
    %583 = arith.mulf %581, %582 : vector<1x16xf32>
    %584 = vector.broadcast %583 : vector<1x16xf32> to vector<2x16xf32>
    %585 = arith.subf %579, %584 : vector<2x16xf32>
    %586 = arith.mulf %585, %585 : vector<2x16xf32>
    %cst_573 = arith.constant dense<0.000000e+00> : vector<16xf32>
    %587 = vector.multi_reduction <add>, %586, %cst_573 [0] : vector<2x16xf32> to vector<16xf32>
    %588 = vector.shape_cast %587 : vector<16xf32> to vector<1x16xf32>
    %cst_574 = arith.constant 5.000000e-01 : f32
    %589 = vector.broadcast %cst_574 : f32 to vector<1x16xf32>
    %590 = arith.mulf %588, %589 : vector<1x16xf32>
    %c0_575 = arith.constant 0 : index
    %c0_576 = arith.constant 0 : index
    %591 = vector.load %arg7[%c0_575, %c0_576] : memref<1x16xf32, #tpu.memory_space<vmem>>, vector<1x16xf32>
    %cst_577 = arith.constant 9.99999974E-6 : f32
    %592 = vector.broadcast %cst_577 : f32 to vector<1x16xf32>
    %593 = arith.addf %590, %592 : vector<1x16xf32>
    %594 = math.rsqrt %593 : vector<1x16xf32>
    %595 = arith.mulf %591, %594 : vector<1x16xf32>
    %596 = vector.broadcast %583 : vector<1x16xf32> to vector<2x16xf32>
    %597 = arith.subf %579, %596 : vector<2x16xf32>
    %598 = vector.broadcast %595 : vector<1x16xf32> to vector<2x16xf32>
    %599 = arith.mulf %597, %598 : vector<2x16xf32>
    %c0_578 = arith.constant 0 : index
    %c0_579 = arith.constant 0 : index
    %600 = vector.load %arg8[%c0_578, %c0_579] : memref<1x16xf32, #tpu.memory_space<vmem>>, vector<1x16xf32>
    %601 = vector.broadcast %600 : vector<1x16xf32> to vector<2x16xf32>
    %602 = arith.addf %599, %601 : vector<2x16xf32>
    %cst_580 = arith.constant 0.000000e+00 : f32
    %603 = vector.broadcast %cst_580 : f32 to vector<2x16xf32>
    %604 = arith.maximumf %602, %603 : vector<2x16xf32>
    %c0_581 = arith.constant 0 : index
    %c0_582 = arith.constant 0 : index
    %605 = vector.load %arg9[%c0_581, %c0_582] : memref<16x32xf32, #tpu.memory_space<vmem>>, vector<16x32xf32>
    %cst_583 = arith.constant dense<0.000000e+00> : vector<2x32xf32>
    %606 = tpu.matmul %604, %605, %cst_583 {dimension_numbers = #tpu.dot_dimension_numbers<[1], [0], [0], [1], [0, 0, 1, 1], [], []>} : vector<2x16xf32>, vector<16x32xf32>, vector<2x32xf32> -> vector<2x32xf32>
    %c0_584 = arith.constant 0 : index
    %c0_585 = arith.constant 0 : index
    %607 = vector.load %arg10[%c0_584, %c0_585] : memref<1x32xf32, #tpu.memory_space<vmem>>, vector<1x32xf32>
    %608 = vector.broadcast %607 : vector<1x32xf32> to vector<2x32xf32>
    %609 = arith.addf %606, %608 : vector<2x32xf32>
    %cst_586 = arith.constant 0.000000e+00 : f32
    %610 = vector.broadcast %cst_586 : f32 to vector<2x32xf32>
    %611 = arith.maximumf %609, %610 : vector<2x32xf32>
    %cst_587 = arith.constant 0.000000e+00 : f32
    %612 = vector.broadcast %cst_587 : f32 to vector<2x128xf32>
    %c0_588 = arith.constant 0 : index
    %c0_589 = arith.constant 0 : index
    %613 = vector.load %arg13[%c0_588, %c0_589] : memref<2x128xf32, #tpu.memory_space<vmem>>, vector<2x128xf32>
    tpu.vector_store %arg13[%c0_588, %c0_589], %612 {strides = array<i32>} : memref<2x128xf32, #tpu.memory_space<vmem>>, vector<2x128xf32>,
    %c0_590 = arith.constant 0 : index
    %c0_591 = arith.constant 0 : index
    %614 = vector.load %arg11[%c0_590, %c0_591] : memref<32x7xf32, #tpu.memory_space<vmem>>, vector<32x7xf32>
    %cst_592 = arith.constant dense<0.000000e+00> : vector<2x7xf32>
    %615 = tpu.matmul %611, %614, %cst_592 {dimension_numbers = #tpu.dot_dimension_numbers<[1], [0], [0], [1], [0, 0, 1, 1], [], []>} : vector<2x32xf32>, vector<32x7xf32>, vector<2x7xf32> -> vector<2x7xf32>
    %c0_593 = arith.constant 0 : index
    %c0_594 = arith.constant 0 : index
    %616 = vector.load %arg12[%c0_593, %c0_594] : memref<1x7xf32, #tpu.memory_space<vmem>>, vector<1x7xf32>
    %617 = vector.broadcast %616 : vector<1x7xf32> to vector<2x7xf32>
    %618 = arith.addf %615, %617 : vector<2x7xf32>
    %619 = vector.extract_strided_slice %618 {offsets = [0, 0], sizes = [2, 1], strides = [1, 1]} : vector<2x7xf32> to vector<2x1xf32>
    %620 = vector.extract_strided_slice %618 {offsets = [0, 1], sizes = [2, 6], strides = [1, 1]} : vector<2x7xf32> to vector<2x6xf32>
    %cst_595 = arith.constant dense<0xFF800000> : vector<2xf32>
    %621 = vector.multi_reduction <maximumf>, %620, %cst_595 [1] : vector<2x6xf32> to vector<2xf32>
    %622 = vector.shape_cast %621 : vector<2xf32> to vector<2x1xf32>
    %623 = vector.broadcast %622 : vector<2x1xf32> to vector<2x6xf32>
    %624 = arith.subf %620, %623 : vector<2x6xf32>
    %625 = math.exp %624 : vector<2x6xf32>
    %cst_596 = arith.constant dense<0.000000e+00> : vector<2xf32>
    %626 = vector.multi_reduction <add>, %625, %cst_596 [1] : vector<2x6xf32> to vector<2xf32>
    %627 = vector.shape_cast %626 : vector<2xf32> to vector<2x1xf32>
    %628 = vector.broadcast %627 : vector<2x1xf32> to vector<2x6xf32>
    %629 = arith.divf %625, %628 : vector<2x6xf32>
    %630 = vector.broadcast %622 : vector<2x1xf32> to vector<2x6xf32>
    %631 = arith.subf %620, %630 : vector<2x6xf32>
    %632 = math.log %627 : vector<2x1xf32>
    %633 = vector.broadcast %632 : vector<2x1xf32> to vector<2x6xf32>
    %634 = arith.subf %631, %633 : vector<2x6xf32>
    %c0_597 = arith.constant 0 : index
    %c0_598 = arith.constant 0 : index
    %635 = vector.load %arg13[%c0_597, %c0_598] : memref<2x128xf32, #tpu.memory_space<vmem>>, vector<2x1xf32>
    tpu.vector_store %arg13[%c0_597, %c0_598], %619 {strides = array<i32>} : memref<2x128xf32, #tpu.memory_space<vmem>>, vector<2x1xf32>,
    %c0_599 = arith.constant 0 : index
    %c8_600 = arith.constant 8 : index
    %636 = vector.load %arg13[%c0_599, %c8_600] : memref<2x128xf32, #tpu.memory_space<vmem>>, vector<2x6xf32>
    tpu.vector_store %arg13[%c0_599, %c8_600], %620 {strides = array<i32>} : memref<2x128xf32, #tpu.memory_space<vmem>>, vector<2x6xf32>,
    %c0_601 = arith.constant 0 : index
    %c16_602 = arith.constant 16 : index
    %637 = vector.load %arg13[%c0_601, %c16_602] : memref<2x128xf32, #tpu.memory_space<vmem>>, vector<2x6xf32>
    tpu.vector_store %arg13[%c0_601, %c16_602], %629 {strides = array<i32>} : memref<2x128xf32, #tpu.memory_space<vmem>>, vector<2x6xf32>,
    %c0_603 = arith.constant 0 : index
    %c24_604 = arith.constant 24 : index
    %638 = vector.load %arg13[%c0_603, %c24_604] : memref<2x128xf32, #tpu.memory_space<vmem>>, vector<2x6xf32>
    tpu.vector_store %arg13[%c0_603, %c24_604], %634 {strides = array<i32>} : memref<2x128xf32, #tpu.memory_space<vmem>>, vector<2x6xf32>,
    return
  }
}

</mosaic_0001>

<bundles_post_ra>
// kernel: forward.1
= control target key start
LH: loop header
LB: loop body
LE: loop exit
PB: predicated region body
PF: predicated region fallthrough
CT: control target
= control target key end

     0   :  { %s7339_s29 = smov 12   ;;  %s7341_s30 = smov 4   ;;  %vm7370_vm0 = vcmask 29696   ;;  %v5009_v19 = vmov 0.0|0.0   ;;  %vm5014_vm1 = vmmov 0   ;;  %v5015_v36 = vmov 0.0   ;;  %s7287_s0 = inlined_call_operand.vmem [shape: f32[8,8,8,4], index: 0, kind: input, shape index: {}]   ;;  %s7288_s1 = inlined_call_operand.vmem [shape: f32[100,8], index: 1, kind: input, shape index: {}]   ;;  %s7289_s2 = inlined_call_operand.vmem [shape: f32[1,8], index: 2, kind: input, shape index: {}]   ;;  %s7290_s3 = inlined_call_operand.vmem [shape: f32[1,8], index: 3, kind: input, shape index: {}]   ;;  %s7291_s4 = inlined_call_operand.vmem [shape: f32[1,8], index: 4, kind: input, shape index: {}]   ;;  %s7292_s5 = inlined_call_operand.vmem [shape: f32[200,16], index: 5, kind: input, shape index: {}]   ;;  %s7293_s9 = inlined_call_operand.vmem [shape: f32[16,32], index: 9, kind: input, shape index: {}]   ;;  %s7294_s11 = inlined_call_operand.vmem [shape: f32[32,7], index: 11, kind: input, shape index: {}]   ;;  %s7295_s6 = inlined_call_operand.vmem [shape: f32[1,16], index: 6, kind: input, shape index: {}]   ;;  %s7296_s7 = inlined_call_operand.vmem [shape: f32[1,16], index: 7, kind: input, shape index: {}]   ;;  %s7297_s8 = inlined_call_operand.vmem [shape: f32[1,16], index: 8, kind: input, shape index: {}]   ;;  %s7298_s10 = inlined_call_operand.vmem [shape: f32[1,32], index: 10, kind: input, shape index: {}]   ;;  %s7299_s13 = inlined_call_operand.vmem [shape: f32[2,128], index: 13, kind: output, shape index: {}]   ;;  %s7300_s12 = inlined_call_operand.vmem [shape: f32[1,7], index: 12, kind: input, shape index: {}]  }
   0x1   :  { %7373 = sst [smem:[#allocation4_spill]] %s7288_s1  ;;  %v3832_v0 = vld [vmem:[%s7287_s0 + $0x81] sm:$0x3f]  ;;  %s7337_s18 = smov 16   ;;  %v3910_v8 = vld [vmem:[%s7287_s0 + $0x8] sm:$0x3f]  ;;  %4685 = vmatprep.subr.bf16.mxu1 %v5009_v19  ;;  %4721 = vmatprep.subr.bf16.mxu0 %v5009_v19 }
   0x2   :  { %7374 = sst [smem:[#allocation5_spill]] %s7289_s2  ;;  %v3814_v1 = vld [vmem:[%s7287_s0 + $0x80] sm:$0x3f]  ;;  %231 = vrot.lane.b32.xlu1 %v3832_v0, %s7339_s29  ;;  %s7343_s19 = smov 8   ;;  %v3934_v10 = vld [vmem:[%s7287_s0 + $0x9] sm:$0x3f]  ;;  %4345 = vmatprep.mubr.msk.f32.mxu1 %vm5014_vm1, %v5015_v36 }
   0x3   :  { %7375 = sst [smem:[#allocation6_spill]] %s7290_s3  ;;  %84 = vrot.lane.b32.xlu0 %v3814_v1, %s7341_s30  ;;  %v292_v2 = vld [vmem:[%s7287_s0 + $0x2] sm:$0x3f]  ;;  %s7331_s24 = smov 24   ;;  %v3922_v11 = vld [vmem:[%s7287_s0 + $0x88] sm:$0x3f]  ;;  %4403 = vmatprep.mubr.msk.f32.mxu0 %vm5014_vm1, %v5015_v36 }
   0x4   :  { %7376 = sst [smem:[#allocation7_spill]] %s7291_s4  ;;  %v146_v3 = vld [vmem:[%s7287_s0 + $0x1] sm:$0x3f]  ;;  %s7333_s25 = smov 20   ;;  %v3958_v12 = vld [vmem:[%s7287_s0 + $0xa] sm:$0x3f] }
   0x5   :  { %7377 = sst [smem:[#allocation8_spill]] %s7292_s5  ;;  %v3862_v4 = vld [vmem:[%s7287_s0 + $0x180] sm:$0x3f]  ;;  %s7335_s15 = smov 32   ;;  %v3946_v13 = vld [vmem:[%s7287_s0 + $0x89] sm:$0x3f] }
   0x6   :  { %7378 = sst [smem:[#allocation9_spill]] %s7293_s9  ;;  %304 = vrot.lane.b32.xlu1 %v292_v2, %s7337_s18  ;;  %v3850_v5 = vld [vmem:[%s7287_s0 + $0x100] sm:$0x3f]  ;;  %s7301_s16 = smov 28   ;;  %v3982_v15 = vld [vmem:[%s7287_s0 + $0x188] sm:$0x3f] }
   0x7   :  { %7379 = sst [smem:[#allocation10_spill]] %s7294_s11  ;;  %158 = vrot.lane.b32.xlu0 %v146_v3, %s7343_s19  ;;  %v3886_v6 = vld [vmem:[%s7287_s0 + $0x181] sm:$0x3f]  ;;  %s7305_s23 = smov 40   ;;  %v3970_v16 = vld [vmem:[%s7287_s0 + $0x108] sm:$0x3f] }
   0x8   :  { %7380 = sst [smem:[#allocation11_spill]] %s7295_s6  ;;  %v3874_v7 = vld [vmem:[%s7287_s0 + $0x101] sm:$0x3f]  ;;  %s7303_s26 = smov 36   ;;  %v4006_v17 = vld [vmem:[%s7287_s0 + $0x189] sm:$0x3f] }
   0x9   :  { %7381 = sst [smem:[#allocation12_spill]] %s7296_s7  ;;  %v3898_v9 = vld [vmem:[%s7287_s0 + $0x102] sm:$0x3f]  ;;  %s7309_s17 = smov 48   ;;  %v3994_v18 = vld [vmem:[%s7287_s0 + $0x109] sm:$0x3f] }
   0xa   :  { %7382 = sst [smem:[#allocation13_spill]] %s7297_s8  ;;  %453 = vrot.lane.b32.xlu1 %v3862_v4, %s7331_s24  ;;  %s7307_s20 = smov 44   ;;  %v44_v14 = vld [vmem:[%s7287_s0] sm:$0x3f]  ;;  %v1842_v21 = vld [vmem:[%s7288_s1 + $0x8] sm:$0xff]  ;;  %v1843_v23 = vld [vmem:[%s7288_s1 + $0x10] sm:$0xff] }
   0xb   :  { %7383 = sst [smem:[#allocation14_spill]] %s7298_s10  ;;  %378 = vrot.lane.b32.xlu0 %v3850_v5, %s7333_s25  ;;  %s7311_s14 = smov 52   ;;  %51 = vst.msk [vmem:[#allocation2] sm:$0x3f] %vm7370_vm0, %v44_v14  ;;  %v1841_v20 = vld [vmem:[%s7288_s1] sm:$0xff]  ;;  %v1844_v24 = vld [vmem:[%s7288_s1 + $0x18] sm:$0xff] }
   0xc   :  { %7384 = sst [smem:[#allocation15_spill]] %s7299_s13  ;;  %v5180_v22 = vpack.c.bf16 %v1842_v21, %v1841_v20  ;;  %v4030_v25 = vld [vmem:[%s7287_s0 + $0x10] sm:$0x3f]  ;;  %v4018_v26 = vld [vmem:[%s7287_s0 + $0x10a] sm:$0x3f]  ;;  %v5197_v27 = vpack.c.bf16 %v1844_v24, %v1843_v23  ;;  %v1845_v28 = vld [vmem:[%s7288_s1 + $0x20] sm:$0xff] }
   0xd   :  { %7385 = sst [smem:[#allocation16_spill]] %s7300_s12  ;;  %v1846_v29 = vld [vmem:[%s7288_s1 + $0x28] sm:$0xff]  ;;  %v4054_v31 = vld [vmem:[%s7287_s0 + $0x11] sm:$0x3f]  ;;  %v1848_v35 = vld [vmem:[%s7288_s1 + $0x38] sm:$0xff]  ;;  %s7325_s21 = smov 88  }
   0xe   :  { %600 = vrot.lane.b32.xlu1 %v3886_v6, %s7335_s15  ;;  %4687 = vmatpush3.bf16.msra.mxu1 %v5180_v22  ;;  %v45_v30 = vld [vmem:[%s7287_s0 + $0x8] sm:$0x3f]  ;;  %v4042_v32 = vld [vmem:[%s7287_s0 + $0x90] sm:$0x3f]  ;;  %v5220_v33 = vpack.c.bf16 %v1846_v29, %v1845_v28  ;;  %s7323_s22 = smov 84   ;;  %v1849_v40 = vld [vmem:[%s7288_s1 + $0x40] sm:$0xff] }
   0xf   :  { %527 = vrot.lane.b32.xlu0 %v3874_v7, %s7301_s16  ;;  %s7313_s16 = smov 56   ;;  %4723 = vmatpush3.bf16.msra.mxu0 %v5180_v22  ;;  %52 = vst.msk [vmem:[#allocation2 + $0x8] sm:$0x3f] %vm7370_vm0, %v45_v30  ;;  %v1847_v34 = vld [vmem:[%s7288_s1 + $0x30] sm:$0xff]  ;;  %v1850_v41 = vld [vmem:[%s7288_s1 + $0x48] sm:$0xff]  ;;  %s7347_s27 = smov 96  }
  0x10   :  { %4688 = vmatprep.subr.bf16.mxu1 %v5009_v19  ;;  %4724 = vmatprep.subr.bf16.mxu0 %v5009_v19  ;;  %v4078_v37 = vld [vmem:[%s7287_s0 + $0x12] sm:$0x3f]  ;;  %v5245_v39 = vpack.c.bf16 %v1848_v35, %v1847_v34  ;;  %s7345_s28 = smov 92   ;;  %v147_v42 = vld [vmem:[%s7287_s0 + $0x9] sm:$0x3f]  ;;  %v5265_v44 = vpack.c.bf16 %v1850_v41, %v1849_v40  ;;  %v1852_v46 = vld [vmem:[%s7288_s1 + $0x58] sm:$0xff] }
  0x11   :  { %v4066_v38 = vld [vmem:[%s7287_s0 + $0x91] sm:$0x3f]  ;;  %v3815_v43 = vld [vmem:[%s7287_s0 + $0x88] sm:$0x3f]  ;;  %v5304_v52 = vld [vmem:[%s7288_s1 + $0x60] sm:$0xf] }
  0x12   :  { %747 = vrot.lane.b32.xlu1 %v3910_v8, %s7305_s23  ;;  %s7317_s23 = smov 64   ;;  %4690 = vmatpush3.bf16.msra.mxu1 %v5197_v27  ;;  %v1851_v45 = vld [vmem:[%s7288_s1 + $0x50] sm:$0xff]  ;;  %v293_v47 = vld [vmem:[%s7287_s0 + $0xa] sm:$0x3f]  ;;  %vm7356_vm2 = vcmask 1043456   ;;  %s7395_s12 = smov 72  }
  0x13   :  { %673 = vrot.lane.b32.xlu0 %v3898_v9, %s7303_s26  ;;  %s7315_s26 = smov 60   ;;  %4726 = vmatpush3.bf16.msra.mxu0 %v5197_v27  ;;  %v3833_v48 = vld [vmem:[%s7287_s0 + $0x89] sm:$0x3f]  ;;  %v5285_v49 = vpack.c.bf16 %v1852_v46, %v1851_v45  ;;  %v3911_v55 = vld [vmem:[%s7287_s0 + $0x10] sm:$0x3f]  ;;  %s7399_s8 = smov 88  }
  0x14   :  { %4691 = vmatprep.subr.bf16.mxu1 %v5009_v19  ;;  %4727 = vmatprep.subr.bf16.mxu0 %v5009_v19  ;;  %v3863_v50 = vld [vmem:[%s7287_s0 + $0x188] sm:$0x3f]  ;;  %v3935_v57 = vld [vmem:[%s7287_s0 + $0x11] sm:$0x3f]  ;;  %v4031_v1 = vld [vmem:[%s7287_s0 + $0x18] sm:$0x3f] }
  0x15   :  { %v3851_v51 = vld [vmem:[%s7287_s0 + $0x108] sm:$0x3f]  ;;  %v3923_v58 = vld [vmem:[%s7287_s0 + $0x90] sm:$0x3f]  ;;  %v4055_v4 = vld [vmem:[%s7287_s0 + $0x19] sm:$0x3f] }
  0x16   :  { %896 = vrot.lane.b32.xlu1 %v3934_v10, %s7309_s17  ;;  %s7319_s17 = smov 68   ;;  %4693 = vmatpush3.bf16.msra.mxu1 %v5220_v33  ;;  %v3887_v53 = vld [vmem:[%s7287_s0 + $0x189] sm:$0x3f]  ;;  %v3959_v59 = vld [vmem:[%s7287_s0 + $0x12] sm:$0x3f]  ;;  %s7400_s10 = smov 84  }
  0x17   :  { %822 = vrot.lane.b32.xlu0 %v3922_v11, %s7307_s20  ;;  %s7327_s20 = smov 76   ;;  %4729 = vmatpush3.bf16.msra.mxu0 %v5220_v33  ;;  %v3875_v54 = vld [vmem:[%s7287_s0 + $0x109] sm:$0x3f]  ;;  %v3947_v60 = vld [vmem:[%s7287_s0 + $0x91] sm:$0x3f]  ;;  %s7401_s13 = smov 96  }
  0x18   :  { %4694 = vmatprep.subr.bf16.mxu1 %v5009_v19  ;;  %4730 = vmatprep.subr.bf16.mxu0 %v5009_v19  ;;  %v3899_v56 = vld [vmem:[%s7287_s0 + $0x10a] sm:$0x3f]  ;;  %v3983_v61 = vld [vmem:[%s7287_s0 + $0x190] sm:$0x3f]  ;;  %v4043_v5 = vld [vmem:[%s7287_s0 + $0x98] sm:$0x3f] }
  0x19   :  { %v3971_v62 = vld [vmem:[%s7287_s0 + $0x110] sm:$0x3f]  ;;  %v47_v6 = vld [vmem:[%s7287_s0 + $0x18] sm:$0x3f]  ;;  %s7403_s5 = smov 8   ;;  %s7404_s6 = smov 4  }
  0x1a   :  { %1042 = vrot.lane.b32.xlu1 %v3958_v12, %s7313_s16  ;;  %4696 = vmatpush3.bf16.msra.mxu1 %v5245_v39  ;;  %v4007_v63 = vld [vmem:[%s7287_s0 + $0x191] sm:$0x3f]  ;;  %54 = vst.msk [vmem:[#allocation2 + $0x18] sm:$0x3f] %vm7370_vm0, %v47_v6  ;;  %v4079_v7 = vld [vmem:[%s7287_s0 + $0x1a] sm:$0x3f] }
  0x1b   :  { %969 = vrot.lane.b32.xlu0 %v3946_v13, %s7311_s14  ;;  %4732 = vmatpush3.bf16.msra.mxu0 %v5245_v39  ;;  %s7387_s14 = smov 40   ;;  %v3995_v0 = vld [vmem:[%s7287_s0 + $0x111] sm:$0x3f]  ;;  %v4067_v8 = vld [vmem:[%s7287_s0 + $0x99] sm:$0x3f]  ;;  %s7405_s3 = smov 12  }
  0x1c   :  { %4697 = vmatprep.subr.bf16.mxu1 %v5009_v19  ;;  %4733 = vmatprep.subr.bf16.mxu0 %v5009_v19  ;;  %v4019_v2 = vld [vmem:[%s7287_s0 + $0x112] sm:$0x3f]  ;;  %v3817_v12 = vld [vmem:[%s7287_s0 + $0x98] sm:$0x3f]  ;;  %s7406_s2 = smov 16   ;;  %s7407_s1 = smov 20  }
  0x1d   :  { %v46_v3 = vld [vmem:[%s7287_s0 + $0x10] sm:$0x3f]  ;;  %v149_v14 = vld [vmem:[%s7287_s0 + $0x19] sm:$0x3f]  ;;  %vm102_vm3 = vcmask 62496   ;;  %vm176_vm4 = vcmask 95296  }
  0x1e   :  { %1191 = vrot.lane.b32.xlu1 %v3982_v15, %s7317_s23  ;;  %s7329_s23 = smov 80   ;;  %4699 = vmatpush3.bf16.msra.mxu1 %v5265_v44  ;;  %53 = vst.msk [vmem:[#allocation2 + $0x10] sm:$0x3f] %vm7370_vm0, %v46_v3  ;;  %v148_v9 = vld [vmem:[%s7287_s0 + $0x11] sm:$0x3f]  ;;  %vm249_vm5 = vcmask 128096  }
  0x1f   :  { %1116 = vrot.lane.b32.xlu0 %v3970_v16, %s7315_s26  ;;  %s7321_s26 = smov 72   ;;  %4735 = vmatpush3.bf16.msra.mxu0 %v5265_v44  ;;  %v3816_v10 = vld [vmem:[%s7287_s0 + $0x90] sm:$0x3f]  ;;  %v3835_v16 = vld [vmem:[%s7287_s0 + $0x99] sm:$0x3f]  ;;  %vm322_vm6 = vcmask 160896  }
  0x20   :  { %4700 = vmatprep.subr.bf16.mxu1 %v5009_v19  ;;  %4736 = vmatprep.subr.bf16.mxu0 %v5009_v19  ;;  %v3834_v11 = vld [vmem:[%s7287_s0 + $0x91] sm:$0x3f]  ;;  %v3853_v21 = vld [vmem:[%s7287_s0 + $0x118] sm:$0x3f]  ;;  %s7409_s4 = smov 32   ;;  %vm396_vm7 = vcmask 193696  }
  0x21   :  { %v294_v13 = vld [vmem:[%s7287_s0 + $0x12] sm:$0x3f]  ;;  %vm471_vm8 = vcmask 226496   ;;  %vm545_vm9 = vcmask 259296   ;;  %v3912_v35 = vld [vmem:[%s7287_s0 + $0x18] sm:$0x3f] }
  0x22   :  { %1338 = vrot.lane.b32.xlu1 %v4006_v17, %s7321_s26  ;;  %4702 = vmatpush3.bf16.msra.mxu1 %v5285_v49  ;;  %s7386_s26 = smov 28   ;;  %v3852_v15 = vld [vmem:[%s7287_s0 + $0x110] sm:$0x3f]  ;;  %vm7371_vm10 = vcmask 292096   ;;  %vm7369_vm11 = vcmask 324896   ;;  %vm7368_vm12 = vcmask 357696  }
  0x23   :  { %1265 = vrot.lane.b32.xlu0 %v3994_v18, %s7319_s17  ;;  %4738 = vmatpush3.bf16.msra.mxu0 %v5285_v49  ;;  %s7390_s17 = smov 44   ;;  %v3864_v17 = vld [vmem:[%s7287_s0 + $0x190] sm:$0x3f]  ;;  %v295_v18 = vld [vmem:[%s7287_s0 + $0x1a] sm:$0x3f]  ;;  %vm7357_vm13 = vcmask 390496  }
  0x24   :  { %4343 = vmatprep.subr.mxu1 %v5015_v36  ;;  %4401 = vmatprep.subr.mxu0 %v5015_v36  ;;  %v3876_v20 = vld [vmem:[%s7287_s0 + $0x111] sm:$0x3f]  ;;  %v3924_v41 = vld [vmem:[%s7287_s0 + $0x98] sm:$0x3f]  ;;  %vm7358_vm14 = vcmask 423296   ;;  %vm7359_vm15 = vcmask 456096  }
  0x25   :  { %v3900_v30 = vld [vmem:[%s7287_s0 + $0x112] sm:$0x3f]  ;;  %v3936_v46 = vld [vmem:[%s7287_s0 + $0x19] sm:$0x3f]  ;;  %s7416_s11 = smov 4   ;;  %s7484_s7 = smov 40  }
  0x26   :  { %1485 = vrot.lane.b32.xlu1 %v4030_v25, %s7329_s23  ;;  %4344 = vmatpush3.msk.msra.mxu1 %vm7356_vm2, %v5304_v52  ;;  %s7398_s23 = smov 76   ;;  %v3888_v25 = vld [vmem:[%s7287_s0 + $0x191] sm:$0x3f]  ;;  %s7579_s16 = sld [smem:[#allocation7_spill]] }
  0x27   :  { %1411 = vrot.lane.b32.xlu0 %v4018_v26, %s7327_s20  ;;  %4402 = vmatpush3.msk.msra.mxu0 %vm7356_vm2, %v5304_v52  ;;  %v3865_v26 = vld [vmem:[%s7287_s0 + $0x198] sm:$0x3f]  ;;  %vm7360_vm2 = vcmask 488896   ;;  %s7586_s20 = sld [smem:[#allocation14_spill]] }
  0x28   :  { %4703 = vmatprep.subr.bf16.mxu1 %v5009_v19  ;;  %4757 = vmatprep.subr.bf16.mxu0 %v5009_v19 }
  0x2a   :  { %1634 = vrot.lane.b32.xlu1 %v4054_v31, %s7325_s21  ;;  %s7388_s21 = smov 36   ;;  %v3877_v31 = vld [vmem:[%s7287_s0 + $0x119] sm:$0x3f] }
  0x2b   :  { %1560 = vrot.lane.b32.xlu0 %v4042_v32, %s7323_s22  ;;  %s7402_s22 = smov 92  }
  0x2e   :  { %1780 = vrot.lane.b32.xlu1 %v4078_v37, %s7347_s27  ;;  %s7397_s27 = smov 80   ;;  %v3889_v37 = vld [vmem:[%s7287_s0 + $0x199] sm:$0x3f] }
  0x2f   :  { %1707 = vrot.lane.b32.xlu0 %v4066_v38, %s7345_s28  ;;  %s7393_s28 = smov 64  }
  0x32   :  { %160 = vrot.lane.b32.xlu1 %v147_v42, %s7343_s19  ;;  %s7396_s19 = smov 68   ;;  %v3901_v42 = vld [vmem:[%s7287_s0 + $0x11a] sm:$0x3f] }
  0x33   :  { %86 = vrot.lane.b32.xlu0 %v3815_v43, %s7341_s30  ;;  %s7391_s30 = smov 56  }
  0x36   :  { %306 = vrot.lane.b32.xlu1 %v293_v47, %s7337_s18  ;;  %s7389_s18 = smov 48   ;;  %v3913_v47 = vld [vmem:[%s7287_s0 + $0x20] sm:$0x3f] }
  0x37   :  { %233 = vrot.lane.b32.xlu0 %v3833_v48, %s7339_s29  ;;  %s7394_s29 = smov 60  }
  0x3a   :  { %455 = vrot.lane.b32.xlu1 %v3863_v50, %s7331_s24  ;;  %s7392_s24 = smov 52  }
  0x3b   :  { %380 = vrot.lane.b32.xlu0 %v3851_v51, %s7333_s25  ;;  %v3948_v51 = vld [vmem:[%s7287_s0 + $0x99] sm:$0x3f] }
  0x3e   :  { %602 = vrot.lane.b32.xlu1 %v3887_v53, %s7335_s15  ;;  %v3925_v53 = vld [vmem:[%s7287_s0 + $0xa0] sm:$0x3f]  ;;  %s7585_s15 = sld [smem:[#allocation13_spill]] }
  0x3f   :  { %529 = vrot.lane.b32.xlu0 %v3875_v54, %s7386_s26 }
  0x42   :  { %749 = vrot.lane.b32.xlu1 %v3911_v55, %s7387_s14 }
  0x43   :  { %675 = vrot.lane.b32.xlu0 %v3899_v56, %s7388_s21  ;;  %v3960_v56 = vld [vmem:[%s7287_s0 + $0x1a] sm:$0x3f] }
  0x46   :  { %898 = vrot.lane.b32.xlu1 %v3935_v57, %s7389_s18  ;;  %v3937_v57 = vld [vmem:[%s7287_s0 + $0x21] sm:$0x3f] }
  0x47   :  { %824 = vrot.lane.b32.xlu0 %v3923_v58, %s7390_s17 }
  0x4a   :  { %1044 = vrot.lane.b32.xlu1 %v3959_v59, %s7391_s30 }
  0x4b   :  { %971 = vrot.lane.b32.xlu0 %v3947_v60, %s7392_s24  ;;  %v3972_v60 = vld [vmem:[%s7287_s0 + $0x118] sm:$0x3f] }
  0x4e   :  { %1193 = vrot.lane.b32.xlu1 %v3983_v61, %s7393_s28  ;;  %v3949_v61 = vld [vmem:[%s7287_s0 + $0xa1] sm:$0x3f] }
  0x4f   :  { %1118 = vrot.lane.b32.xlu0 %v3971_v62, %s7394_s29 }
  0x52   :  { %1340 = vrot.lane.b32.xlu1 %v4007_v63, %s7395_s12 }
  0x53   :  { %1267 = vrot.lane.b32.xlu0 %v3995_v0, %s7396_s19  ;;  %v3984_v0 = vld [vmem:[%s7287_s0 + $0x198] sm:$0x3f] }
  0x56   :  { %1487 = vrot.lane.b32.xlu1 %v4031_v1, %s7397_s27  ;;  %v3961_v1 = vld [vmem:[%s7287_s0 + $0x22] sm:$0x3f] }
  0x57   :  { %1413 = vrot.lane.b32.xlu0 %v4019_v2, %s7398_s23 }
  0x5a   :  { %1636 = vrot.lane.b32.xlu1 %v4055_v4, %s7399_s8  ;;  %v3996_v4 = vld [vmem:[%s7287_s0 + $0x119] sm:$0x3f] }
  0x5b   :  { %1562 = vrot.lane.b32.xlu0 %v4043_v5, %s7400_s10  ;;  %v3973_v5 = vld [vmem:[%s7287_s0 + $0x120] sm:$0x3f] }
  0x5e   :  { %1782 = vrot.lane.b32.xlu1 %v4079_v7, %s7401_s13 }
  0x5f   :  { %1709 = vrot.lane.b32.xlu0 %v4067_v8, %s7402_s22  ;;  %v4008_v8 = vld [vmem:[%s7287_s0 + $0x199] sm:$0x3f] }
  0x62   :  { %162 = vrot.lane.b32.xlu1 %v148_v9, %s7403_s5  ;;  %v3985_v9 = vld [vmem:[%s7287_s0 + $0x1a0] sm:$0x3f] }
  0x63   :  { %88 = vrot.lane.b32.xlu0 %v3816_v10, %s7404_s6 }
  0x66   :  { %235 = vrot.lane.b32.xlu1 %v3834_v11, %s7405_s3 }
  0x67   :  { %90 = vrot.lane.b32.xlu0 %v3817_v12, %s7404_s6  ;;  %s7408_s6 = smov 24   ;;  %v4020_v12 = vld [vmem:[%s7287_s0 + $0x11a] sm:$0x3f] }
  0x6a   :  { %308 = vrot.lane.b32.xlu1 %v294_v13, %s7406_s2  ;;  %v3997_v13 = vld [vmem:[%s7287_s0 + $0x121] sm:$0x3f] }
  0x6b   :  { %164 = vrot.lane.b32.xlu0 %v149_v14, %s7403_s5 }
  0x6e   :  { %382 = vrot.lane.b32.xlu1 %v3852_v15, %s7407_s1 }
  0x6f   :  { %237 = vrot.lane.b32.xlu0 %v3835_v16, %s7405_s3  ;;  %v4032_v16 = vld [vmem:[%s7287_s0 + $0x20] sm:$0x3f] }
  0x72   :  { %457 = vrot.lane.b32.xlu1 %v3864_v17, %s7408_s6  ;;  %v4009_v17 = vld [vmem:[%s7287_s0 + $0x1a1] sm:$0x3f] }
  0x73   :  { %310 = vrot.lane.b32.xlu0 %v295_v18, %s7406_s2 }
  0x74   :  { %v232_v23 = vpop.permute.xlu1 %231 }
  0x75   :  { %v85_v24 = vpop.permute.xlu0 %84 }
  0x76   :  { %103 = vst.msk [vmem:[#allocation2] sm:$0x3f] %vm102_vm3, %v85_v24  ;;  %531 = vrot.lane.b32.xlu1 %v3876_v20, %s7386_s26  ;;  %v4021_v24 = vld [vmem:[%s7287_s0 + $0x122] sm:$0x3f] }
  0x77   :  { %384 = vrot.lane.b32.xlu0 %v3853_v21, %s7407_s1 }
  0x78   :  { %v305_v28 = vpop.permute.xlu1 %304 }
  0x79   :  { %v159_v29 = vpop.permute.xlu0 %158 }
  0x7a   :  { %177 = vst.msk [vmem:[#allocation2] sm:$0x3f] %vm176_vm4, %v159_v29  ;;  %604 = vrot.lane.b32.xlu1 %v3888_v25, %s7409_s4  ;;  %v4033_v29 = vld [vmem:[%s7287_s0 + $0x28] sm:$0x3f] }
  0x7b   :  { %250 = vst.msk [vmem:[#allocation2] sm:$0x3f] %vm249_vm5, %v232_v23  ;;  %459 = vrot.lane.b32.xlu0 %v3865_v26, %s7408_s6  ;;  %v4044_v23 = vld [vmem:[%s7287_s0 + $0xa0] sm:$0x3f] }
  0x7c   :  { %323 = vst.msk [vmem:[#allocation2] sm:$0x3f] %vm322_vm6, %v305_v28  ;;  %v454_v32 = vpop.permute.xlu1 %453  ;;  %v4056_v28 = vld [vmem:[%s7287_s0 + $0x21] sm:$0x3f] }
  0x7d   :  { %v379_v34 = vpop.permute.xlu0 %378 }
  0x7e   :  { %397 = vst.msk [vmem:[#allocation2] sm:$0x3f] %vm396_vm7, %v379_v34  ;;  %677 = vrot.lane.b32.xlu1 %v3900_v30, %s7388_s21  ;;  %v4045_v34 = vld [vmem:[%s7287_s0 + $0xa8] sm:$0x3f] }
  0x7f   :  { %533 = vrot.lane.b32.xlu0 %v3877_v31, %s7386_s26  ;;  %472 = vst.msk [vmem:[#allocation2] sm:$0x3f] %vm471_vm8, %v454_v32  ;;  %v4068_v32 = vld [vmem:[%s7287_s0 + $0xa1] sm:$0x3f] }
  0x80   :  { %v601_v38 = vpop.permute.xlu1 %600 }
  0x81   :  { %v528_v40 = vpop.permute.xlu0 %527 }
  0x82   :  { %546 = vst.msk [vmem:[#allocation2] sm:$0x3f] %vm545_vm9, %v528_v40  ;;  %751 = vrot.lane.b32.xlu1 %v3912_v35, %s7387_s14  ;;  %v4080_v40 = vld [vmem:[%s7287_s0 + $0x22] sm:$0x3f] }
  0x83   :  { %606 = vrot.lane.b32.xlu0 %v3889_v37, %s7409_s4  ;;  %619 = vst.msk [vmem:[#allocation2] sm:$0x3f] %vm7371_vm10, %v601_v38  ;;  %v48_v38 = vld [vmem:[%s7287_s0 + $0x20] sm:$0x3f] }
  0x84   :  { %v748_v43 = vpop.permute.xlu1 %747  ;;  %55 = vst.msk [vmem:[#allocation2 + $0x20] sm:$0x3f] %vm7370_vm0, %v48_v38  ;;  %v3950_v38 = vld [vmem:[%s7287_s0 + $0xa9] sm:$0x3f] }
  0x85   :  { %v674_v45 = vpop.permute.xlu0 %673 }
  0x86   :  { %692 = vst.msk [vmem:[#allocation2] sm:$0x3f] %vm7369_vm11, %v674_v45  ;;  %826 = vrot.lane.b32.xlu1 %v3924_v41, %s7390_s17  ;;  %v4057_v41 = vld [vmem:[%s7287_s0 + $0x29] sm:$0x3f] }
  0x87   :  { %679 = vrot.lane.b32.xlu0 %v3901_v42, %s7388_s21  ;;  %766 = vst.msk [vmem:[#allocation2] sm:$0x3f] %vm7368_vm12, %v748_v43  ;;  %v49_v45 = vld [vmem:[%s7287_s0 + $0x28] sm:$0x3f] }
  0x88   :  { %v897_v48 = vpop.permute.xlu1 %896  ;;  %56 = vst.msk [vmem:[#allocation2 + $0x28] sm:$0x3f] %vm7370_vm0, %v49_v45  ;;  %vm7418_vm0 = vcmask 587296   ;;  %v3939_v45 = vld [vmem:[%s7287_s0 + $0x31] sm:$0x3f] }
  0x89   :  { %v823_v50 = vpop.permute.xlu0 %822 }
  0x8a   :  { %841 = vst.msk [vmem:[#allocation2] sm:$0x3f] %vm7357_vm13, %v823_v50  ;;  %900 = vrot.lane.b32.xlu1 %v3936_v46, %s7389_s18  ;;  %vm7361_vm13 = vcmask 521696   ;;  %v4081_v46 = vld [vmem:[%s7287_s0 + $0x2a] sm:$0x3f] }
  0x8b   :  { %753 = vrot.lane.b32.xlu0 %v3913_v47, %s7387_s14  ;;  %915 = vst.msk [vmem:[#allocation2] sm:$0x3f] %vm7358_vm14, %v897_v48  ;;  %vm7362_vm14 = vcmask 554496   ;;  %v4069_v47 = vld [vmem:[%s7287_s0 + $0xa9] sm:$0x3f] }
  0x8c   :  { %v1043_v54 = vpop.permute.xlu1 %1042 }
  0x8d   :  { %v970_v55 = vpop.permute.xlu0 %969 }
  0x8e   :  { %988 = vst.msk [vmem:[#allocation2] sm:$0x3f] %vm7359_vm15, %v970_v55  ;;  %973 = vrot.lane.b32.xlu1 %v3948_v51, %s7392_s24  ;;  %vm7363_vm15 = vcmask 587296   ;;  %v150_v51 = vld [vmem:[%s7287_s0 + $0x21] sm:$0x3f] }
  0x8f   :  { %828 = vrot.lane.b32.xlu0 %v3925_v53, %s7390_s17  ;;  %1061 = vst.msk [vmem:[#allocation2] sm:$0x3f] %vm7360_vm2, %v1043_v54  ;;  %vm7364_vm2 = vcmask 620096   ;;  %v3818_v53 = vld [vmem:[%s7287_s0 + $0xa0] sm:$0x3f] }
  0x90   :  { %v1192_v58 = vpop.permute.xlu1 %1191 }
  0x91   :  { %v1117_v59 = vpop.permute.xlu0 %1116 }
  0x92   :  { %1135 = vst.msk [vmem:[#allocation2] sm:$0x3f] %vm7361_vm13, %v1117_v59  ;;  %1046 = vrot.lane.b32.xlu1 %v3960_v56, %s7391_s30  ;;  %vm7365_vm13 = vcmask 652896   ;;  %v3836_v56 = vld [vmem:[%s7287_s0 + $0xa1] sm:$0x3f] }
  0x93   :  { %902 = vrot.lane.b32.xlu0 %v3937_v57, %s7389_s18  ;;  %1210 = vst.msk [vmem:[#allocation2] sm:$0x3f] %vm7362_vm14, %v1192_v58  ;;  %vm7366_vm14 = vcmask 685696   ;;  %v3819_v57 = vld [vmem:[%s7287_s0 + $0xa8] sm:$0x3f] }
  0x94   :  { %v1339_v62 = vpop.permute.xlu1 %1338 }
  0x95   :  { %v1266_v63 = vpop.permute.xlu0 %1265 }
  0x96   :  { %1284 = vst.msk [vmem:[#allocation2] sm:$0x3f] %vm7363_vm15, %v1266_v63  ;;  %1120 = vrot.lane.b32.xlu1 %v3972_v60, %s7394_s29  ;;  %vm1578_vm15 = vcmask 718496   ;;  %v296_v60 = vld [vmem:[%s7287_s0 + $0x22] sm:$0x3f] }
  0x97   :  { %975 = vrot.lane.b32.xlu0 %v3949_v61, %s7392_s24  ;;  %1357 = vst.msk [vmem:[#allocation2] sm:$0x3f] %vm7364_vm2, %v1339_v62  ;;  %vm1652_vm2 = vcmask 751296   ;;  %v151_v61 = vld [vmem:[%s7287_s0 + $0x29] sm:$0x3f] }
  0x98   :  { %v1486_v2 = vpop.permute.xlu1 %1485 }
  0x99   :  { %v1412_v3 = vpop.permute.xlu0 %1411 }
  0x9a   :  { %1430 = vst.msk [vmem:[#allocation2] sm:$0x3f] %vm7365_vm13, %v1412_v3  ;;  %1195 = vrot.lane.b32.xlu1 %v3984_v0, %s7393_s28  ;;  %vm1725_vm13 = vcmask 784096   ;;  %v3854_v0 = vld [vmem:[%s7287_s0 + $0x120] sm:$0x3f] }
  0x9b   :  { %1048 = vrot.lane.b32.xlu0 %v3961_v1, %s7391_s30  ;;  %1504 = vst.msk [vmem:[#allocation2] sm:$0x3f] %vm7366_vm14, %v1486_v2  ;;  %vm7367_vm14 = vcmask 816896   ;;  %v3837_v1 = vld [vmem:[%s7287_s0 + $0xa9] sm:$0x3f] }
  0x9c   :  { %v1635_v6 = vpop.permute.xlu1 %1634 }
  0x9d   :  { %v1561_v7 = vpop.permute.xlu0 %1560 }
  0x9e   :  { %1579 = vst.msk [vmem:[#allocation2] sm:$0x3f] %vm1578_vm15, %v1561_v7  ;;  %1269 = vrot.lane.b32.xlu1 %v3996_v4, %s7396_s19  ;;  %v3866_v4 = vld [vmem:[%s7287_s0 + $0x1a0] sm:$0x3f] }
  0x9f   :  { %1122 = vrot.lane.b32.xlu0 %v3973_v5, %s7394_s29  ;;  %1653 = vst.msk [vmem:[#allocation2] sm:$0x3f] %vm1652_vm2, %v1635_v6  ;;  %v297_v5 = vld [vmem:[%s7287_s0 + $0x2a] sm:$0x3f] }
  0xa0   :  { %v1781_v10 = vpop.permute.xlu1 %1780 }
  0xa1   :  { %v1708_v11 = vpop.permute.xlu0 %1707 }
  0xa2   :  { %1726 = vst.msk [vmem:[#allocation2] sm:$0x3f] %vm1725_vm13, %v1708_v11  ;;  %1342 = vrot.lane.b32.xlu1 %v4008_v8, %s7395_s12  ;;  %v3878_v8 = vld [vmem:[%s7287_s0 + $0x121] sm:$0x3f] }
  0xa3   :  { %1799 = vst.msk [vmem:[#allocation2] sm:$0x3f] %vm7367_vm14, %v1781_v10  ;;  %1197 = vrot.lane.b32.xlu0 %v3985_v9, %s7393_s28  ;;  %vm1862_vm14 = vcmask 818176   ;;  %v3855_v9 = vld [vmem:[%s7287_s0 + $0x128] sm:$0x3f] }
  0xa4   :  { %v161_v14 = vpop.permute.xlu1 %160 }
  0xa5   :  { %v87_v15 = vpop.permute.xlu0 %86 }
  0xa6   :  { %104 = vst.msk [vmem:[#allocation2 + $0x8] sm:$0x3f] %vm102_vm3, %v87_v15  ;;  %1415 = vrot.lane.b32.xlu1 %v4020_v12, %s7398_s23  ;;  %v3890_v12 = vld [vmem:[%s7287_s0 + $0x1a1] sm:$0x3f] }
  0xa7   :  { %178 = vst.msk [vmem:[#allocation2 + $0x8] sm:$0x3f] %vm176_vm4, %v161_v14  ;;  %1271 = vrot.lane.b32.xlu0 %v3997_v13, %s7396_s19  ;;  %v3867_v13 = vld [vmem:[%s7287_s0 + $0x1a8] sm:$0x3f] }
  0xa8   :  { %v307_v18 = vpop.permute.xlu1 %306 }
  0xa9   :  { %v234_v20 = vpop.permute.xlu0 %233 }
  0xaa   :  { %251 = vst.msk [vmem:[#allocation2 + $0x8] sm:$0x3f] %vm249_vm5, %v234_v20  ;;  %v1855_v21 = vld [vmem:[#allocation2] sm:$0x3f]  ;;  %1489 = vrot.lane.b32.xlu1 %v4032_v16, %s7397_s27 }
  0xab   :  { %324 = vst.msk [vmem:[#allocation2 + $0x8] sm:$0x3f] %vm322_vm6, %v307_v18  ;;  %1344 = vrot.lane.b32.xlu0 %v4009_v17, %s7395_s12  ;;  %4346 = vmatmul.mubr.msk.f32.vlgmr.msra.gmra.mrb[0].mxu1 %vm1862_vm14, %v1855_v21  ;;  %v3902_v17 = vld [vmem:[%s7287_s0 + $0x122] sm:$0x3f]  ;;  %v3879_v18 = vld [vmem:[%s7287_s0 + $0x129] sm:$0x3f] }
  0xac   :  { %v456_v25 = vpop.permute.xlu1 %455  ;;  %4705 = vmatpush3.bf16.msra.mxu1 %v5180_v22  ;;  %4374 = vmatprep.mubr.msk.f32.mxu1 %vm5014_vm1, %v5015_v36 }
  0xad   :  { %v381_v26 = vpop.permute.xlu0 %380  ;;  %4706 = vmatprep.subr.bf16.mxu1 %v5009_v19 }
  0xae   :  { %398 = vst.msk [vmem:[#allocation2 + $0x8] sm:$0x3f] %vm396_vm7, %v381_v26  ;;  %1564 = vrot.lane.b32.xlu1 %v4044_v23, %s7400_s10  ;;  %v3914_v23 = vld [vmem:[%s7287_s0 + $0x28] sm:$0x3f] }
  0xaf   :  { %473 = vst.msk [vmem:[#allocation2 + $0x8] sm:$0x3f] %vm471_vm8, %v456_v25  ;;  %1417 = vrot.lane.b32.xlu0 %v4021_v24, %s7398_s23  ;;  %v3891_v24 = vld [vmem:[%s7287_s0 + $0x1a9] sm:$0x3f] }
  0xb0   :  { %v603_v30 = vpop.permute.xlu1 %602  ;;  %4708 = vmatpush3.bf16.msra.mxu1 %v5197_v27 }
  0xb1   :  { %v530_v31 = vpop.permute.xlu0 %529  ;;  %4709 = vmatprep.subr.bf16.mxu1 %v5009_v19 }
  0xb2   :  { %547 = vst.msk [vmem:[#allocation2 + $0x8] sm:$0x3f] %vm545_vm9, %v530_v31  ;;  %1638 = vrot.lane.b32.xlu1 %v4056_v28, %s7399_s8  ;;  %v3926_v28 = vld [vmem:[%s7287_s0 + $0xa8] sm:$0x3f] }
  0xb3   :  { %620 = vst.msk [vmem:[#allocation2 + $0x8] sm:$0x3f] %vm7371_vm10, %v603_v30  ;;  %1491 = vrot.lane.b32.xlu0 %v4033_v29, %s7397_s27  ;;  %v3903_v29 = vld [vmem:[%s7287_s0 + $0x12a] sm:$0x3f] }
  0xb4   :  { %v750_v35 = vpop.permute.xlu1 %749  ;;  %4711 = vmatpush3.bf16.msra.mxu1 %v5220_v33 }
  0xb5   :  { %v676_v37 = vpop.permute.xlu0 %675  ;;  %4712 = vmatprep.subr.bf16.mxu1 %v5009_v19 }
  0xb6   :  { %693 = vst.msk [vmem:[#allocation2 + $0x8] sm:$0x3f] %vm7369_vm11, %v676_v37  ;;  %1711 = vrot.lane.b32.xlu1 %v4068_v32, %s7402_s22  ;;  %vm7411_vm11 = vcmask 423296   ;;  %v3938_v32 = vld [vmem:[%s7287_s0 + $0x29] sm:$0x3f] }
  0xb7   :  { %767 = vst.msk [vmem:[#allocation2 + $0x8] sm:$0x3f] %vm7368_vm12, %v750_v35  ;;  %1566 = vrot.lane.b32.xlu0 %v4045_v34, %s7400_s10  ;;  %vm7410_vm12 = vcmask 390496   ;;  %v3915_v34 = vld [vmem:[%s7287_s0 + $0x30] sm:$0x3f] }
  0xb8   :  { %v899_v42 = vpop.permute.xlu1 %898  ;;  %4714 = vmatpush3.bf16.msra.mxu1 %v5245_v39 }
  0xb9   :  { %v825_v43 = vpop.permute.xlu0 %824  ;;  %4715 = vmatprep.subr.bf16.mxu1 %v5009_v19 }
  0xba   :  { %842 = vst.msk [vmem:[#allocation2 + $0x8] sm:$0x3f] %vm7410_vm12, %v825_v43  ;;  %1784 = vrot.lane.b32.xlu1 %v4080_v40, %s7401_s13  ;;  %vm7412_vm12 = vcmask 456096   ;;  %v3927_v40 = vld [vmem:[%s7287_s0 + $0xb0] sm:$0x3f] }
  0xbb   :  { %916 = vst.msk [vmem:[#allocation2 + $0x8] sm:$0x3f] %vm7411_vm11, %v899_v42  ;;  %1640 = vrot.lane.b32.xlu0 %v4057_v41, %s7399_s8  ;;  %vm7413_vm11 = vcmask 488896   ;;  %v3962_v43 = vld [vmem:[%s7287_s0 + $0x2a] sm:$0x3f] }
  0xbc   :  { %v1045_v48 = vpop.permute.xlu1 %1044  ;;  %4717 = vmatpush3.bf16.msra.mxu1 %v5265_v44 }
  0xbd   :  { %v972_v50 = vpop.permute.xlu0 %971  ;;  %4718 = vmatprep.subr.bf16.mxu1 %v5009_v19 }
  0xbe   :  { %989 = vst.msk [vmem:[#allocation2 + $0x8] sm:$0x3f] %vm7412_vm12, %v972_v50  ;;  %1786 = vrot.lane.b32.xlu1 %v4081_v46, %s7401_s13  ;;  %vm7414_vm12 = vcmask 521696   ;;  %v3951_v50 = vld [vmem:[%s7287_s0 + $0xb1] sm:$0x3f] }
  0xbf   :  { %1062 = vst.msk [vmem:[#allocation2 + $0x8] sm:$0x3f] %vm7413_vm11, %v1045_v48  ;;  %1713 = vrot.lane.b32.xlu0 %v4069_v47, %s7402_s22  ;;  %vm7415_vm11 = vcmask 554496   ;;  %v3974_v48 = vld [vmem:[%s7287_s0 + $0x128] sm:$0x3f] }
  0xc0   :  { %v1194_v54 = vpop.permute.xlu1 %1193  ;;  %4720 = vmatpush3.bf16.msra.mxu1 %v5285_v49 }
  0xc1   :  { %v1119_v55 = vpop.permute.xlu0 %1118  ;;  %4372 = vmatprep.subr.mxu1 %v5015_v36 }
  0xc2   :  { %1136 = vst.msk [vmem:[#allocation2 + $0x8] sm:$0x3f] %vm7414_vm12, %v1119_v55  ;;  %166 = vrot.lane.b32.xlu1 %v150_v51, %s7403_s5  ;;  %vm7417_vm12 = vcmask 1043456   ;;  %v3963_v55 = vld [vmem:[%s7287_s0 + $0x32] sm:$0x3f] }
  0xc3   :  { %1211 = vst.msk [vmem:[#allocation2 + $0x8] sm:$0x3f] %vm7415_vm11, %v1194_v54  ;;  %92 = vrot.lane.b32.xlu0 %v3818_v53, %s7416_s11  ;;  %vm7419_vm11 = vcmask 620096   ;;  %v3986_v54 = vld [vmem:[%s7287_s0 + $0x1a8] sm:$0x3f] }
  0xc4   :  { %v1341_v58 = vpop.permute.xlu1 %1340  ;;  %4373 = vmatpush3.msk.msra.mxu1 %vm7417_vm12, %v5304_v52  ;;  %vm7420_vm12 = vcmask 652896  }
  0xc5   :  { %v1268_v59 = vpop.permute.xlu0 %1267  ;;  %4739 = vmatprep.subr.bf16.mxu1 %v5009_v19 }
  0xc6   :  { %1285 = vst.msk [vmem:[#allocation2 + $0x8] sm:$0x3f] %vm7418_vm0, %v1268_v59  ;;  %239 = vrot.lane.b32.xlu1 %v3836_v56, %s7405_s3  ;;  %vm7421_vm0 = vcmask 685696  }
  0xc7   :  { %1358 = vst.msk [vmem:[#allocation2 + $0x8] sm:$0x3f] %vm7419_vm11, %v1341_v58  ;;  %94 = vrot.lane.b32.xlu0 %v3819_v57, %s7416_s11  ;;  %vm7422_vm11 = vcmask 816896   ;;  %v3998_v57 = vld [vmem:[%s7287_s0 + $0x129] sm:$0x3f] }
  0xc8   :  { %v1488_v62 = vpop.permute.xlu1 %1487  ;;  %v3975_v58 = vld [vmem:[%s7287_s0 + $0x130] sm:$0x3f] }
  0xc9   :  { %v1414_v63 = vpop.permute.xlu0 %1413 }
  0xca   :  { %1431 = vst.msk [vmem:[#allocation2 + $0x8] sm:$0x3f] %vm7420_vm12, %v1414_v63  ;;  %312 = vrot.lane.b32.xlu1 %v296_v60, %s7406_s2  ;;  %vm7423_vm12 = vcmask 324896  }
  0xcb   :  { %1505 = vst.msk [vmem:[#allocation2 + $0x8] sm:$0x3f] %vm7421_vm0, %v1488_v62  ;;  %168 = vrot.lane.b32.xlu0 %v151_v61, %s7403_s5  ;;  %vm7424_vm0 = vcmask 1043456   ;;  %v4010_v61 = vld [vmem:[%s7287_s0 + $0x1a9] sm:$0x3f] }
  0xcc   :  { %v1637_v2 = vpop.permute.xlu1 %1636  ;;  %v3987_v62 = vld [vmem:[%s7287_s0 + $0x1b0] sm:$0x3f] }
  0xcd   :  { %v1563_v3 = vpop.permute.xlu0 %1562 }
  0xce   :  { %1580 = vst.msk [vmem:[#allocation2 + $0x8] sm:$0x3f] %vm1578_vm15, %v1563_v3  ;;  %386 = vrot.lane.b32.xlu1 %v3854_v0, %s7407_s1 }
  0xcf   :  { %1654 = vst.msk [vmem:[#allocation2 + $0x8] sm:$0x3f] %vm1652_vm2, %v1637_v2  ;;  %241 = vrot.lane.b32.xlu0 %v3837_v1, %s7405_s3  ;;  %v4022_v1 = vld [vmem:[%s7287_s0 + $0x12a] sm:$0x3f]  ;;  %v3999_v2 = vld [vmem:[%s7287_s0 + $0x131] sm:$0x3f] }
  0xd0   :  { %v1783_v6 = vpop.permute.xlu1 %1782 }
  0xd1   :  { %v1710_v7 = vpop.permute.xlu0 %1709 }
  0xd2   :  { %1727 = vst.msk [vmem:[#allocation2 + $0x8] sm:$0x3f] %vm1725_vm13, %v1710_v7  ;;  %461 = vrot.lane.b32.xlu1 %v3866_v4, %s7408_s6 }
  0xd3   :  { %1800 = vst.msk [vmem:[#allocation2 + $0x8] sm:$0x3f] %vm7422_vm11, %v1783_v6  ;;  %314 = vrot.lane.b32.xlu0 %v297_v5, %s7406_s2  ;;  %vm7425_vm11 = vcmask 357696   ;;  %v4034_v5 = vld [vmem:[%s7287_s0 + $0x30] sm:$0x3f] }
  0xd4   :  { %v163_v10 = vpop.permute.xlu1 %162  ;;  %v4011_v6 = vld [vmem:[%s7287_s0 + $0x1b1] sm:$0x3f] }
  0xd5   :  { %v89_v11 = vpop.permute.xlu0 %88 }
  0xd6   :  { %105 = vst.msk [vmem:[#allocation2 + $0x10] sm:$0x3f] %vm102_vm3, %v89_v11  ;;  %535 = vrot.lane.b32.xlu1 %v3878_v8, %s7386_s26 }
  0xd7   :  { %179 = vst.msk [vmem:[#allocation2 + $0x10] sm:$0x3f] %vm176_vm4, %v163_v10  ;;  %388 = vrot.lane.b32.xlu0 %v3855_v9, %s7407_s1  ;;  %v4046_v9 = vld [vmem:[%s7287_s0 + $0xb0] sm:$0x3f] }
  0xd8   :  { %v236_v14 = vpop.permute.xlu1 %235  ;;  %v4023_v10 = vld [vmem:[%s7287_s0 + $0x132] sm:$0x3f] }
  0xd9   :  { %v91_v15 = vpop.permute.xlu0 %90  ;;  %252 = vst.msk [vmem:[#allocation2 + $0x10] sm:$0x3f] %vm249_vm5, %v236_v14  ;;  %v4035_v14 = vld [vmem:[%s7287_s0 + $0x38] sm:$0x3f] }
  0xda   :  { %106 = vst.msk [vmem:[#allocation2 + $0x18] sm:$0x3f] %vm102_vm3, %v91_v15  ;;  %v1959_v16 = vld [vmem:[#allocation2 + $0x8] sm:$0x3f]  ;;  %608 = vrot.lane.b32.xlu1 %v3890_v12, %s7409_s4 }
  0xdb   :  { %463 = vrot.lane.b32.xlu0 %v3867_v13, %s7408_s6  ;;  %4375 = vmatmul.mubr.msk.f32.vlgmr.msra.gmra.mrb[2].mxu1 %vm1862_vm14, %v1959_v16  ;;  %v4058_v13 = vld [vmem:[%s7287_s0 + $0x31] sm:$0x3f] }
  0xdc   :  { %v309_v20 = vpop.permute.xlu1 %308  ;;  %4741 = vmatpush3.bf16.msra.mxu1 %v5180_v22  ;;  %4432 = vmatprep.mubr.msk.f32.mxu1 %vm5014_vm1, %v5015_v36 }
  0xdd   :  { %v165_v21 = vpop.permute.xlu0 %164  ;;  %325 = vst.msk [vmem:[#allocation2 + $0x10] sm:$0x3f] %vm322_vm6, %v309_v20  ;;  %4742 = vmatprep.subr.bf16.mxu1 %v5009_v19 }
  0xde   :  { %180 = vst.msk [vmem:[#allocation2 + $0x18] sm:$0x3f] %vm176_vm4, %v165_v21  ;;  %681 = vrot.lane.b32.xlu1 %v3902_v17, %s7388_s21  ;;  %v4070_v17 = vld [vmem:[%s7287_s0 + $0xb1] sm:$0x3f] }
  0xdf   :  { %537 = vrot.lane.b32.xlu0 %v3879_v18, %s7386_s26  ;;  %v4047_v18 = vld [vmem:[%s7287_s0 + $0xb8] sm:$0x3f] }
  0xe0   :  { %v383_v25 = vpop.permute.xlu1 %382  ;;  %4744 = vmatpush3.bf16.msra.mxu1 %v5197_v27 }
  0xe1   :  { %v238_v26 = vpop.permute.xlu0 %237  ;;  %399 = vst.msk [vmem:[#allocation2 + $0x10] sm:$0x3f] %vm396_vm7, %v383_v25  ;;  %4745 = vmatprep.subr.bf16.mxu1 %v5009_v19  ;;  %v4059_v25 = vld [vmem:[%s7287_s0 + $0x39] sm:$0x3f] }
  0xe2   :  { %253 = vst.msk [vmem:[#allocation2 + $0x18] sm:$0x3f] %vm249_vm5, %v238_v26  ;;  %755 = vrot.lane.b32.xlu1 %v3914_v23, %s7387_s14  ;;  %v3808_v23 = vld [vmem:[%s7287_s0 + $0x40] sm:$0x3f] }
  0xe3   :  { %610 = vrot.lane.b32.xlu0 %v3891_v24, %s7409_s4  ;;  %v4082_v24 = vld [vmem:[%s7287_s0 + $0x32] sm:$0x3f] }
  0xe4   :  { %v458_v30 = vpop.permute.xlu1 %457  ;;  %4747 = vmatpush3.bf16.msra.mxu1 %v5220_v33 }
  0xe5   :  { %v311_v31 = vpop.permute.xlu0 %310  ;;  %474 = vst.msk [vmem:[#allocation2 + $0x10] sm:$0x3f] %vm471_vm8, %v458_v30  ;;  %4748 = vmatprep.subr.bf16.mxu1 %v5009_v19  ;;  %v4083_v30 = vld [vmem:[%s7287_s0 + $0x3a] sm:$0x3f] }
  0xe6   :  { %326 = vst.msk [vmem:[#allocation2 + $0x18] sm:$0x3f] %vm322_vm6, %v311_v31  ;;  %830 = vrot.lane.b32.xlu1 %v3926_v28, %s7390_s17  ;;  %v4071_v31 = vld [vmem:[%s7287_s0 + $0xb9] sm:$0x3f] }
  0xe7   :  { %683 = vrot.lane.b32.xlu0 %v3903_v29, %s7388_s21  ;;  %v3809_v29 = vld [vmem:[%s7287_s0 + $0x48] sm:$0x3f] }
  0xe8   :  { %v532_v35 = vpop.permute.xlu1 %531  ;;  %4750 = vmatpush3.bf16.msra.mxu1 %v5245_v39 }
  0xe9   :  { %v385_v37 = vpop.permute.xlu0 %384  ;;  %548 = vst.msk [vmem:[#allocation2 + $0x10] sm:$0x3f] %vm545_vm9, %v532_v35  ;;  %4751 = vmatprep.subr.bf16.mxu1 %v5009_v19  ;;  %v3826_v35 = vld [vmem:[%s7287_s0 + $0x41] sm:$0x3f] }
  0xea   :  { %400 = vst.msk [vmem:[#allocation2 + $0x18] sm:$0x3f] %vm396_vm7, %v385_v37  ;;  %904 = vrot.lane.b32.xlu1 %v3938_v32, %s7389_s18  ;;  %v3820_v37 = vld [vmem:[%s7287_s0 + $0xc0] sm:$0x3f] }
  0xeb   :  { %757 = vrot.lane.b32.xlu0 %v3915_v34, %s7387_s14 }
  0xec   :  { %v605_v41 = vpop.permute.xlu1 %604  ;;  %4753 = vmatpush3.bf16.msra.mxu1 %v5265_v44 }
  0xed   :  { %v460_v42 = vpop.permute.xlu0 %459  ;;  %621 = vst.msk [vmem:[#allocation2 + $0x10] sm:$0x3f] %vm7371_vm10, %v605_v41  ;;  %4754 = vmatprep.subr.bf16.mxu1 %v5009_v19  ;;  %v3838_v41 = vld [vmem:[%s7287_s0 + $0xc1] sm:$0x3f] }
  0xee   :  { %475 = vst.msk [vmem:[#allocation2 + $0x18] sm:$0x3f] %vm471_vm8, %v460_v42  ;;  %977 = vrot.lane.b32.xlu1 %v3950_v38, %s7392_s24  ;;  %v3821_v42 = vld [vmem:[%s7287_s0 + $0xc8] sm:$0x3f] }
  0xef   :  { %832 = vrot.lane.b32.xlu0 %v3927_v40, %s7390_s17 }
  0xf0   :  { %v678_v46 = vpop.permute.xlu1 %677  ;;  %4756 = vmatpush3.bf16.msra.mxu1 %v5285_v49 }
  0xf1   :  { %v534_v47 = vpop.permute.xlu0 %533  ;;  %694 = vst.msk [vmem:[#allocation2 + $0x10] sm:$0x3f] %vm7423_vm12, %v678_v46  ;;  %4430 = vmatprep.subr.mxu1 %v5015_v36  ;;  %vm7426_vm12 = vcmask 390496   ;;  %v3844_v46 = vld [vmem:[%s7287_s0 + $0x42] sm:$0x3f] }
  0xf2   :  { %549 = vst.msk [vmem:[#allocation2 + $0x18] sm:$0x3f] %vm545_vm9, %v534_v47  ;;  %1050 = vrot.lane.b32.xlu1 %v3962_v43, %s7391_s30  ;;  %v3827_v47 = vld [vmem:[%s7287_s0 + $0x49] sm:$0x3f] }
  0xf3   :  { %906 = vrot.lane.b32.xlu0 %v3939_v45, %s7389_s18 }
  0xf4   :  { %v752_v51 = vpop.permute.xlu1 %751  ;;  %4431 = vmatpush3.msk.msra.mxu1 %vm7424_vm0, %v5304_v52  ;;  %vm7427_vm0 = vcmask 324896  }
  0xf5   :  { %v607_v53 = vpop.permute.xlu0 %606  ;;  %768 = vst.msk [vmem:[#allocation2 + $0x10] sm:$0x3f] %vm7425_vm11, %v752_v51  ;;  %4775 = vmatprep.subr.bf16.mxu1 %v5009_v19  ;;  %vm7428_vm11 = vcmask 423296   ;;  %v3856_v51 = vld [vmem:[%s7287_s0 + $0x140] sm:$0x3f] }
  0xf6   :  { %622 = vst.msk [vmem:[#allocation2 + $0x18] sm:$0x3f] %vm7371_vm10, %v607_v53  ;;  %1124 = vrot.lane.b32.xlu1 %v3974_v48, %s7394_s29  ;;  %vm7429_vm10 = vcmask 357696   ;;  %v3839_v53 = vld [vmem:[%s7287_s0 + $0xc9] sm:$0x3f] }
  0xf7   :  { %979 = vrot.lane.b32.xlu0 %v3951_v50, %s7392_s24 }
  0xf8   :  { %v827_v56 = vpop.permute.xlu1 %826 }
  0xf9   :  { %v680_v52 = vpop.permute.xlu0 %679  ;;  %843 = vst.msk [vmem:[#allocation2 + $0x10] sm:$0x3f] %vm7426_vm12, %v827_v56  ;;  %vm7430_vm12 = vcmask 456096   ;;  %v3868_v56 = vld [vmem:[%s7287_s0 + $0x1c0] sm:$0x3f] }
  0xfa   :  { %695 = vst.msk [vmem:[#allocation2 + $0x18] sm:$0x3f] %vm7427_vm0, %v680_v52  ;;  %1199 = vrot.lane.b32.xlu1 %v3986_v54, %s7393_s28  ;;  %vm7431_vm0 = vcmask 390496   ;;  %v3845_v52 = vld [vmem:[%s7287_s0 + $0x4a] sm:$0x3f] }
  0xfb   :  { %1052 = vrot.lane.b32.xlu0 %v3963_v55, %s7391_s30 }
  0xfc   :  { %v901_v59 = vpop.permute.xlu1 %900 }
  0xfd   :  { %v754_v60 = vpop.permute.xlu0 %753  ;;  %917 = vst.msk [vmem:[#allocation2 + $0x10] sm:$0x3f] %vm7428_vm11, %v901_v59  ;;  %v3880_v59 = vld [vmem:[%s7287_s0 + $0x141] sm:$0x3f] }
  0xfe   :  { %769 = vst.msk [vmem:[#allocation2 + $0x18] sm:$0x3f] %vm7429_vm10, %v754_v60  ;;  %1273 = vrot.lane.b32.xlu1 %v3998_v57, %s7396_s19  ;;  %vm7432_vm10 = vcmask 488896   ;;  %v3857_v60 = vld [vmem:[%s7287_s0 + $0x148] sm:$0x3f] }
  0xff   :  { %1126 = vrot.lane.b32.xlu0 %v3975_v58, %s7394_s29 }
 0x100   :  { %v974_v63 = vpop.permute.xlu1 %973 }
 0x101   :  { %v829_v0 = vpop.permute.xlu0 %828  ;;  %990 = vst.msk [vmem:[#allocation2 + $0x10] sm:$0x3f] %vm7430_vm12, %v974_v63  ;;  %vm7433_vm12 = vcmask 521696  }
 0x102   :  { %844 = vst.msk [vmem:[#allocation2 + $0x18] sm:$0x3f] %vm7431_vm0, %v829_v0  ;;  %1346 = vrot.lane.b32.xlu1 %v4010_v61, %s7395_s12  ;;  %vm7434_vm0 = vcmask 456096   ;;  %v3892_v0 = vld [vmem:[%s7287_s0 + $0x1c1] sm:$0x3f] }
 0x103   :  { %1201 = vrot.lane.b32.xlu0 %v3987_v62, %s7393_s28 }
 0x104   :  { %v1047_v3 = vpop.permute.xlu1 %1046 }
 0x105   :  { %v903_v4 = vpop.permute.xlu0 %902  ;;  %1063 = vst.msk [vmem:[#allocation2 + $0x10] sm:$0x3f] %vm7432_vm10, %v1047_v3  ;;  %vm7435_vm10 = vcmask 554496  }
 0x106   :  { %918 = vst.msk [vmem:[#allocation2 + $0x18] sm:$0x3f] %vm7428_vm11, %v903_v4  ;;  %1419 = vrot.lane.b32.xlu1 %v4022_v1, %s7398_s23  ;;  %vm7436_vm11 = vcmask 488896   ;;  %v3869_v1 = vld [vmem:[%s7287_s0 + $0x1c8] sm:$0x3f] }
 0x107   :  { %1275 = vrot.lane.b32.xlu0 %v3999_v2, %s7396_s19 }
 0x108   :  { %v1121_v7 = vpop.permute.xlu1 %1120 }
 0x109   :  { %v976_v8 = vpop.permute.xlu0 %975  ;;  %1137 = vst.msk [vmem:[#allocation2 + $0x10] sm:$0x3f] %vm7433_vm12, %v1121_v7  ;;  %vm7437_vm12 = vcmask 587296  }
 0x10a   :  { %991 = vst.msk [vmem:[#allocation2 + $0x18] sm:$0x3f] %vm7434_vm0, %v976_v8  ;;  %1493 = vrot.lane.b32.xlu1 %v4034_v5, %s7397_s27  ;;  %vm7438_vm0 = vcmask 521696   ;;  %v3904_v5 = vld [vmem:[%s7287_s0 + $0x142] sm:$0x3f] }
 0x10b   :  { %1348 = vrot.lane.b32.xlu0 %v4011_v6, %s7395_s12  ;;  %v3881_v6 = vld [vmem:[%s7287_s0 + $0x149] sm:$0x3f] }
 0x10c   :  { %v1196_v11 = vpop.permute.xlu1 %1195 }
 0x10d   :  { %v1049_v12 = vpop.permute.xlu0 %1048  ;;  %1212 = vst.msk [vmem:[#allocation2 + $0x10] sm:$0x3f] %vm7435_vm10, %v1196_v11  ;;  %vm7439_vm10 = vcmask 620096  }
 0x10e   :  { %1064 = vst.msk [vmem:[#allocation2 + $0x18] sm:$0x3f] %vm7436_vm11, %v1049_v12  ;;  %1568 = vrot.lane.b32.xlu1 %v4046_v9, %s7400_s10  ;;  %vm7440_vm11 = vcmask 554496   ;;  %v3916_v9 = vld [vmem:[%s7287_s0 + $0x48] sm:$0x3f] }
 0x10f   :  { %1421 = vrot.lane.b32.xlu0 %v4023_v10, %s7398_s23  ;;  %v3893_v10 = vld [vmem:[%s7287_s0 + $0x1c9] sm:$0x3f] }
 0x110   :  { %v1270_v15 = vpop.permute.xlu1 %1269 }
 0x111   :  { %v1123_v16 = vpop.permute.xlu0 %1122  ;;  %1286 = vst.msk [vmem:[#allocation2 + $0x10] sm:$0x3f] %vm7437_vm12, %v1270_v15  ;;  %vm7441_vm12 = vcmask 29696  }
 0x112   :  { %1138 = vst.msk [vmem:[#allocation2 + $0x18] sm:$0x3f] %vm7438_vm0, %v1123_v16  ;;  %1642 = vrot.lane.b32.xlu1 %v4058_v13, %s7399_s8  ;;  %vm7442_vm0 = vcmask 652896   ;;  %v3928_v13 = vld [vmem:[%s7287_s0 + $0xc8] sm:$0x3f] }
 0x113   :  { %1495 = vrot.lane.b32.xlu0 %v4035_v14, %s7397_s27  ;;  %65 = vst.msk [vmem:[#allocation2 + $0x30] sm:$0x3f] %vm7441_vm12, %v3808_v23  ;;  %v3905_v14 = vld [vmem:[%s7287_s0 + $0x14a] sm:$0x3f] }
 0x114   :  { %v1343_v20 = vpop.permute.xlu1 %1342  ;;  %v3952_v23 = vld [vmem:[%s7287_s0 + $0xc9] sm:$0x3f] }
 0x115   :  { %v1198_v21 = vpop.permute.xlu0 %1197  ;;  %1359 = vst.msk [vmem:[#allocation2 + $0x10] sm:$0x3f] %vm7439_vm10, %v1343_v20  ;;  %vm7443_vm10 = vcmask 587296  }
 0x116   :  { %1213 = vst.msk [vmem:[#allocation2 + $0x18] sm:$0x3f] %vm7440_vm11, %v1198_v21  ;;  %1715 = vrot.lane.b32.xlu1 %v4070_v17, %s7402_s22  ;;  %vm7444_vm11 = vmmov %vm7441_vm12  ;;  %vm7445_vm12 = vcmask 685696   ;;  %v3940_v17 = vld [vmem:[%s7287_s0 + $0x49] sm:$0x3f] }
 0x117   :  { %1570 = vrot.lane.b32.xlu0 %v4047_v18, %s7400_s10  ;;  %66 = vst.msk [vmem:[#allocation2 + $0x38] sm:$0x3f] %vm7444_vm11, %v3809_v29  ;;  %vm7448_vm11 = vmmov %vm7445_vm12  ;;  %v3917_v18 = vld [vmem:[%s7287_s0 + $0x50] sm:$0x3f] }
 0x118   :  { %v1416_v26 = vpop.permute.xlu1 %1415  ;;  %v3941_v29 = vld [vmem:[%s7287_s0 + $0x51] sm:$0x3f] }
 0x119   :  { %v1272_v28 = vpop.permute.xlu0 %1271  ;;  %1432 = vst.msk [vmem:[#allocation2 + $0x10] sm:$0x3f] %vm7442_vm0, %v1416_v26  ;;  %vm7446_vm0 = vcmask 620096  }
 0x11a   :  { %1287 = vst.msk [vmem:[#allocation2 + $0x18] sm:$0x3f] %vm7443_vm10, %v1272_v28  ;;  %1788 = vrot.lane.b32.xlu1 %v4082_v24, %s7401_s13  ;;  %vm7447_vm10 = vcmask 652896   ;;  %v3929_v24 = vld [vmem:[%s7287_s0 + $0xd0] sm:$0x3f] }
 0x11b   :  { %1644 = vrot.lane.b32.xlu0 %v4059_v25, %s7399_s8  ;;  %v3964_v28 = vld [vmem:[%s7287_s0 + $0x4a] sm:$0x3f] }
 0x11c   :  { %v1490_v32 = vpop.permute.xlu1 %1489 }
 0x11d   :  { %v1345_v34 = vpop.permute.xlu0 %1344  ;;  %1506 = vst.msk [vmem:[#allocation2 + $0x10] sm:$0x3f] %vm7445_vm12, %v1490_v32  ;;  %vm7449_vm12 = vcmask 816896  }
 0x11e   :  { %1360 = vst.msk [vmem:[#allocation2 + $0x18] sm:$0x3f] %vm7446_vm0, %v1345_v34  ;;  %1790 = vrot.lane.b32.xlu1 %v4083_v30, %s7401_s13  ;;  %vm7450_vm0 = vmmov %vm7449_vm12  ;;  %v3976_v34 = vld [vmem:[%s7287_s0 + $0x148] sm:$0x3f] }
 0x11f   :  { %1717 = vrot.lane.b32.xlu0 %v4071_v31, %s7402_s22 }
 0x120   :  { %v1565_v38 = vpop.permute.xlu1 %1564 }
 0x121   :  { %v1418_v40 = vpop.permute.xlu0 %1417  ;;  %1581 = vst.msk [vmem:[#allocation2 + $0x10] sm:$0x3f] %vm1578_vm15, %v1565_v38 }
 0x122   :  { %1433 = vst.msk [vmem:[#allocation2 + $0x18] sm:$0x3f] %vm7447_vm10, %v1418_v40  ;;  %195 = vrot.lane.b32.xlu1 %v3826_v35, %s7403_s5  ;;  %vm7451_vm10 = vcmask 292096   ;;  %v3953_v35 = vld [vmem:[%s7287_s0 + $0xd1] sm:$0x3f] }
 0x123   :  { %122 = vrot.lane.b32.xlu0 %v3820_v37, %s7416_s11  ;;  %v3988_v40 = vld [vmem:[%s7287_s0 + $0x1c8] sm:$0x3f] }
 0x124   :  { %v1639_v43 = vpop.permute.xlu1 %1638 }
 0x125   :  { %v1492_v45 = vpop.permute.xlu0 %1491  ;;  %1655 = vst.msk [vmem:[#allocation2 + $0x10] sm:$0x3f] %vm1652_vm2, %v1639_v43 }
 0x126   :  { %1507 = vst.msk [vmem:[#allocation2 + $0x18] sm:$0x3f] %vm7448_vm11, %v1492_v45  ;;  %268 = vrot.lane.b32.xlu1 %v3838_v41, %s7405_s3  ;;  %vm7453_vm11 = vcmask 1043456   ;;  %v3965_v41 = vld [vmem:[%s7287_s0 + $0x52] sm:$0x3f] }
 0x127   :  { %124 = vrot.lane.b32.xlu0 %v3821_v42, %s7416_s11  ;;  %v4000_v45 = vld [vmem:[%s7287_s0 + $0x149] sm:$0x3f] }
 0x128   :  { %v1712_v48 = vpop.permute.xlu1 %1711 }
 0x129   :  { %v1567_v50 = vpop.permute.xlu0 %1566  ;;  %1728 = vst.msk [vmem:[#allocation2 + $0x10] sm:$0x3f] %vm1725_vm13, %v1712_v48 }
 0x12a   :  { %1582 = vst.msk [vmem:[#allocation2 + $0x18] sm:$0x3f] %vm1578_vm15, %v1567_v50  ;;  %341 = vrot.lane.b32.xlu1 %v3844_v46, %s7406_s2  ;;  %v3977_v46 = vld [vmem:[%s7287_s0 + $0x150] sm:$0x3f]  ;;  %v4012_v50 = vld [vmem:[%s7287_s0 + $0x1c9] sm:$0x3f] }
 0x12b   :  { %197 = vrot.lane.b32.xlu0 %v3827_v47, %s7403_s5 }
 0x12c   :  { %v1785_v54 = vpop.permute.xlu1 %1784 }
 0x12d   :  { %v1641_v55 = vpop.permute.xlu0 %1640  ;;  %1801 = vst.msk [vmem:[#allocation2 + $0x10] sm:$0x3f] %vm7449_vm12, %v1785_v54  ;;  %vm7454_vm12 = vcmask 324896  }
 0x12e   :  { %1656 = vst.msk [vmem:[#allocation2 + $0x18] sm:$0x3f] %vm1652_vm2, %v1641_v55  ;;  %416 = vrot.lane.b32.xlu1 %v3856_v51, %s7407_s1  ;;  %v3989_v51 = vld [vmem:[%s7287_s0 + $0x1d0] sm:$0x3f]  ;;  %v4024_v55 = vld [vmem:[%s7287_s0 + $0x14a] sm:$0x3f] }
 0x12f   :  { %270 = vrot.lane.b32.xlu0 %v3839_v53, %s7405_s3 }
 0x130   :  { %v1787_v57 = vpop.permute.xlu1 %1786 }
 0x131   :  { %v1714_v58 = vpop.permute.xlu0 %1713 }
 0x132   :  { %1729 = vst.msk [vmem:[#allocation2 + $0x18] sm:$0x3f] %vm1725_vm13, %v1714_v58  ;;  %491 = vrot.lane.b32.xlu1 %v3868_v56, %s7408_s6  ;;  %v4001_v56 = vld [vmem:[%s7287_s0 + $0x151] sm:$0x3f] }
 0x133   :  { %1802 = vst.msk [vmem:[#allocation2 + $0x18] sm:$0x3f] %vm7450_vm0, %v1787_v57  ;;  %343 = vrot.lane.b32.xlu0 %v3845_v52, %s7406_s2  ;;  %vm7455_vm0 = vmmov %vm7453_vm11  ;;  %v4036_v58 = vld [vmem:[%s7287_s0 + $0x50] sm:$0x3f] }
 0x134   :  { %v167_v61 = vpop.permute.xlu1 %166  ;;  %v2051_v63 = vld [vmem:[#allocation2 + $0x10] sm:$0x3f] }
 0x135   :  { %v93_v62 = vpop.permute.xlu0 %92  ;;  %4404 = vmatmul.mubr.msk.f32.vlgmr.msra.gmra.mrb[0].mxu0 %vm1862_vm14, %v2051_v63  ;;  %v4025_v63 = vld [vmem:[%s7287_s0 + $0x152] sm:$0x3f] }
 0x136   :  { %107 = vst.msk [vmem:[#allocation2 + $0x20] sm:$0x3f] %vm102_vm3, %v93_v62  ;;  %564 = vrot.lane.b32.xlu1 %v3880_v59, %s7386_s26  ;;  %4759 = vmatpush3.bf16.msra.mxu0 %v5180_v22  ;;  %v4013_v59 = vld [vmem:[%s7287_s0 + $0x1d1] sm:$0x3f] }
 0x137   :  { %181 = vst.msk [vmem:[#allocation2 + $0x20] sm:$0x3f] %vm176_vm4, %v167_v61  ;;  %418 = vrot.lane.b32.xlu0 %v3857_v60, %s7407_s1  ;;  %4461 = vmatprep.mubr.msk.f32.mxu0 %vm5014_vm1, %v5015_v36  ;;  %v4048_v62 = vld [vmem:[%s7287_s0 + $0xd0] sm:$0x3f] }
 0x138   :  { %v240_v2 = vpop.permute.xlu1 %239  ;;  %4760 = vmatprep.subr.bf16.mxu0 %v5009_v19 }
 0x139   :  { %v95_v3 = vpop.permute.xlu0 %94  ;;  %254 = vst.msk [vmem:[#allocation2 + $0x20] sm:$0x3f] %vm249_vm5, %v240_v2  ;;  %v4060_v2 = vld [vmem:[%s7287_s0 + $0x51] sm:$0x3f] }
 0x13a   :  { %108 = vst.msk [vmem:[#allocation2 + $0x28] sm:$0x3f] %vm102_vm3, %v95_v3  ;;  %v2143_v4 = vld [vmem:[#allocation2 + $0x18] sm:$0x3f]  ;;  %637 = vrot.lane.b32.xlu1 %v3892_v0, %s7409_s4  ;;  %4762 = vmatpush3.bf16.msra.mxu0 %v5197_v27 }
 0x13b   :  { %493 = vrot.lane.b32.xlu0 %v3869_v1, %s7408_s6  ;;  %4433 = vmatmul.mubr.msk.f32.vlgmr.msra.gmra.mrb[4].mxu1 %vm1862_vm14, %v2143_v4  ;;  %v4037_v3 = vld [vmem:[%s7287_s0 + $0x58] sm:$0x3f] }
 0x13c   :  { %v313_v7 = vpop.permute.xlu1 %312  ;;  %4777 = vmatpush3.bf16.msra.mxu1 %v5180_v22  ;;  %4763 = vmatprep.subr.bf16.mxu0 %v5009_v19 }
 0x13d   :  { %v169_v8 = vpop.permute.xlu0 %168  ;;  %327 = vst.msk [vmem:[#allocation2 + $0x20] sm:$0x3f] %vm322_vm6, %v313_v7  ;;  %4778 = vmatprep.subr.bf16.mxu1 %v5009_v19  ;;  %4490 = vmatprep.mubr.msk.f32.mxu1 %vm5014_vm1, %v5015_v36  ;;  %v4049_v7 = vld [vmem:[%s7287_s0 + $0xd8] sm:$0x3f] }
 0x13e   :  { %182 = vst.msk [vmem:[#allocation2 + $0x28] sm:$0x3f] %vm176_vm4, %v169_v8  ;;  %710 = vrot.lane.b32.xlu1 %v3904_v5, %s7388_s21  ;;  %4765 = vmatpush3.bf16.msra.mxu0 %v5220_v33 }
 0x13f   :  { %566 = vrot.lane.b32.xlu0 %v3881_v6, %s7386_s26  ;;  %4766 = vmatprep.subr.bf16.mxu0 %v5009_v19  ;;  %v4072_v6 = vld [vmem:[%s7287_s0 + $0xd1] sm:$0x3f] }
 0x140   :  { %v387_v11 = vpop.permute.xlu1 %386  ;;  %4780 = vmatpush3.bf16.msra.mxu1 %v5197_v27 }
 0x141   :  { %v242_v12 = vpop.permute.xlu0 %241  ;;  %401 = vst.msk [vmem:[#allocation2 + $0x20] sm:$0x3f] %vm396_vm7, %v387_v11  ;;  %4781 = vmatprep.subr.bf16.mxu1 %v5009_v19  ;;  %v4084_v11 = vld [vmem:[%s7287_s0 + $0x52] sm:$0x3f] }
 0x142   :  { %255 = vst.msk [vmem:[#allocation2 + $0x28] sm:$0x3f] %vm249_vm5, %v242_v12  ;;  %785 = vrot.lane.b32.xlu1 %v3916_v9, %s7387_s14  ;;  %4768 = vmatpush3.bf16.msra.mxu0 %v5245_v39  ;;  %v4061_v12 = vld [vmem:[%s7287_s0 + $0x59] sm:$0x3f] }
 0x143   :  { %639 = vrot.lane.b32.xlu0 %v3893_v10, %s7409_s4  ;;  %4769 = vmatprep.subr.bf16.mxu0 %v5009_v19  ;;  %v3810_v10 = vld [vmem:[%s7287_s0 + $0x50] sm:$0x3f] }
 0x144   :  { %v462_v15 = vpop.permute.xlu1 %461  ;;  %4783 = vmatpush3.bf16.msra.mxu1 %v5220_v33 }
 0x145   :  { %v315_v16 = vpop.permute.xlu0 %314  ;;  %476 = vst.msk [vmem:[#allocation2 + $0x20] sm:$0x3f] %vm471_vm8, %v462_v15  ;;  %4784 = vmatprep.subr.bf16.mxu1 %v5009_v19  ;;  %v3811_v15 = vld [vmem:[%s7287_s0 + $0x58] sm:$0x3f] }
 0x146   :  { %328 = vst.msk [vmem:[#allocation2 + $0x28] sm:$0x3f] %vm322_vm6, %v315_v16  ;;  %860 = vrot.lane.b32.xlu1 %v3928_v13, %s7390_s17  ;;  %4771 = vmatpush3.bf16.msra.mxu0 %v5265_v44  ;;  %v4085_v16 = vld [vmem:[%s7287_s0 + $0x5a] sm:$0x3f] }
 0x147   :  { %712 = vrot.lane.b32.xlu0 %v3905_v14, %s7388_s21  ;;  %4772 = vmatprep.subr.bf16.mxu0 %v5009_v19 }
 0x148   :  { %v536_v20 = vpop.permute.xlu1 %535  ;;  %4786 = vmatpush3.bf16.msra.mxu1 %v5245_v39 }
 0x149   :  { %v389_v21 = vpop.permute.xlu0 %388  ;;  %550 = vst.msk [vmem:[#allocation2 + $0x20] sm:$0x3f] %vm545_vm9, %v536_v20  ;;  %4787 = vmatprep.subr.bf16.mxu1 %v5009_v19 }
 0x14a   :  { %402 = vst.msk [vmem:[#allocation2 + $0x28] sm:$0x3f] %vm396_vm7, %v389_v21  ;;  %933 = vrot.lane.b32.xlu1 %v3940_v17, %s7389_s18  ;;  %4774 = vmatpush3.bf16.msra.mxu0 %v5285_v49  ;;  %v4073_v17 = vld [vmem:[%s7287_s0 + $0xd9] sm:$0x3f] }
 0x14b   :  { %787 = vrot.lane.b32.xlu0 %v3917_v18, %s7387_s14  ;;  %4459 = vmatprep.subr.mxu0 %v5015_v36  ;;  %s7452_s14 = sld [smem:[#allocation4_spill]] }
 0x14c   :  { %v609_v25 = vpop.permute.xlu1 %608  ;;  %4789 = vmatpush3.bf16.msra.mxu1 %v5265_v44 }
 0x14d   :  { %v464_v26 = vpop.permute.xlu0 %463  ;;  %623 = vst.msk [vmem:[#allocation2 + $0x20] sm:$0x3f] %vm7451_vm10, %v609_v25  ;;  %4790 = vmatprep.subr.bf16.mxu1 %v5009_v19  ;;  %vm7456_vm10 = vcmask 357696   ;;  %v3822_v25 = vld [vmem:[%s7287_s0 + $0xd0] sm:$0x3f] }
 0x14e   :  { %477 = vst.msk [vmem:[#allocation2 + $0x28] sm:$0x3f] %vm471_vm8, %v464_v26  ;;  %1006 = vrot.lane.b32.xlu1 %v3952_v23, %s7392_s24 }
 0x14f   :  { %862 = vrot.lane.b32.xlu0 %v3929_v24, %s7390_s17  ;;  %v3828_v24 = vld [vmem:[%s7287_s0 + $0x51] sm:$0x3f] }
 0x150   :  { %v682_v31 = vpop.permute.xlu1 %681  ;;  %4792 = vmatpush3.bf16.msra.mxu1 %v5285_v49 }
 0x151   :  { %v6074_v30 = vld [vmem:[%s7452_s14 + $0x60] sm:$0xf]  ;;  %v538_v32 = vpop.permute.xlu0 %537  ;;  %696 = vst.msk [vmem:[#allocation2 + $0x20] sm:$0x3f] %vm7454_vm12, %v682_v31  ;;  %4488 = vmatprep.subr.mxu1 %v5015_v36  ;;  %vm7458_vm12 = vcmask 390496   ;;  %s7548_s14 = sld [smem:[#allocation4_spill]] }
 0x152   :  { %4460 = vmatpush3.msk.msra.mxu0 %vm7453_vm11, %v6074_v30  ;;  %551 = vst.msk [vmem:[#allocation2 + $0x28] sm:$0x3f] %vm545_vm9, %v538_v32  ;;  %1079 = vrot.lane.b32.xlu1 %v3964_v28, %s7391_s30  ;;  %vm7457_vm11 = vcmask 292096   ;;  %v3823_v31 = vld [vmem:[%s7287_s0 + $0xd8] sm:$0x3f] }
 0x153   :  { %4793 = vmatprep.subr.bf16.mxu0 %v5009_v19  ;;  %935 = vrot.lane.b32.xlu0 %v3941_v29, %s7389_s18  ;;  %v3840_v29 = vld [vmem:[%s7287_s0 + $0xd1] sm:$0x3f] }
 0x154   :  { %v756_v37 = vpop.permute.xlu1 %755  ;;  %4489 = vmatpush3.msk.msra.mxu1 %vm7455_vm0, %v6074_v30  ;;  %vm7459_vm0 = vcmask 324896  }
 0x155   :  { %v611_v38 = vpop.permute.xlu0 %610  ;;  %770 = vst.msk [vmem:[#allocation2 + $0x20] sm:$0x3f] %vm7456_vm10, %v756_v37  ;;  %4811 = vmatprep.subr.bf16.mxu1 %v5009_v19  ;;  %vm7460_vm10 = vcmask 423296   ;;  %v3829_v37 = vld [vmem:[%s7287_s0 + $0x59] sm:$0x3f] }
 0x156   :  { %624 = vst.msk [vmem:[#allocation2 + $0x28] sm:$0x3f] %vm7457_vm11, %v611_v38  ;;  %1154 = vrot.lane.b32.xlu1 %v3976_v34, %s7394_s29  ;;  %vm7461_vm11 = vcmask 357696  }
 0x157   :  { %1008 = vrot.lane.b32.xlu0 %v3953_v35, %s7392_s24  ;;  %v3846_v35 = vld [vmem:[%s7287_s0 + $0x52] sm:$0x3f] }
 0x158   :  { %v831_v42 = vpop.permute.xlu1 %830 }
 0x159   :  { %v684_v43 = vpop.permute.xlu0 %683  ;;  %845 = vst.msk [vmem:[#allocation2 + $0x20] sm:$0x3f] %vm7458_vm12, %v831_v42  ;;  %vm7462_vm12 = vcmask 456096   ;;  %v3841_v42 = vld [vmem:[%s7287_s0 + $0xd9] sm:$0x3f] }
 0x15a   :  { %697 = vst.msk [vmem:[#allocation2 + $0x28] sm:$0x3f] %vm7459_vm0, %v684_v43  ;;  %1229 = vrot.lane.b32.xlu1 %v3988_v40, %s7393_s28  ;;  %vm7463_vm0 = vcmask 390496  }
 0x15b   :  { %1081 = vrot.lane.b32.xlu0 %v3965_v41, %s7391_s30  ;;  %v3858_v41 = vld [vmem:[%s7287_s0 + $0x150] sm:$0x3f] }
 0x15c   :  { %v905_v47 = vpop.permute.xlu1 %904 }
 0x15d   :  { %v758_v48 = vpop.permute.xlu0 %757  ;;  %919 = vst.msk [vmem:[#allocation2 + $0x20] sm:$0x3f] %vm7460_vm10, %v905_v47  ;;  %vm7464_vm10 = vcmask 488896   ;;  %v3847_v47 = vld [vmem:[%s7287_s0 + $0x5a] sm:$0x3f] }
 0x15e   :  { %771 = vst.msk [vmem:[#allocation2 + $0x28] sm:$0x3f] %vm7461_vm11, %v758_v48  ;;  %1302 = vrot.lane.b32.xlu1 %v4000_v45, %s7396_s19  ;;  %vm7465_vm11 = vcmask 423296  }
 0x15f   :  { %1156 = vrot.lane.b32.xlu0 %v3977_v46, %s7394_s29  ;;  %v3870_v46 = vld [vmem:[%s7287_s0 + $0x1d0] sm:$0x3f] }
 0x160   :  { %v978_v53 = vpop.permute.xlu1 %977 }
 0x161   :  { %v833_v54 = vpop.permute.xlu0 %832  ;;  %992 = vst.msk [vmem:[#allocation2 + $0x20] sm:$0x3f] %vm7462_vm12, %v978_v53  ;;  %vm7466_vm12 = vcmask 521696   ;;  %v3859_v53 = vld [vmem:[%s7287_s0 + $0x158] sm:$0x3f] }
 0x162   :  { %846 = vst.msk [vmem:[#allocation2 + $0x28] sm:$0x3f] %vm7463_vm0, %v833_v54  ;;  %1375 = vrot.lane.b32.xlu1 %v4012_v50, %s7395_s12  ;;  %vm7467_vm0 = vcmask 456096  }
 0x163   :  { %1231 = vrot.lane.b32.xlu0 %v3989_v51, %s7393_s28  ;;  %v3882_v51 = vld [vmem:[%s7287_s0 + $0x151] sm:$0x3f] }
 0x164   :  { %v1051_v52 = vpop.permute.xlu1 %1050 }
 0x165   :  { %v907_v57 = vpop.permute.xlu0 %906  ;;  %1065 = vst.msk [vmem:[#allocation2 + $0x20] sm:$0x3f] %vm7464_vm10, %v1051_v52  ;;  %vm7468_vm10 = vcmask 554496   ;;  %v3894_v52 = vld [vmem:[%s7287_s0 + $0x1d1] sm:$0x3f] }
 0x166   :  { %920 = vst.msk [vmem:[#allocation2 + $0x28] sm:$0x3f] %vm7465_vm11, %v907_v57  ;;  %1448 = vrot.lane.b32.xlu1 %v4024_v55, %s7398_s23  ;;  %vm7469_vm11 = vcmask 488896   ;;  %v3871_v57 = vld [vmem:[%s7287_s0 + $0x1d8] sm:$0x3f] }
 0x167   :  { %1304 = vrot.lane.b32.xlu0 %v4001_v56, %s7396_s19 }
 0x168   :  { %v1125_v60 = vpop.permute.xlu1 %1124 }
 0x169   :  { %v980_v61 = vpop.permute.xlu0 %979  ;;  %1139 = vst.msk [vmem:[#allocation2 + $0x20] sm:$0x3f] %vm7466_vm12, %v1125_v60  ;;  %vm7470_vm12 = vcmask 587296  }
 0x16a   :  { %993 = vst.msk [vmem:[#allocation2 + $0x28] sm:$0x3f] %vm7467_vm0, %v980_v61  ;;  %1523 = vrot.lane.b32.xlu1 %v4036_v58, %s7397_s27  ;;  %vm7471_vm0 = vcmask 521696   ;;  %v3906_v61 = vld [vmem:[%s7287_s0 + $0x152] sm:$0x3f] }
 0x16b   :  { %1377 = vrot.lane.b32.xlu0 %v4013_v59, %s7395_s12 }
 0x16c   :  { %v1200_v0 = vpop.permute.xlu1 %1199 }
 0x16d   :  { %v1053_v1 = vpop.permute.xlu0 %1052  ;;  %1214 = vst.msk [vmem:[#allocation2 + $0x20] sm:$0x3f] %vm7468_vm10, %v1200_v0  ;;  %vm7472_vm10 = vcmask 620096  }
 0x16e   :  { %1066 = vst.msk [vmem:[#allocation2 + $0x28] sm:$0x3f] %vm7469_vm11, %v1053_v1  ;;  %1598 = vrot.lane.b32.xlu1 %v4048_v62, %s7400_s10  ;;  %vm7473_vm11 = vcmask 554496   ;;  %v3883_v62 = vld [vmem:[%s7287_s0 + $0x159] sm:$0x3f] }
 0x16f   :  { %1450 = vrot.lane.b32.xlu0 %v4025_v63, %s7398_s23  ;;  %v3918_v1 = vld [vmem:[%s7287_s0 + $0x58] sm:$0x3f] }
 0x170   :  { %v1274_v4 = vpop.permute.xlu1 %1273 }
 0x171   :  { %v1127_v5 = vpop.permute.xlu0 %1126  ;;  %1288 = vst.msk [vmem:[#allocation2 + $0x20] sm:$0x3f] %vm7470_vm12, %v1274_v4  ;;  %vm7474_vm12 = vcmask 29696  }
 0x172   :  { %1140 = vst.msk [vmem:[#allocation2 + $0x28] sm:$0x3f] %vm7471_vm0, %v1127_v5  ;;  %1671 = vrot.lane.b32.xlu1 %v4060_v2, %s7399_s8  ;;  %vm7475_vm0 = vcmask 652896   ;;  %v3895_v2 = vld [vmem:[%s7287_s0 + $0x1d9] sm:$0x3f] }
 0x173   :  { %1525 = vrot.lane.b32.xlu0 %v4037_v3, %s7397_s27  ;;  %67 = vst.msk [vmem:[#allocation2 + $0x40] sm:$0x3f] %vm7474_vm12, %v3810_v10  ;;  %v3930_v5 = vld [vmem:[%s7287_s0 + $0xd8] sm:$0x3f]  ;;  %v3919_v10 = vld [vmem:[%s7287_s0 + $0x60] sm:$0x3f] }
 0x174   :  { %v1347_v8 = vpop.permute.xlu1 %1346 }
 0x175   :  { %v1202_v9 = vpop.permute.xlu0 %1201  ;;  %1361 = vst.msk [vmem:[#allocation2 + $0x20] sm:$0x3f] %vm7472_vm10, %v1347_v8  ;;  %vm7476_vm10 = vcmask 587296  }
 0x176   :  { %1215 = vst.msk [vmem:[#allocation2 + $0x28] sm:$0x3f] %vm7473_vm11, %v1202_v9  ;;  %1744 = vrot.lane.b32.xlu1 %v4072_v6, %s7402_s22  ;;  %vm7477_vm11 = vmmov %vm7474_vm12  ;;  %vm7478_vm12 = vcmask 685696   ;;  %v3907_v6 = vld [vmem:[%s7287_s0 + $0x15a] sm:$0x3f] }
 0x177   :  { %1600 = vrot.lane.b32.xlu0 %v4049_v7, %s7400_s10  ;;  %68 = vst.msk [vmem:[#allocation2 + $0x48] sm:$0x3f] %vm7477_vm11, %v3811_v15  ;;  %vm7481_vm11 = vmmov %vm7478_vm12  ;;  %v3942_v9 = vld [vmem:[%s7287_s0 + $0x59] sm:$0x3f] }
 0x178   :  { %v1420_v13 = vpop.permute.xlu1 %1419 }
 0x179   :  { %v1276_v14 = vpop.permute.xlu0 %1275  ;;  %1434 = vst.msk [vmem:[#allocation2 + $0x20] sm:$0x3f] %vm7475_vm0, %v1420_v13  ;;  %vm7479_vm0 = vcmask 620096   ;;  %v3954_v13 = vld [vmem:[%s7287_s0 + $0xd9] sm:$0x3f] }
 0x17a   :  { %1289 = vst.msk [vmem:[#allocation2 + $0x28] sm:$0x3f] %vm7476_vm10, %v1276_v14  ;;  %1817 = vrot.lane.b32.xlu1 %v4084_v11, %s7401_s13  ;;  %vm7480_vm10 = vcmask 652896   ;;  %v3931_v14 = vld [vmem:[%s7287_s0 + $0xe0] sm:$0x3f] }
 0x17b   :  { %1673 = vrot.lane.b32.xlu0 %v4061_v12, %s7399_s8 }
 0x17c   :  { %v1494_v18 = vpop.permute.xlu1 %1493 }
 0x17d   :  { %v1349_v20 = vpop.permute.xlu0 %1348  ;;  %1508 = vst.msk [vmem:[#allocation2 + $0x20] sm:$0x3f] %vm7478_vm12, %v1494_v18  ;;  %vm7482_vm12 = vcmask 816896  }
 0x17e   :  { %1362 = vst.msk [vmem:[#allocation2 + $0x28] sm:$0x3f] %vm7479_vm0, %v1349_v20  ;;  %v6204_v21 = vpop.f32.mrb[0].mxu1  ;;  %1819 = vrot.lane.b32.xlu1 %v4085_v16, %s7401_s13  ;;  %vm7483_vm0 = vmmov %vm7482_vm12  ;;  %v3966_v20 = vld [vmem:[%s7287_s0 + $0x5a] sm:$0x3f] }
 0x17f   :  { %1746 = vrot.lane.b32.xlu0 %v4073_v17, %s7402_s22  ;;  %v4347_v23 = vpop.f32.mrb[1].mxu1 }
 0x180   :  { %v1569_v26 = vpop.permute.xlu1 %1568  ;;  %v3943_v23 = vld [vmem:[%s7287_s0 + $0x61] sm:$0x3f] }
 0x181   :  { %v1422_v28 = vpop.permute.xlu0 %1421  ;;  %1583 = vst.msk [vmem:[#allocation2 + $0x20] sm:$0x3f] %vm1578_vm15, %v1569_v26  ;;  %v3978_v26 = vld [vmem:[%s7287_s0 + $0x158] sm:$0x3f] }
 0x182   :  { %1435 = vst.msk [vmem:[#allocation2 + $0x28] sm:$0x3f] %vm7480_vm10, %v1422_v28  ;;  %199 = vrot.lane.b32.xlu1 %v3828_v24, %s7403_s5  ;;  %vm7485_vm10 = vcmask 292096   ;;  %v3955_v28 = vld [vmem:[%s7287_s0 + $0xe1] sm:$0x3f] }
 0x183   :  { %126 = vrot.lane.b32.xlu0 %v3822_v25, %s7416_s11 }
 0x184   :  { %v1643_v32 = vpop.permute.xlu1 %1642 }
 0x185   :  { %v1496_v34 = vpop.permute.xlu0 %1495  ;;  %1657 = vst.msk [vmem:[#allocation2 + $0x20] sm:$0x3f] %vm1652_vm2, %v1643_v32  ;;  %v3990_v32 = vld [vmem:[%s7287_s0 + $0x1d8] sm:$0x3f] }
 0x186   :  { %1509 = vst.msk [vmem:[#allocation2 + $0x28] sm:$0x3f] %vm7481_vm11, %v1496_v34  ;;  %272 = vrot.lane.b32.xlu1 %v3840_v29, %s7405_s3  ;;  %vm7486_vm11 = vcmask 1043456   ;;  %v3967_v34 = vld [vmem:[%s7287_s0 + $0x62] sm:$0x3f] }
 0x187   :  { %128 = vrot.lane.b32.xlu0 %v3823_v31, %s7416_s11 }
 0x188   :  { %v1716_v38 = vpop.permute.xlu1 %1715 }
 0x189   :  { %v1571_v40 = vpop.permute.xlu0 %1570  ;;  %1730 = vst.msk [vmem:[#allocation2 + $0x20] sm:$0x3f] %vm1725_vm13, %v1716_v38  ;;  %v4002_v38 = vld [vmem:[%s7287_s0 + $0x159] sm:$0x3f] }
 0x18a   :  { %1584 = vst.msk [vmem:[#allocation2 + $0x28] sm:$0x3f] %vm1578_vm15, %v1571_v40  ;;  %345 = vrot.lane.b32.xlu1 %v3846_v35, %s7406_s2  ;;  %v3979_v40 = vld [vmem:[%s7287_s0 + $0x160] sm:$0x3f] }
 0x18b   :  { %201 = vrot.lane.b32.xlu0 %v3829_v37, %s7403_s5 }
 0x18c   :  { %v1789_v43 = vpop.permute.xlu1 %1788 }
 0x18d   :  { %v1645_v45 = vpop.permute.xlu0 %1644  ;;  %1803 = vst.msk [vmem:[#allocation2 + $0x20] sm:$0x3f] %vm7482_vm12, %v1789_v43  ;;  %vm7487_vm12 = vcmask 324896   ;;  %v4014_v43 = vld [vmem:[%s7287_s0 + $0x1d9] sm:$0x3f] }
 0x18e   :  { %1658 = vst.msk [vmem:[#allocation2 + $0x28] sm:$0x3f] %vm1652_vm2, %v1645_v45  ;;  %420 = vrot.lane.b32.xlu1 %v3858_v41, %s7407_s1  ;;  %v3991_v45 = vld [vmem:[%s7287_s0 + $0x1e0] sm:$0x3f] }
 0x18f   :  { %274 = vrot.lane.b32.xlu0 %v3841_v42, %s7405_s3 }
 0x190   :  { %v1791_v48 = vpop.permute.xlu1 %1790 }
 0x191   :  { %v1718_v50 = vpop.permute.xlu0 %1717 }
 0x192   :  { %1731 = vst.msk [vmem:[#allocation2 + $0x28] sm:$0x3f] %vm1725_vm13, %v1718_v50  ;;  %495 = vrot.lane.b32.xlu1 %v3870_v46, %s7408_s6  ;;  %v4003_v50 = vld [vmem:[%s7287_s0 + $0x161] sm:$0x3f] }
 0x193   :  { %1804 = vst.msk [vmem:[#allocation2 + $0x28] sm:$0x3f] %vm7483_vm0, %v1791_v48  ;;  %347 = vrot.lane.b32.xlu0 %v3847_v47, %s7406_s2  ;;  %vm7488_vm0 = vmmov %vm7486_vm11  ;;  %v4026_v48 = vld [vmem:[%s7287_s0 + $0x15a] sm:$0x3f] }
 0x194   :  { %v196_v54 = vpop.permute.xlu1 %195  ;;  %v2235_v56 = vld [vmem:[#allocation2 + $0x20] sm:$0x3f] }
 0x195   :  { %v123_v55 = vpop.permute.xlu0 %122  ;;  %4462 = vmatmul.mubr.msk.f32.vlgmr.msra.gmra.mrb[2].mxu0 %vm1862_vm14, %v2235_v56 }
 0x196   :  { %140 = vst.msk [vmem:[#allocation2 + $0x30] sm:$0x3f] %vm102_vm3, %v123_v55  ;;  %568 = vrot.lane.b32.xlu1 %v3882_v51, %s7386_s26  ;;  %4795 = vmatpush3.bf16.msra.mxu0 %v5180_v22  ;;  %v4015_v55 = vld [vmem:[%s7287_s0 + $0x1e1] sm:$0x3f] }
 0x197   :  { %213 = vst.msk [vmem:[#allocation2 + $0x30] sm:$0x3f] %vm176_vm4, %v196_v54  ;;  %422 = vrot.lane.b32.xlu0 %v3859_v53, %s7407_s1  ;;  %4519 = vmatprep.mubr.msk.f32.mxu0 %vm5014_vm1, %v5015_v36  ;;  %v4038_v54 = vld [vmem:[%s7287_s0 + $0x60] sm:$0x3f] }
 0x198   :  { %v269_v58 = vpop.permute.xlu1 %268  ;;  %4796 = vmatprep.subr.bf16.mxu0 %v5009_v19 }
 0x199   :  { %v125_v59 = vpop.permute.xlu0 %124  ;;  %286 = vst.msk [vmem:[#allocation2 + $0x30] sm:$0x3f] %vm249_vm5, %v269_v58  ;;  %v4027_v58 = vld [vmem:[%s7287_s0 + $0x162] sm:$0x3f] }
 0x19a   :  { %141 = vst.msk [vmem:[#allocation2 + $0x38] sm:$0x3f] %vm102_vm3, %v125_v59  ;;  %v2327_v60 = vld [vmem:[#allocation2 + $0x28] sm:$0x3f]  ;;  %641 = vrot.lane.b32.xlu1 %v3894_v52, %s7409_s4  ;;  %4798 = vmatpush3.bf16.msra.mxu0 %v5197_v27 }
 0x19b   :  { %497 = vrot.lane.b32.xlu0 %v3871_v57, %s7408_s6  ;;  %4491 = vmatmul.mubr.msk.f32.vlgmr.msra.gmra.mrb[6].mxu1 %vm1862_vm14, %v2327_v60  ;;  %v4050_v57 = vld [vmem:[%s7287_s0 + $0xe0] sm:$0x3f] }
 0x19c   :  { %v342_v63 = vpop.permute.xlu1 %341  ;;  %4813 = vmatpush3.bf16.msra.mxu1 %v5180_v22  ;;  %4799 = vmatprep.subr.bf16.mxu0 %v5009_v19 }
 0x19d   :  { %v198_v0 = vpop.permute.xlu0 %197  ;;  %359 = vst.msk [vmem:[#allocation2 + $0x30] sm:$0x3f] %vm322_vm6, %v342_v63  ;;  %4814 = vmatprep.subr.bf16.mxu1 %v5009_v19  ;;  %4548 = vmatprep.mubr.msk.f32.mxu1 %vm5014_vm1, %v5015_v36 }
 0x19e   :  { %214 = vst.msk [vmem:[#allocation2 + $0x38] sm:$0x3f] %vm176_vm4, %v198_v0  ;;  %714 = vrot.lane.b32.xlu1 %v3906_v61, %s7388_s21  ;;  %4801 = vmatpush3.bf16.msra.mxu0 %v5220_v33  ;;  %v4062_v61 = vld [vmem:[%s7287_s0 + $0x61] sm:$0x3f] }
 0x19f   :  { %570 = vrot.lane.b32.xlu0 %v3883_v62, %s7386_s26  ;;  %4802 = vmatprep.subr.bf16.mxu0 %v5009_v19  ;;  %v4039_v62 = vld [vmem:[%s7287_s0 + $0x68] sm:$0x3f] }
 0x1a0   :  { %v417_v3 = vpop.permute.xlu1 %416  ;;  %4816 = vmatpush3.bf16.msra.mxu1 %v5197_v27 }
 0x1a1   :  { %v271_v4 = vpop.permute.xlu0 %270  ;;  %434 = vst.msk [vmem:[#allocation2 + $0x30] sm:$0x3f] %vm396_vm7, %v417_v3  ;;  %4817 = vmatprep.subr.bf16.mxu1 %v5009_v19  ;;  %v4051_v3 = vld [vmem:[%s7287_s0 + $0xe8] sm:$0x3f] }
 0x1a2   :  { %287 = vst.msk [vmem:[#allocation2 + $0x38] sm:$0x3f] %vm249_vm5, %v271_v4  ;;  %789 = vrot.lane.b32.xlu1 %v3918_v1, %s7484_s7  ;;  %4804 = vmatpush3.bf16.msra.mxu0 %v5245_v39  ;;  %v3812_v1 = vld [vmem:[%s7287_s0 + $0x60] sm:$0x3f] }
 0x1a3   :  { %643 = vrot.lane.b32.xlu0 %v3895_v2, %s7409_s4  ;;  %4805 = vmatprep.subr.bf16.mxu0 %v5009_v19  ;;  %v4074_v2 = vld [vmem:[%s7287_s0 + $0xe1] sm:$0x3f] }
 0x1a4   :  { %v492_v7 = vpop.permute.xlu1 %491  ;;  %4819 = vmatpush3.bf16.msra.mxu1 %v5220_v33 }
 0x1a5   :  { %v344_v8 = vpop.permute.xlu0 %343  ;;  %509 = vst.msk [vmem:[#allocation2 + $0x30] sm:$0x3f] %vm471_vm8, %v492_v7  ;;  %4820 = vmatprep.subr.bf16.mxu1 %v5009_v19  ;;  %v4063_v7 = vld [vmem:[%s7287_s0 + $0x69] sm:$0x3f] }
 0x1a6   :  { %360 = vst.msk [vmem:[#allocation2 + $0x38] sm:$0x3f] %vm322_vm6, %v344_v8  ;;  %864 = vrot.lane.b32.xlu1 %v3930_v5, %s7390_s17  ;;  %4807 = vmatpush3.bf16.msra.mxu0 %v5265_v44 }
 0x1a7   :  { %716 = vrot.lane.b32.xlu0 %v3907_v6, %s7388_s21  ;;  %4808 = vmatprep.subr.bf16.mxu0 %v5009_v19  ;;  %v4086_v6 = vld [vmem:[%s7287_s0 + $0x62] sm:$0x3f] }
 0x1a8   :  { %v565_v11 = vpop.permute.xlu1 %564  ;;  %4822 = vmatpush3.bf16.msra.mxu1 %v5245_v39 }
 0x1a9   :  { %v419_v12 = vpop.permute.xlu0 %418  ;;  %582 = vst.msk [vmem:[#allocation2 + $0x30] sm:$0x3f] %vm545_vm9, %v565_v11  ;;  %4823 = vmatprep.subr.bf16.mxu1 %v5009_v19  ;;  %v3824_v11 = vld [vmem:[%s7287_s0 + $0xe0] sm:$0x3f] }
 0x1aa   :  { %435 = vst.msk [vmem:[#allocation2 + $0x38] sm:$0x3f] %vm396_vm7, %v419_v12  ;;  %937 = vrot.lane.b32.xlu1 %v3942_v9, %s7389_s18  ;;  %4810 = vmatpush3.bf16.msra.mxu0 %v5285_v49  ;;  %v4075_v12 = vld [vmem:[%s7287_s0 + $0xe9] sm:$0x3f] }
 0x1ab   :  { %791 = vrot.lane.b32.xlu0 %v3919_v10, %s7484_s7  ;;  %4517 = vmatprep.subr.mxu0 %v5015_v36  ;;  %v3813_v10 = vld [vmem:[%s7287_s0 + $0x68] sm:$0x3f] }
 0x1ac   :  { %v638_v15 = vpop.permute.xlu1 %637  ;;  %4825 = vmatpush3.bf16.msra.mxu1 %v5265_v44 }
 0x1ad   :  { %v494_v16 = vpop.permute.xlu0 %493  ;;  %655 = vst.msk [vmem:[#allocation2 + $0x30] sm:$0x3f] %vm7485_vm10, %v638_v15  ;;  %4826 = vmatprep.subr.bf16.mxu1 %v5009_v19  ;;  %vm7489_vm10 = vcmask 357696   ;;  %v3830_v15 = vld [vmem:[%s7287_s0 + $0x61] sm:$0x3f] }
 0x1ae   :  { %510 = vst.msk [vmem:[#allocation2 + $0x38] sm:$0x3f] %vm471_vm8, %v494_v16  ;;  %v6354_v17 = vpop.f32.mrb[2].mxu1  ;;  %1010 = vrot.lane.b32.xlu1 %v3954_v13, %s7392_s24  ;;  %4518 = vmatpush3.msk.msra.mxu0 %vm7486_vm11, %v6074_v30  ;;  %vm7490_vm11 = vcmask 292096   ;;  %v4087_v16 = vld [vmem:[%s7287_s0 + $0x6a] sm:$0x3f] }
 0x1af   :  { %866 = vrot.lane.b32.xlu0 %v3931_v14, %s7390_s17  ;;  %v4376_v18 = vpop.f32.mrb[3].mxu1  ;;  %4829 = vmatprep.subr.bf16.mxu0 %v5009_v19 }
 0x1b0   :  { %v711_v24 = vpop.permute.xlu1 %710  ;;  %4828 = vmatpush3.bf16.msra.mxu1 %v5285_v49 }
 0x1b1   :  { %v567_v25 = vpop.permute.xlu0 %566  ;;  %728 = vst.msk [vmem:[#allocation2 + $0x30] sm:$0x3f] %vm7487_vm12, %v711_v24  ;;  %4546 = vmatprep.subr.mxu1 %v5015_v36  ;;  %vm7491_vm12 = vcmask 390496   ;;  %v3825_v24 = vld [vmem:[%s7287_s0 + $0xe8] sm:$0x3f] }
 0x1b2   :  { %583 = vst.msk [vmem:[#allocation2 + $0x38] sm:$0x3f] %vm545_vm9, %v567_v25  ;;  %1083 = vrot.lane.b32.xlu1 %v3966_v20, %s7391_s30 }
 0x1b3   :  { %939 = vrot.lane.b32.xlu0 %v3943_v23, %s7389_s18  ;;  %v3842_v23 = vld [vmem:[%s7287_s0 + $0xe1] sm:$0x3f] }
 0x1b4   :  { %v786_v29 = vpop.permute.xlu1 %785  ;;  %4547 = vmatpush3.msk.msra.mxu1 %vm7488_vm0, %v6074_v30  ;;  %vm7492_vm0 = vcmask 324896  }
 0x1b5   :  { %v640_v31 = vpop.permute.xlu0 %639  ;;  %803 = vst.msk [vmem:[#allocation2 + $0x30] sm:$0x3f] %vm7489_vm10, %v786_v29  ;;  %4847 = vmatprep.subr.bf16.mxu1 %v5009_v19  ;;  %vm7493_vm10 = vcmask 423296   ;;  %v3831_v29 = vld [vmem:[%s7287_s0 + $0x69] sm:$0x3f] }
 0x1b6   :  { %656 = vst.msk [vmem:[#allocation2 + $0x38] sm:$0x3f] %vm7490_vm11, %v640_v31  ;;  %1158 = vrot.lane.b32.xlu1 %v3978_v26, %s7394_s29  ;;  %vm7494_vm11 = vcmask 357696  }
 0x1b7   :  { %1012 = vrot.lane.b32.xlu0 %v3955_v28, %s7392_s24  ;;  %v3848_v28 = vld [vmem:[%s7287_s0 + $0x62] sm:$0x3f] }
 0x1b8   :  { %v861_v35 = vpop.permute.xlu1 %860 }
 0x1b9   :  { %v713_v37 = vpop.permute.xlu0 %712  ;;  %878 = vst.msk [vmem:[#allocation2 + $0x30] sm:$0x3f] %vm7491_vm12, %v861_v35  ;;  %vm7495_vm12 = vcmask 456096   ;;  %v3843_v35 = vld [vmem:[%s7287_s0 + $0xe9] sm:$0x3f] }
 0x1ba   :  { %729 = vst.msk [vmem:[#allocation2 + $0x38] sm:$0x3f] %vm7492_vm0, %v713_v37  ;;  %1233 = vrot.lane.b32.xlu1 %v3990_v32, %s7393_s28  ;;  %vm7496_vm0 = vcmask 390496  }
 0x1bb   :  { %1085 = vrot.lane.b32.xlu0 %v3967_v34, %s7391_s30  ;;  %v3860_v34 = vld [vmem:[%s7287_s0 + $0x160] sm:$0x3f] }
 0x1bc   :  { %v934_v41 = vpop.permute.xlu1 %933 }
 0x1bd   :  { %v788_v42 = vpop.permute.xlu0 %787  ;;  %951 = vst.msk [vmem:[#allocation2 + $0x30] sm:$0x3f] %vm7493_vm10, %v934_v41  ;;  %vm7497_vm10 = vcmask 488896   ;;  %v3849_v41 = vld [vmem:[%s7287_s0 + $0x6a] sm:$0x3f] }
 0x1be   :  { %804 = vst.msk [vmem:[#allocation2 + $0x38] sm:$0x3f] %vm7494_vm11, %v788_v42  ;;  %1306 = vrot.lane.b32.xlu1 %v4002_v38, %s7396_s19  ;;  %vm7498_vm11 = vcmask 423296  }
 0x1bf   :  { %1160 = vrot.lane.b32.xlu0 %v3979_v40, %s7394_s29  ;;  %v3872_v40 = vld [vmem:[%s7287_s0 + $0x1e0] sm:$0x3f] }
 0x1c0   :  { %v1007_v46 = vpop.permute.xlu1 %1006 }
 0x1c1   :  { %v863_v47 = vpop.permute.xlu0 %862  ;;  %1024 = vst.msk [vmem:[#allocation2 + $0x30] sm:$0x3f] %vm7495_vm12, %v1007_v46  ;;  %vm7499_vm12 = vcmask 521696   ;;  %v3861_v46 = vld [vmem:[%s7287_s0 + $0x168] sm:$0x3f] }
 0x1c2   :  { %879 = vst.msk [vmem:[#allocation2 + $0x38] sm:$0x3f] %vm7496_vm0, %v863_v47  ;;  %1379 = vrot.lane.b32.xlu1 %v4014_v43, %s7395_s12  ;;  %vm7500_vm0 = vcmask 456096  }
 0x1c3   :  { %1235 = vrot.lane.b32.xlu0 %v3991_v45, %s7393_s28  ;;  %v3884_v45 = vld [vmem:[%s7287_s0 + $0x161] sm:$0x3f] }
 0x1c4   :  { %v1080_v51 = vpop.permute.xlu1 %1079 }
 0x1c5   :  { %v936_v53 = vpop.permute.xlu0 %935  ;;  %1097 = vst.msk [vmem:[#allocation2 + $0x30] sm:$0x3f] %vm7497_vm10, %v1080_v51  ;;  %vm7501_vm10 = vcmask 554496   ;;  %v3896_v51 = vld [vmem:[%s7287_s0 + $0x1e1] sm:$0x3f] }
 0x1c6   :  { %952 = vst.msk [vmem:[#allocation2 + $0x38] sm:$0x3f] %vm7498_vm11, %v936_v53  ;;  %1452 = vrot.lane.b32.xlu1 %v4026_v48, %s7398_s23  ;;  %vm7502_vm11 = vcmask 488896   ;;  %v3873_v53 = vld [vmem:[%s7287_s0 + $0x1e8] sm:$0x3f] }
 0x1c7   :  { %1308 = vrot.lane.b32.xlu0 %v4003_v50, %s7396_s19 }
 0x1c8   :  { %v1155_v56 = vpop.permute.xlu1 %1154 }
 0x1c9   :  { %v1009_v52 = vpop.permute.xlu0 %1008  ;;  %1172 = vst.msk [vmem:[#allocation2 + $0x30] sm:$0x3f] %vm7499_vm12, %v1155_v56  ;;  %vm7503_vm12 = vcmask 587296  }
 0x1ca   :  { %1025 = vst.msk [vmem:[#allocation2 + $0x38] sm:$0x3f] %vm7500_vm0, %v1009_v52  ;;  %1527 = vrot.lane.b32.xlu1 %v4038_v54, %s7397_s27  ;;  %vm7504_vm0 = vcmask 521696   ;;  %v3908_v52 = vld [vmem:[%s7287_s0 + $0x162] sm:$0x3f] }
 0x1cb   :  { %1381 = vrot.lane.b32.xlu0 %v4015_v55, %s7395_s12 }
 0x1cc   :  { %v1230_v59 = vpop.permute.xlu1 %1229 }
 0x1cd   :  { %v1082_v60 = vpop.permute.xlu0 %1081  ;;  %1247 = vst.msk [vmem:[#allocation2 + $0x30] sm:$0x3f] %vm7501_vm10, %v1230_v59  ;;  %vm7505_vm10 = vcmask 29696  }
 0x1ce   :  { %1098 = vst.msk [vmem:[#allocation2 + $0x38] sm:$0x3f] %vm7502_vm11, %v1082_v60  ;;  %1602 = vrot.lane.b32.xlu1 %v4050_v57, %s7400_s10  ;;  %vm7506_vm11 = vcmask 620096   ;;  %v3885_v57 = vld [vmem:[%s7287_s0 + $0x169] sm:$0x3f] }
 0x1cf   :  { %1454 = vrot.lane.b32.xlu0 %v4027_v58, %s7398_s23  ;;  %69 = vst.msk [vmem:[#allocation2 + $0x50] sm:$0x3f] %vm7505_vm10, %v3812_v1  ;;  %vm7509_vm10 = vcmask 587296   ;;  %v3920_v60 = vld [vmem:[%s7287_s0 + $0x68] sm:$0x3f] }
 0x1d0   :  { %v1303_v63 = vpop.permute.xlu1 %1302  ;;  %v3909_v1 = vld [vmem:[%s7287_s0 + $0x16a] sm:$0x3f] }
 0x1d1   :  { %v1157_v0 = vpop.permute.xlu0 %1156  ;;  %1320 = vst.msk [vmem:[#allocation2 + $0x30] sm:$0x3f] %vm7503_vm12, %v1303_v63  ;;  %vm7507_vm12 = vcmask 554496  }
 0x1d2   :  { %1173 = vst.msk [vmem:[#allocation2 + $0x38] sm:$0x3f] %vm7504_vm0, %v1157_v0  ;;  %1675 = vrot.lane.b32.xlu1 %v4062_v61, %s7399_s8  ;;  %vm7508_vm0 = vcmask 652896   ;;  %v3897_v61 = vld [vmem:[%s7287_s0 + $0x1e9] sm:$0x3f] }
 0x1d3   :  { %1529 = vrot.lane.b32.xlu0 %v4039_v62, %s7397_s27  ;;  %v3932_v0 = vld [vmem:[%s7287_s0 + $0xe8] sm:$0x3f] }
 0x1d4   :  { %v1376_v4 = vpop.permute.xlu1 %1375 }
 0x1d5   :  { %v1232_v5 = vpop.permute.xlu0 %1231  ;;  %1393 = vst.msk [vmem:[#allocation2 + $0x30] sm:$0x3f] %vm7506_vm11, %v1376_v4  ;;  %vm7510_vm11 = vcmask 29696   ;;  %v3944_v4 = vld [vmem:[%s7287_s0 + $0x69] sm:$0x3f] }
 0x1d6   :  { %1248 = vst.msk [vmem:[#allocation2 + $0x38] sm:$0x3f] %vm7507_vm12, %v1232_v5  ;;  %1748 = vrot.lane.b32.xlu1 %v4074_v2, %s7402_s22  ;;  %vm7511_vm12 = vcmask 685696   ;;  %v3921_v5 = vld [vmem:[%s7287_s0 + $0x70] sm:$0x3f] }
 0x1d7   :  { %1604 = vrot.lane.b32.xlu0 %v4051_v3, %s7400_s10  ;;  %70 = vst.msk [vmem:[#allocation2 + $0x58] sm:$0x3f] %vm7510_vm11, %v3813_v10  ;;  %vm7514_vm11 = vmmov %vm7511_vm12  ;;  %v3956_v10 = vld [vmem:[%s7287_s0 + $0xe9] sm:$0x3f] }
 0x1d8   :  { %v1449_v8 = vpop.permute.xlu1 %1448 }
 0x1d9   :  { %v1305_v9 = vpop.permute.xlu0 %1304  ;;  %1466 = vst.msk [vmem:[#allocation2 + $0x30] sm:$0x3f] %vm7508_vm0, %v1449_v8  ;;  %vm7512_vm0 = vcmask 620096  }
 0x1da   :  { %1321 = vst.msk [vmem:[#allocation2 + $0x38] sm:$0x3f] %vm7509_vm10, %v1305_v9  ;;  %1821 = vrot.lane.b32.xlu1 %v4086_v6, %s7401_s13  ;;  %vm7513_vm10 = vcmask 652896  }
 0x1db   :  { %1677 = vrot.lane.b32.xlu0 %v4063_v7, %s7399_s8 }
 0x1dc   :  { %v1524_v13 = vpop.permute.xlu1 %1523 }
 0x1dd   :  { %v1378_v14 = vpop.permute.xlu0 %1377  ;;  %1541 = vst.msk [vmem:[#allocation2 + $0x30] sm:$0x3f] %vm7511_vm12, %v1524_v13  ;;  %vm7515_vm12 = vcmask 816896  }
 0x1de   :  { %1394 = vst.msk [vmem:[#allocation2 + $0x38] sm:$0x3f] %vm7512_vm0, %v1378_v14  ;;  %130 = vrot.lane.b32.xlu1 %v3824_v11, %s7416_s11  ;;  %vm7516_vm0 = vmmov %vm7515_vm12  ;;  %v3933_v11 = vld [vmem:[%s7287_s0 + $0xf0] sm:$0x3f] }
 0x1df   :  { %1750 = vrot.lane.b32.xlu0 %v4075_v12, %s7402_s22 }
 0x1e0   :  { %v1599_v18 = vpop.permute.xlu1 %1598 }
 0x1e1   :  { %v1451_v20 = vpop.permute.xlu0 %1450  ;;  %1616 = vst.msk [vmem:[#allocation2 + $0x30] sm:$0x3f] %vm1578_vm15, %v1599_v18  ;;  %v3945_v18 = vld [vmem:[%s7287_s0 + $0x71] sm:$0x3f] }
 0x1e2   :  { %1467 = vst.msk [vmem:[#allocation2 + $0x38] sm:$0x3f] %vm7513_vm10, %v1451_v20  ;;  %203 = vrot.lane.b32.xlu1 %v3830_v15, %s7403_s5  ;;  %vm7517_vm10 = vcmask 292096  }
 0x1e3   :  { %1823 = vrot.lane.b32.xlu0 %v4087_v16, %s7401_s13  ;;  %v3968_v16 = vld [vmem:[%s7287_s0 + $0x6a] sm:$0x3f] }
 0x1e4   :  { %v1672_v25 = vpop.permute.xlu1 %1671 }
 0x1e5   :  { %v1526_v26 = vpop.permute.xlu0 %1525  ;;  %1689 = vst.msk [vmem:[#allocation2 + $0x30] sm:$0x3f] %vm1652_vm2, %v1672_v25  ;;  %v3957_v25 = vld [vmem:[%s7287_s0 + $0xf1] sm:$0x3f] }
 0x1e6   :  { %1542 = vst.msk [vmem:[#allocation2 + $0x38] sm:$0x3f] %vm7514_vm11, %v1526_v26  ;;  %276 = vrot.lane.b32.xlu1 %v3842_v23, %s7405_s3  ;;  %vm7518_vm11 = vcmask 1043456  }
 0x1e7   :  { %132 = vrot.lane.b32.xlu0 %v3825_v24, %s7416_s11  ;;  %v3980_v24 = vld [vmem:[%s7287_s0 + $0x168] sm:$0x3f] }
 0x1e8   :  { %v1745_v31 = vpop.permute.xlu1 %1744 }
 0x1e9   :  { %v1601_v32 = vpop.permute.xlu0 %1600  ;;  %1762 = vst.msk [vmem:[#allocation2 + $0x30] sm:$0x3f] %vm1725_vm13, %v1745_v31  ;;  %v3969_v31 = vld [vmem:[%s7287_s0 + $0x72] sm:$0x3f] }
 0x1ea   :  { %1617 = vst.msk [vmem:[#allocation2 + $0x38] sm:$0x3f] %vm1578_vm15, %v1601_v32  ;;  %349 = vrot.lane.b32.xlu1 %v3848_v28, %s7406_s2 }
 0x1eb   :  { %205 = vrot.lane.b32.xlu0 %v3831_v29, %s7403_s5  ;;  %v3992_v29 = vld [vmem:[%s7287_s0 + $0x1e8] sm:$0x3f] }
 0x1ec   :  { %v1818_v37 = vpop.permute.xlu1 %1817 }
 0x1ed   :  { %v1674_v38 = vpop.permute.xlu0 %1673  ;;  %1835 = vst.msk [vmem:[#allocation2 + $0x30] sm:$0x3f] %vm7515_vm12, %v1818_v37  ;;  %vm7519_vm12 = vcmask 324896  }
 0x1ee   :  { %1690 = vst.msk [vmem:[#allocation2 + $0x38] sm:$0x3f] %vm1652_vm2, %v1674_v38  ;;  %424 = vrot.lane.b32.xlu1 %v3860_v34, %s7407_s1  ;;  %v4004_v34 = vld [vmem:[%s7287_s0 + $0x169] sm:$0x3f] }
 0x1ef   :  { %278 = vrot.lane.b32.xlu0 %v3843_v35, %s7405_s3  ;;  %v3981_v35 = vld [vmem:[%s7287_s0 + $0x170] sm:$0x3f]  ;;  %s7545_s3 = sld [smem:[#allocation5_spill]] }
 0x1f0   :  { %v1820_v42 = vpop.permute.xlu1 %1819 }
 0x1f1   :  { %v1747_v43 = vpop.permute.xlu0 %1746 }
 0x1f2   :  { %1763 = vst.msk [vmem:[#allocation2 + $0x38] sm:$0x3f] %vm1725_vm13, %v1747_v43  ;;  %499 = vrot.lane.b32.xlu1 %v3872_v40, %s7408_s6  ;;  %v4016_v40 = vld [vmem:[%s7287_s0 + $0x1e9] sm:$0x3f] }
 0x1f3   :  { %1836 = vst.msk [vmem:[#allocation2 + $0x38] sm:$0x3f] %vm7516_vm0, %v1820_v42  ;;  %351 = vrot.lane.b32.xlu0 %v3849_v41, %s7406_s2  ;;  %vm7520_vm0 = vmmov %vm7518_vm11  ;;  %v3993_v41 = vld [vmem:[%s7287_s0 + $0x1f0] sm:$0x3f] }
 0x1f4   :  { %v200_v47 = vpop.permute.xlu1 %199  ;;  %v2418_v50 = vld [vmem:[#allocation2 + $0x30] sm:$0x3f] }
 0x1f5   :  { %v127_v48 = vpop.permute.xlu0 %126  ;;  %4520 = vmatmul.mubr.msk.f32.vlgmr.msra.gmra.mrb[4].mxu0 %vm1862_vm14, %v2418_v50  ;;  %v4040_v50 = vld [vmem:[%s7287_s0 + $0x70] sm:$0x3f] }
 0x1f6   :  { %142 = vst.msk [vmem:[#allocation2 + $0x40] sm:$0x3f] %vm102_vm3, %v127_v48  ;;  %572 = vrot.lane.b32.xlu1 %v3884_v45, %s7386_s26  ;;  %4831 = vmatpush3.bf16.msra.mxu0 %v5180_v22  ;;  %v4028_v45 = vld [vmem:[%s7287_s0 + $0x16a] sm:$0x3f] }
 0x1f7   :  { %215 = vst.msk [vmem:[#allocation2 + $0x40] sm:$0x3f] %vm176_vm4, %v200_v47  ;;  %426 = vrot.lane.b32.xlu0 %v3861_v46, %s7407_s1  ;;  %4577 = vmatprep.mubr.msk.f32.mxu0 %vm5014_vm1, %v5015_v36  ;;  %v4005_v46 = vld [vmem:[%s7287_s0 + $0x171] sm:$0x3f]  ;;  %s5024_s1 = smov 7  }
 0x1f8   :  { %v273_v54 = vpop.permute.xlu1 %272  ;;  %4832 = vmatprep.subr.bf16.mxu0 %v5009_v19 }
 0x1f9   :  { %v129_v55 = vpop.permute.xlu0 %128  ;;  %288 = vst.msk [vmem:[#allocation2 + $0x40] sm:$0x3f] %vm249_vm5, %v273_v54 }
 0x1fa   :  { %143 = vst.msk [vmem:[#allocation2 + $0x48] sm:$0x3f] %vm102_vm3, %v129_v55  ;;  %v2510_v56 = vld [vmem:[#allocation2 + $0x38] sm:$0x3f]  ;;  %645 = vrot.lane.b32.xlu1 %v3896_v51, %s7409_s4  ;;  %4834 = vmatpush3.bf16.msra.mxu0 %v5197_v27  ;;  %v4017_v51 = vld [vmem:[%s7287_s0 + $0x1f1] sm:$0x3f] }
 0x1fb   :  { %501 = vrot.lane.b32.xlu0 %v3873_v53, %s7408_s6  ;;  %4549 = vmatmul.mubr.msk.f32.vlgmr.msra.gmra.mrb[8].mxu1 %vm1862_vm14, %v2510_v56  ;;  %v4052_v55 = vld [vmem:[%s7287_s0 + $0xf0] sm:$0x3f] }
 0x1fc   :  { %v346_v58 = vpop.permute.xlu1 %345  ;;  %4835 = vmatprep.subr.bf16.mxu0 %v5009_v19  ;;  %4849 = vmatpush3.bf16.msra.mxu1 %v5180_v22  ;;  %v4029_v56 = vld [vmem:[%s7287_s0 + $0x172] sm:$0x3f] }
 0x1fd   :  { %v202_v59 = vpop.permute.xlu0 %201  ;;  %361 = vst.msk [vmem:[#allocation2 + $0x40] sm:$0x3f] %vm322_vm6, %v346_v58  ;;  %4850 = vmatprep.subr.bf16.mxu1 %v5009_v19  ;;  %4606 = vmatprep.mubr.msk.f32.mxu1 %vm5014_vm1, %v5015_v36  ;;  %v4064_v58 = vld [vmem:[%s7287_s0 + $0x71] sm:$0x3f] }
 0x1fe   :  { %216 = vst.msk [vmem:[#allocation2 + $0x48] sm:$0x3f] %vm176_vm4, %v202_v59  ;;  %718 = vrot.lane.b32.xlu1 %v3908_v52, %s7388_s21  ;;  %4837 = vmatpush3.bf16.msra.mxu0 %v5220_v33  ;;  %v4041_v59 = vld [vmem:[%s7287_s0 + $0x78] sm:$0x3f] }
 0x1ff   :  { %574 = vrot.lane.b32.xlu0 %v3885_v57, %s7386_s26  ;;  %4838 = vmatprep.subr.bf16.mxu0 %v5009_v19 }
 0x200   :  { %v421_v62 = vpop.permute.xlu1 %420  ;;  %4852 = vmatpush3.bf16.msra.mxu1 %v5197_v27 }
 0x201   :  { %v275_v63 = vpop.permute.xlu0 %274  ;;  %436 = vst.msk [vmem:[#allocation2 + $0x40] sm:$0x3f] %vm396_vm7, %v421_v62  ;;  %4853 = vmatprep.subr.bf16.mxu1 %v5009_v19  ;;  %v4076_v62 = vld [vmem:[%s7287_s0 + $0xf1] sm:$0x3f] }
 0x202   :  { %289 = vst.msk [vmem:[#allocation2 + $0x48] sm:$0x3f] %vm249_vm5, %v275_v63  ;;  %793 = vrot.lane.b32.xlu1 %v3920_v60, %s7484_s7  ;;  %4840 = vmatpush3.bf16.msra.mxu0 %v5245_v39  ;;  %v4053_v63 = vld [vmem:[%s7287_s0 + $0xf8] sm:$0x3f] }
 0x203   :  { %647 = vrot.lane.b32.xlu0 %v3897_v61, %s7409_s4  ;;  %4841 = vmatprep.subr.bf16.mxu0 %v5009_v19 }
 0x204   :  { %v496_v2 = vpop.permute.xlu1 %495  ;;  %4855 = vmatpush3.bf16.msra.mxu1 %v5220_v33 }
 0x205   :  { %v348_v3 = vpop.permute.xlu0 %347  ;;  %511 = vst.msk [vmem:[#allocation2 + $0x40] sm:$0x3f] %vm471_vm8, %v496_v2  ;;  %4856 = vmatprep.subr.bf16.mxu1 %v5009_v19  ;;  %v4088_v2 = vld [vmem:[%s7287_s0 + $0x72] sm:$0x3f] }
 0x206   :  { %362 = vst.msk [vmem:[#allocation2 + $0x48] sm:$0x3f] %vm322_vm6, %v348_v3  ;;  %868 = vrot.lane.b32.xlu1 %v3932_v0, %s7390_s17  ;;  %4843 = vmatpush3.bf16.msra.mxu0 %v5265_v44  ;;  %v4065_v3 = vld [vmem:[%s7287_s0 + $0x79] sm:$0x3f] }
 0x207   :  { %720 = vrot.lane.b32.xlu0 %v3909_v1, %s7388_s21  ;;  %4844 = vmatprep.subr.bf16.mxu0 %v5009_v19  ;;  %s5022_s21 = smov 112  }
 0x208   :  { %v569_v6 = vpop.permute.xlu1 %568  ;;  %4858 = vmatpush3.bf16.msra.mxu1 %v5245_v39  ;;  %v6625_v8 = vpop.f32.mrb[0].mxu0 }
 0x209   :  { %v423_v7 = vpop.permute.xlu0 %422  ;;  %584 = vst.msk [vmem:[#allocation2 + $0x40] sm:$0x3f] %vm545_vm9, %v569_v6  ;;  %4859 = vmatprep.subr.bf16.mxu1 %v5009_v19  ;;  %v4405_v9 = vpop.f32.mrb[1].mxu0  ;;  %v4077_v6 = vld [vmem:[%s7287_s0 + $0xf9] sm:$0x3f] }
 0x20a   :  { %437 = vst.msk [vmem:[#allocation2 + $0x48] sm:$0x3f] %vm396_vm7, %v423_v7  ;;  %941 = vrot.lane.b32.xlu1 %v3944_v4, %s7389_s18  ;;  %4846 = vmatpush3.bf16.msra.mxu0 %v5285_v49  ;;  %v4089_v7 = vld [vmem:[%s7287_s0 + $0x7a] sm:$0x3f] }
 0x20b   :  { %795 = vrot.lane.b32.xlu0 %v3921_v5, %s7484_s7  ;;  %4575 = vmatprep.subr.mxu0 %v5015_v36 }
 0x20c   :  { %v642_v12 = vpop.permute.xlu1 %641  ;;  %4861 = vmatpush3.bf16.msra.mxu1 %v5265_v44 }
 0x20d   :  { %v498_v13 = vpop.permute.xlu0 %497  ;;  %657 = vst.msk [vmem:[#allocation2 + $0x40] sm:$0x3f] %vm7517_vm10, %v642_v12  ;;  %4862 = vmatprep.subr.bf16.mxu1 %v5009_v19  ;;  %vm7521_vm10 = vcmask 357696  }
 0x20e   :  { %512 = vst.msk [vmem:[#allocation2 + $0x48] sm:$0x3f] %vm471_vm8, %v498_v13  ;;  %v6642_v14 = vpop.f32.mrb[4].mxu1  ;;  %1014 = vrot.lane.b32.xlu1 %v3956_v10, %s7392_s24  ;;  %4576 = vmatpush3.msk.msra.mxu0 %vm7518_vm11, %v6074_v30  ;;  %vm7522_vm11 = vcmask 292096  }
 0x20f   :  { %870 = vrot.lane.b32.xlu0 %v3933_v11, %s7390_s17  ;;  %v4434_v15 = vpop.f32.mrb[5].mxu1  ;;  %4865 = vmatprep.subr.bf16.mxu0 %v5009_v19 }
 0x210   :  { %v715_v20 = vpop.permute.xlu1 %714  ;;  %4864 = vmatpush3.bf16.msra.mxu1 %v5285_v49 }
 0x211   :  { %v571_v23 = vpop.permute.xlu0 %570  ;;  %730 = vst.msk [vmem:[#allocation2 + $0x40] sm:$0x3f] %vm7519_vm12, %v715_v20  ;;  %4604 = vmatprep.subr.mxu1 %v5015_v36  ;;  %vm7523_vm12 = vcmask 390496  }
 0x212   :  { %585 = vst.msk [vmem:[#allocation2 + $0x48] sm:$0x3f] %vm545_vm9, %v571_v23  ;;  %1087 = vrot.lane.b32.xlu1 %v3968_v16, %s7391_s30 }
 0x213   :  { %943 = vrot.lane.b32.xlu0 %v3945_v18, %s7389_s18 }
 0x214   :  { %v790_v26 = vpop.permute.xlu1 %789  ;;  %4605 = vmatpush3.msk.msra.mxu1 %vm7520_vm0, %v6074_v30  ;;  %vm7524_vm0 = vcmask 324896  }
 0x215   :  { %v644_v28 = vpop.permute.xlu0 %643  ;;  %805 = vst.msk [vmem:[#allocation2 + $0x40] sm:$0x3f] %vm7521_vm10, %v790_v26  ;;  %4883 = vmatprep.subr.bf16.mxu1 %v5009_v19  ;;  %vm7525_vm10 = vcmask 423296   ;;  %v6785_v26 = vld [vmem:[%s7545_s3] ss:$0 sm:$0xff]  ;;  %s7583_s3 = sld [smem:[#allocation11_spill]] }
 0x216   :  { %658 = vst.msk [vmem:[#allocation2 + $0x48] sm:$0x3f] %vm7522_vm11, %v644_v28  ;;  %1162 = vrot.lane.b32.xlu1 %v3980_v24, %s7394_s29  ;;  %vm7526_vm11 = vcmask 357696   ;;  %v6791_v28 = vadd.f32 %v6785_v26, %v6354_v17 }
 0x217   :  { %1016 = vrot.lane.b32.xlu0 %v3957_v25, %s7392_s24  ;;  %s7580_s24 = sld [smem:[#allocation8_spill]] }
 0x218   :  { %v865_v32 = vpop.permute.xlu1 %864 }
 0x219   :  { %v717_v30 = vpop.permute.xlu0 %716  ;;  %880 = vst.msk [vmem:[#allocation2 + $0x40] sm:$0x3f] %vm7523_vm12, %v865_v32  ;;  %vm7527_vm12 = vcmask 456096  }
 0x21a   :  { %731 = vst.msk [vmem:[#allocation2 + $0x48] sm:$0x3f] %vm7524_vm0, %v717_v30  ;;  %1237 = vrot.lane.b32.xlu1 %v3992_v29, %s7393_s28  ;;  %vm7528_vm0 = vcmask 390496   ;;  %v6795_v29 = vadd.f32 %v6785_v26, %v6204_v21  ;;  %v2041_v21 = vmul.f32 %v6791_v28, %v6791_v28 }
 0x21b   :  { %1089 = vrot.lane.b32.xlu0 %v3969_v31, %s7391_s30 }
 0x21c   :  { %v938_v37 = vpop.permute.xlu1 %937  ;;  %v1949_v17 = vmul.f32 %v6795_v29, %v6795_v29 }
 0x21d   :  { %v792_v38 = vpop.permute.xlu0 %791  ;;  %953 = vst.msk [vmem:[#allocation2 + $0x40] sm:$0x3f] %vm7525_vm10, %v938_v37  ;;  %vm7529_vm10 = vcmask 488896  }
 0x21e   :  { %806 = vst.msk [vmem:[#allocation2 + $0x48] sm:$0x3f] %vm7526_vm11, %v792_v38  ;;  %1310 = vrot.lane.b32.xlu1 %v4004_v34, %s7396_s19  ;;  %vm7530_vm11 = vcmask 423296   ;;  %v6799_v34 = vadd.f32 %v6785_v26, %v6625_v8 }
 0x21f   :  { %1164 = vrot.lane.b32.xlu0 %v3981_v35, %s7394_s29 }
 0x220   :  { %v1011_v42 = vpop.permute.xlu1 %1010  ;;  %v2133_v38 = vmul.f32 %v6799_v34, %v6799_v34 }
 0x221   :  { %v867_v43 = vpop.permute.xlu0 %866  ;;  %1026 = vst.msk [vmem:[#allocation2 + $0x40] sm:$0x3f] %vm7527_vm12, %v1011_v42  ;;  %vm7531_vm12 = vcmask 521696  }
 0x222   :  { %881 = vst.msk [vmem:[#allocation2 + $0x48] sm:$0x3f] %vm7528_vm0, %v867_v43  ;;  %1383 = vrot.lane.b32.xlu1 %v4016_v40, %s7395_s12  ;;  %vm7532_vm0 = vcmask 456096   ;;  %v6818_v40 = vadd.f32 %v6785_v26, %v6642_v14 }
 0x223   :  { %1239 = vrot.lane.b32.xlu0 %v3993_v41, %s7393_s28 }
 0x224   :  { %v1084_v47 = vpop.permute.xlu1 %1083 }
 0x225   :  { %v940_v48 = vpop.permute.xlu0 %939  ;;  %1099 = vst.msk [vmem:[#allocation2 + $0x40] sm:$0x3f] %vm7529_vm10, %v1084_v47  ;;  %vm7533_vm10 = vcmask 554496  }
 0x226   :  { %954 = vst.msk [vmem:[#allocation2 + $0x48] sm:$0x3f] %vm7530_vm11, %v940_v48  ;;  %1456 = vrot.lane.b32.xlu1 %v4028_v45, %s7398_s23  ;;  %vm7534_vm11 = vcmask 488896  }
 0x227   :  { %1312 = vrot.lane.b32.xlu0 %v4005_v46, %s7396_s19  ;;  %s5027_s19 = smov 23  }
 0x228   :  { %v1159_v53 = vpop.permute.xlu1 %1158 }
 0x229   :  { %v1013_v54 = vpop.permute.xlu0 %1012  ;;  %1174 = vst.msk [vmem:[#allocation2 + $0x40] sm:$0x3f] %vm7531_vm12, %v1159_v53  ;;  %vm7535_vm12 = vcmask 587296  }
 0x22a   :  { %1027 = vst.msk [vmem:[#allocation2 + $0x48] sm:$0x3f] %vm7532_vm0, %v1013_v54  ;;  %1531 = vrot.lane.b32.xlu1 %v4040_v50, %s7397_s27  ;;  %vm7536_vm0 = vcmask 521696  }
 0x22b   :  { %1385 = vrot.lane.b32.xlu0 %v4017_v51, %s7395_s12  ;;  %v2225_v51 = vmul.f32 %v6818_v40, %v6818_v40 }
 0x22c   :  { %v1234_v52 = vpop.permute.xlu1 %1233 }
 0x22d   :  { %v1086_v57 = vpop.permute.xlu0 %1085  ;;  %1249 = vst.msk [vmem:[#allocation2 + $0x40] sm:$0x3f] %vm7533_vm10, %v1234_v52  ;;  %vm7537_vm10 = vcmask 620096  }
 0x22e   :  { %1100 = vst.msk [vmem:[#allocation2 + $0x48] sm:$0x3f] %vm7534_vm11, %v1086_v57  ;;  %1606 = vrot.lane.b32.xlu1 %v4052_v55, %s7400_s10  ;;  %vm7538_vm11 = vcmask 554496  }
 0x22f   :  { %1458 = vrot.lane.b32.xlu0 %v4029_v56, %s7398_s23  ;;  %s7578_s23 = sld [smem:[#allocation6_spill]] }
 0x230   :  { %v1307_v60 = vpop.permute.xlu1 %1306 }
 0x231   :  { %v1161_v61 = vpop.permute.xlu0 %1160  ;;  %1322 = vst.msk [vmem:[#allocation2 + $0x40] sm:$0x3f] %vm7535_vm12, %v1307_v60  ;;  %vm7539_vm12 = vcmask 652896  }
 0x232   :  { %1175 = vst.msk [vmem:[#allocation2 + $0x48] sm:$0x3f] %vm7536_vm0, %v1161_v61  ;;  %1679 = vrot.lane.b32.xlu1 %v4064_v58, %s7399_s8  ;;  %vm7540_vm0 = vcmask 587296  }
 0x233   :  { %1533 = vrot.lane.b32.xlu0 %v4041_v59, %s7397_s27 }
 0x234   :  { %v1380_v0 = vpop.permute.xlu1 %1379 }
 0x235   :  { %v1236_v1 = vpop.permute.xlu0 %1235  ;;  %1395 = vst.msk [vmem:[#allocation2 + $0x40] sm:$0x3f] %vm7537_vm10, %v1380_v0  ;;  %vm7541_vm10 = vcmask 685696  }
 0x236   :  { %1250 = vst.msk [vmem:[#allocation2 + $0x48] sm:$0x3f] %vm7538_vm11, %v1236_v1  ;;  %1752 = vrot.lane.b32.xlu1 %v4076_v62, %s7402_s22  ;;  %vm7542_vm11 = vcmask 620096  }
 0x237   :  { %1608 = vrot.lane.b32.xlu0 %v4053_v63, %s7400_s10 }
 0x238   :  { %v1453_v4 = vpop.permute.xlu1 %1452 }
 0x239   :  { %v1309_v5 = vpop.permute.xlu0 %1308  ;;  %1468 = vst.msk [vmem:[#allocation2 + $0x40] sm:$0x3f] %vm7539_vm12, %v1453_v4 }
 0x23a   :  { %1323 = vst.msk [vmem:[#allocation2 + $0x48] sm:$0x3f] %vm7540_vm0, %v1309_v5  ;;  %1825 = vrot.lane.b32.xlu1 %v4088_v2, %s7401_s13  ;;  %vm7543_vm0 = vmmov %vm7541_vm10 }
 0x23b   :  { %1681 = vrot.lane.b32.xlu0 %v4065_v3, %s7399_s8 }
 0x23c   :  { %v1528_v9 = vpop.permute.xlu1 %1527 }
 0x23d   :  { %v1382_v10 = vpop.permute.xlu0 %1381  ;;  %1543 = vst.msk [vmem:[#allocation2 + $0x40] sm:$0x3f] %vm7541_vm10, %v1528_v9  ;;  %vm7544_vm10 = vcmask 816896  }
 0x23e   :  { %1396 = vst.msk [vmem:[#allocation2 + $0x48] sm:$0x3f] %vm7542_vm11, %v1382_v10  ;;  %1827 = vrot.lane.b32.xlu1 %v4089_v7, %s7401_s13  ;;  %vm7546_vm11 = vmmov %vm7544_vm10 }
 0x23f   :  { %1754 = vrot.lane.b32.xlu0 %v4077_v6, %s7402_s22 }
 0x240   :  { %v1603_v11 = vpop.permute.xlu1 %1602 }
 0x241   :  { %v1455_v12 = vpop.permute.xlu0 %1454  ;;  %1618 = vst.msk [vmem:[#allocation2 + $0x40] sm:$0x3f] %vm1578_vm15, %v1603_v11 }
 0x242   :  { %1469 = vst.msk [vmem:[#allocation2 + $0x48] sm:$0x3f] %vm7539_vm12, %v1455_v12  ;;  %vm1940_vm12 = vcmask 62464  }
 0x243   :  { %v2033_v8 = vsel %vm1940_vm12, %v6791_v28, 0.0  ;;  %v1941_v41 = vsel %vm1940_vm12, %v6795_v29, 0.0  ;;  %v2042_v43 = vsel %vm1940_vm12, %v2041_v21, 0.0  ;;  %v1950_v45 = vsel %vm1940_vm12, %v1949_v17, 0.0 }
 0x244   :  { %v1676_v13 = vpop.permute.xlu1 %1675  ;;  %v2034_v42 = vrot.slane %v2033_v8, 4  ;;  %v2125_v14 = vsel %vm1940_vm12, %v6799_v34, 0.0  ;;  %v2134_v50 = vsel %vm1940_vm12, %v2133_v38, 0.0  ;;  %v1942_v53 = vrot.slane %v1941_v41, 4 }
 0x245   :  { %v1530_v15 = vpop.permute.xlu0 %1529  ;;  %1691 = vst.msk [vmem:[#allocation2 + $0x40] sm:$0x3f] %vm1652_vm2, %v1676_v13  ;;  %v2043_v54 = vrot.slane %v2042_v43, 4  ;;  %v1951_v55 = vrot.slane %v1950_v45, 4  ;;  %v2126_v52 = vrot.slane %v2125_v14, 4  ;;  %v2217_v57 = vsel %vm1940_vm12, %v6818_v40, 0.0 }
 0x246   :  { %1544 = vst.msk [vmem:[#allocation2 + $0x48] sm:$0x3f] %vm7543_vm0, %v1530_v15  ;;  %v2035_v56 = vadd.f32 %v2034_v42, %v2033_v8  ;;  %v2135_v58 = vrot.slane %v2134_v50, 4  ;;  %v1943_v61 = vadd.f32 %v1942_v53, %v1941_v41  ;;  %v2218_v63 = vrot.slane %v2217_v57, 4 }
 0x247   :  { %v2044_v62 = vadd.f32 %v2043_v54, %v2042_v43  ;;  %v1952_v0 = vadd.f32 %v1951_v55, %v1950_v45  ;;  %v2127_v2 = vadd.f32 %v2126_v52, %v2125_v14 }
 0x248   :  { %v1749_v16 = vpop.permute.xlu1 %1748  ;;  %v2036_v1 = vrot.slane %v2035_v56, 2  ;;  %v2136_v3 = vadd.f32 %v2135_v58, %v2134_v50  ;;  %v1944_v7 = vrot.slane %v1943_v61, 2 }
 0x249   :  { %v1605_v18 = vpop.permute.xlu0 %1604  ;;  %1764 = vst.msk [vmem:[#allocation2 + $0x40] sm:$0x3f] %vm1725_vm13, %v1749_v16  ;;  %v2045_v9 = vrot.slane %v2044_v62, 2  ;;  %v1953_v10 = vrot.slane %v1952_v0, 2  ;;  %v2128_v12 = vrot.slane %v2127_v2, 2 }
 0x24a   :  { %1619 = vst.msk [vmem:[#allocation2 + $0x48] sm:$0x3f] %vm1578_vm15, %v1605_v18  ;;  %v2037_v11 = vadd.f32 %v2036_v1, %v2035_v56  ;;  %v2137_v13 = vrot.slane %v2136_v3, 2 }
 0x24b   :  { %v2129_v21 = vadd.f32 %v2128_v12, %v2127_v2 }
 0x24c   :  { %v1822_v20 = vpop.permute.xlu1 %1821  ;;  %v2138_v17 = vadd.f32 %v2137_v13, %v2136_v3 }
 0x24d   :  { %v1678_v23 = vpop.permute.xlu0 %1677  ;;  %1837 = vst.msk [vmem:[#allocation2 + $0x40] sm:$0x3f] %vm7544_vm10, %v1822_v20  ;;  %vm7556_vm10 = vcmask 423296  }
 0x24e   :  { %1692 = vst.msk [vmem:[#allocation2 + $0x48] sm:$0x3f] %vm1652_vm2, %v1678_v23  ;;  %v1945_v23 = vadd.f32 %v1944_v7, %v1943_v61  ;;  %v2139_v52 = vrot.slane %v2138_v17, 1 }
 0x250   :  { %v131_v24 = vpop.permute.xlu1 %130  ;;  %v1946_v42 = vrot.slane %v1945_v23, 1  ;;  %v2140_v13 = vadd.f32 %v2139_v52, %v2138_v17 }
 0x251   :  { %v1751_v25 = vpop.permute.xlu0 %1750  ;;  %144 = vst.msk [vmem:[#allocation2 + $0x50] sm:$0x3f] %vm102_vm3, %v131_v24 }
 0x252   :  { %1765 = vst.msk [vmem:[#allocation2 + $0x48] sm:$0x3f] %vm1725_vm13, %v1751_v25 }
 0x254   :  { %v204_v31 = vpop.permute.xlu1 %203  ;;  %v2602_v30 = vld [vmem:[#allocation2 + $0x40] sm:$0x3f] }
 0x255   :  { %v1824_v32 = vpop.permute.xlu0 %1823  ;;  %217 = vst.msk [vmem:[#allocation2 + $0x50] sm:$0x3f] %vm176_vm4, %v204_v31  ;;  %4578 = vmatmul.mubr.msk.f32.vlgmr.msra.gmra.mrb[6].mxu0 %vm1862_vm14, %v2602_v30  ;;  %v2038_v30 = vrot.slane %v2037_v11, 1 }
 0x256   :  { %1838 = vst.msk [vmem:[#allocation2 + $0x48] sm:$0x3f] %vm7546_vm11, %v1824_v32  ;;  %4867 = vmatpush3.bf16.msra.mxu0 %v5180_v22  ;;  %4635 = vmatprep.mubr.msk.f32.mxu0 %vm5014_vm1, %v5015_v36  ;;  %v1954_v32 = vadd.f32 %v1953_v10, %v1952_v0 }
 0x257   :  { %4868 = vmatprep.subr.bf16.mxu0 %v5009_v19  ;;  %v2039_v56 = vadd.f32 %v2038_v30, %v2037_v11 }
 0x258   :  { %v277_v35 = vpop.permute.xlu1 %276  ;;  %v1955_v55 = vrot.slane %v1954_v32, 1 }
 0x259   :  { %v133_v37 = vpop.permute.xlu0 %132  ;;  %290 = vst.msk [vmem:[#allocation2 + $0x50] sm:$0x3f] %vm249_vm5, %v277_v35 }
 0x25a   :  { %145 = vst.msk [vmem:[#allocation2 + $0x58] sm:$0x3f] %vm102_vm3, %v133_v37  ;;  %4870 = vmatpush3.bf16.msra.mxu0 %v5197_v27  ;;  %vm7547_vm3 = vcmask 292096  }
 0x25b   :  { %4871 = vmatprep.subr.bf16.mxu0 %v5009_v19 }
 0x25c   :  { %v350_v46 = vpop.permute.xlu1 %349 }
 0x25d   :  { %v206_v47 = vpop.permute.xlu0 %205  ;;  %v2694_v48 = vld [vmem:[#allocation2 + $0x48] sm:$0x3f]  ;;  %363 = vst.msk [vmem:[#allocation2 + $0x50] sm:$0x3f] %vm322_vm6, %v350_v46 }
 0x25e   :  { %218 = vst.msk [vmem:[#allocation2 + $0x58] sm:$0x3f] %vm176_vm4, %v206_v47  ;;  %4607 = vmatmul.mubr.msk.f32.vlgmr.msra.gmra.mrb[10].mxu1 %vm1862_vm14, %v2694_v48  ;;  %4873 = vmatpush3.bf16.msra.mxu0 %v5220_v33  ;;  %v4992_v47 = vld [vmem:[%s7548_s14 + $0x60] sm:$0xf]  ;;  %vm7549_vm4 = vcmask 1043456   ;;  %v2130_v48 = vrot.slane %v2129_v21, 1 }
 0x25f   :  { %4885 = vmatpush3.bf16.msra.mxu1 %v5180_v22  ;;  %4874 = vmatprep.subr.bf16.mxu0 %v5009_v19  ;;  %v2226_v22 = vsel %vm1940_vm12, %v2225_v51, 0.0 }
 0x260   :  { %4886 = vmatprep.subr.bf16.mxu1 %v5009_v19  ;;  %v425_v59 = vpop.permute.xlu1 %424  ;;  %4664 = vmatprep.mubr.msk.f32.mxu1 %vm5014_vm1, %v5015_v36  ;;  %v2227_v4 = vrot.slane %v2226_v22, 4  ;;  %v2131_v2 = vadd.f32 %v2130_v48, %v2129_v21 }
 0x261   :  { %v279_v60 = vpop.permute.xlu0 %278  ;;  %438 = vst.msk [vmem:[#allocation2 + $0x50] sm:$0x3f] %vm396_vm7, %v425_v59 }
 0x262   :  { %291 = vst.msk [vmem:[#allocation2 + $0x58] sm:$0x3f] %vm249_vm5, %v279_v60  ;;  %4876 = vmatpush3.bf16.msra.mxu0 %v5245_v39  ;;  %v2228_v15 = vadd.f32 %v2227_v4, %v2226_v22  ;;  %vm7550_vm5 = vcmask 324896  }
 0x263   :  { %4888 = vmatpush3.bf16.msra.mxu1 %v5197_v27  ;;  %4877 = vmatprep.subr.bf16.mxu0 %v5009_v19  ;;  %v2219_v27 = vadd.f32 %v2218_v63, %v2217_v57  ;;  %vm7555_vm0 = vmmov %vm7550_vm5 }
 0x264   :  { %4889 = vmatprep.subr.bf16.mxu1 %v5009_v19  ;;  %v500_v5 = vpop.permute.xlu1 %499  ;;  %v2229_v8 = vrot.slane %v2228_v15, 2 }
 0x265   :  { %v352_v6 = vpop.permute.xlu0 %351  ;;  %513 = vst.msk [vmem:[#allocation2 + $0x50] sm:$0x3f] %vm471_vm8, %v500_v5  ;;  %v2220_v24 = vrot.slane %v2219_v27, 2 }
 0x266   :  { %364 = vst.msk [vmem:[#allocation2 + $0x58] sm:$0x3f] %vm322_vm6, %v352_v6  ;;  %4879 = vmatpush3.bf16.msra.mxu0 %v5265_v44  ;;  %v1956_v6 = vadd.f32 %v1955_v55, %v1954_v32  ;;  %vm7551_vm6 = vcmask 357696  }
 0x267   :  { %4891 = vmatpush3.bf16.msra.mxu1 %v5220_v33  ;;  %4880 = vmatprep.subr.bf16.mxu0 %v5009_v19  ;;  %v2046_v33 = vadd.f32 %v2045_v9, %v2044_v62  ;;  %v2221_v45 = vadd.f32 %v2220_v24, %v2219_v27  ;;  %v1947_v62 = vadd.f32 %v1946_v42, %v1945_v23  ;;  %vm7557_vm11 = vmmov %vm7551_vm6 }
 0x268   :  { %4892 = vmatprep.subr.bf16.mxu1 %v5009_v19  ;;  %v573_v16 = vpop.permute.xlu1 %572  ;;  %v2305_v20 = vpop.f32.mrb[2].mxu0 }
 0x269   :  { %v427_v18 = vpop.permute.xlu0 %426  ;;  %586 = vst.msk [vmem:[#allocation2 + $0x50] sm:$0x3f] %vm545_vm9, %v573_v16  ;;  %v6860_v25 = vadd.f32 %v6785_v26, %v2305_v20  ;;  %v4463_v31 = vpop.f32.mrb[3].mxu0  ;;  %v2047_v43 = vrot.slane %v2046_v33, 1  ;;  %v2222_v0 = vrot.slane %v2221_v45, 1  ;;  %v2040_v12 = vadd.f32 %v2039_v56, %v1947_v62 }
 0x26a   :  { %439 = vst.msk [vmem:[#allocation2 + $0x58] sm:$0x3f] %vm396_vm7, %v427_v18  ;;  %4882 = vmatpush3.bf16.msra.mxu0 %v5285_v49  ;;  %vm7552_vm7 = vmmov %vm7547_vm3 }
 0x26b   :  { %4894 = vmatpush3.bf16.msra.mxu1 %v5245_v39  ;;  %4633 = vmatprep.subr.mxu0 %v5015_v36  ;;  %v2309_v35 = vsel %vm1940_vm12, %v6860_v25, 0.0  ;;  %v2317_v37 = vmul.f32 %v6860_v25, %v6860_v25  ;;  %v2048_v63 = vadd.f32 %v2047_v43, %v2046_v33  ;;  %v2132_v33 = vadd.f32 %v2131_v2, %v2040_v12 }
 0x26c   :  { %4895 = vmatprep.subr.bf16.mxu1 %v5009_v19  ;;  %v646_v38 = vpop.permute.xlu1 %645  ;;  %v2310_v39 = vrot.slane %v2309_v35, 4 }
 0x26d   :  { %v502_v41 = vpop.permute.xlu0 %501  ;;  %659 = vst.msk [vmem:[#allocation2 + $0x50] sm:$0x3f] %vm7547_vm3, %v646_v38  ;;  %v2318_v14 = vsel %vm1940_vm12, %v2317_v37, 0.0  ;;  %v2049_v23 = vadd.f32 %v2048_v63, %v1956_v6  ;;  %vm7558_vm3 = vcmask 456096  }
 0x26e   :  { %514 = vst.msk [vmem:[#allocation2 + $0x58] sm:$0x3f] %vm471_vm8, %v502_v41  ;;  %v2397_v46 = vpop.f32.mrb[6].mxu1  ;;  %4634 = vmatpush3.msk.msra.mxu0 %vm7549_vm4, %v4992_v47  ;;  %v2311_v50 = vadd.f32 %v2310_v39, %v2309_v35  ;;  %v2319_v51 = vrot.slane %v2318_v14, 4  ;;  %vm7553_vm8 = vmmov %vm7549_vm4 }
 0x26f   :  { %4897 = vmatpush3.bf16.msra.mxu1 %v5265_v44  ;;  %v2398_v53 = vadd.f32 %v6785_v26, %v2397_v46  ;;  %v4492_v54 = vpop.f32.mrb[7].mxu1  ;;  %4901 = vmatprep.subr.bf16.mxu0 %v5009_v19  ;;  %v2230_v44 = vadd.f32 %v2229_v8, %v2228_v15  ;;  %v2141_v35 = vadd.f32 %v2140_v13, %v2049_v23 }
 0x270   :  { %4898 = vmatprep.subr.bf16.mxu1 %v5009_v19  ;;  %v719_v57 = vpop.permute.xlu1 %718  ;;  %v2312_v59 = vrot.slane %v2311_v50, 2  ;;  %v2320_v60 = vadd.f32 %v2319_v51, %v2318_v14 }
 0x271   :  { %v575_v58 = vpop.permute.xlu0 %574  ;;  %v2401_v22 = vsel %vm1940_vm12, %v2398_v53, 0.0  ;;  %v2409_v61 = vmul.f32 %v2398_v53, %v2398_v53  ;;  %732 = vst.msk [vmem:[#allocation2 + $0x50] sm:$0x3f] %vm7550_vm5, %v719_v57  ;;  %v2231_v7 = vrot.slane %v2230_v44, 1  ;;  %vm7560_vm5 = vcmask 488896  }
 0x272   :  { %587 = vst.msk [vmem:[#allocation2 + $0x58] sm:$0x3f] %vm545_vm9, %v575_v58  ;;  %v2402_v1 = vrot.slane %v2401_v22, 4  ;;  %v2313_v3 = vadd.f32 %v2312_v59, %v2311_v50  ;;  %v2321_v4 = vrot.slane %v2320_v60, 2  ;;  %vm7554_vm9 = vcmask 390496  }
 0x273   :  { %4900 = vmatpush3.bf16.msra.mxu1 %v5285_v49  ;;  %v2410_v5 = vsel %vm1940_vm12, %v2409_v61, 0.0  ;;  %v2223_v49 = vadd.f32 %v2222_v0, %v2221_v45  ;;  %v2232_v31 = vadd.f32 %v2231_v7, %v2230_v44  ;;  %vm7559_vm4 = vmmov %vm7554_vm9 }
 0x274   :  { %4662 = vmatprep.subr.mxu1 %v5015_v36  ;;  %v2403_v9 = vadd.f32 %v2402_v1, %v2401_v22  ;;  %v2411_v27 = vrot.slane %v2410_v5, 4  ;;  %v794_v10 = vpop.permute.xlu1 %793  ;;  %v2314_v15 = vrot.slane %v2313_v3, 1  ;;  %v2322_v16 = vadd.f32 %v2321_v4, %v2320_v60 }
 0x275   :  { %v648_v11 = vpop.permute.xlu0 %647  ;;  %807 = vst.msk [vmem:[#allocation2 + $0x50] sm:$0x3f] %vm7551_vm6, %v794_v10  ;;  %v2224_v37 = vadd.f32 %v2223_v49, %v2132_v33  ;;  %v2233_v42 = vadd.f32 %v2232_v31, %v2141_v35  ;;  %vm7561_vm6 = vmmov %vm7556_vm10 }
 0x276   :  { %660 = vst.msk [vmem:[#allocation2 + $0x58] sm:$0x3f] %vm7552_vm7, %v648_v11  ;;  %v2404_v18 = vrot.slane %v2403_v9, 2  ;;  %v2412_v20 = vadd.f32 %v2411_v27, %v2410_v5  ;;  %v2323_v24 = vrot.slane %v2322_v16, 1  ;;  %v2315_v32 = vadd.f32 %v2314_v15, %v2313_v3 }
 0x277   :  { %4663 = vmatpush3.msk.msra.mxu1 %vm7553_vm8, %v4992_v47  ;;  %vm7562_vm7 = vcmask 521696   ;;  %vm7563_vm8 = vmmov %vm7558_vm3 }
 0x278   :  { %4937 = vmatprep.subr.bf16.mxu1 %v5009_v19  ;;  %v2405_v30 = vadd.f32 %v2404_v18, %v2403_v9  ;;  %v2413_v21 = vrot.slane %v2412_v20, 2  ;;  %v869_v17 = vpop.permute.xlu1 %868  ;;  %v2324_v38 = vadd.f32 %v2323_v24, %v2322_v16  ;;  %v2316_v43 = vadd.f32 %v2315_v32, %v2224_v37 }
 0x279   :  { %v721_v8 = vpop.permute.xlu0 %720  ;;  %882 = vst.msk [vmem:[#allocation2 + $0x50] sm:$0x3f] %vm7554_vm9, %v869_v17  ;;  %vm7564_vm9 = vcmask 554496  }
 0x27a   :  { %733 = vst.msk [vmem:[#allocation2 + $0x58] sm:$0x3f] %vm7555_vm0, %v721_v8  ;;  %v2406_v41 = vrot.slane %v2405_v30, 1  ;;  %v2414_v39 = vadd.f32 %v2413_v21, %v2412_v20  ;;  %v2325_v48 = vadd.f32 %v2324_v38, %v2233_v42  ;;  %vm7565_vm0 = vmmov %vm7560_vm5 }
 0x27c   :  { %v2407_v45 = vadd.f32 %v2406_v41, %v2405_v30  ;;  %v2415_v14 = vrot.slane %v2414_v39, 1  ;;  %v942_v46 = vpop.permute.xlu1 %941 }
 0x27d   :  { %v796_v47 = vpop.permute.xlu0 %795  ;;  %955 = vst.msk [vmem:[#allocation2 + $0x50] sm:$0x3f] %vm7556_vm10, %v942_v46  ;;  %vm7566_vm10 = vcmask 587296  }
 0x27e   :  { %808 = vst.msk [vmem:[#allocation2 + $0x58] sm:$0x3f] %vm7557_vm11, %v796_v47  ;;  %v6895_v50 = vadd.f32 %v2407_v45, %v2316_v43  ;;  %v2416_v51 = vadd.f32 %v2415_v14, %v2414_v39  ;;  %vm7567_vm11 = vmmov %vm7562_vm7 }
 0x280   :  { %v6897_v53 = vadd.f32 %v2416_v51, %v2325_v48  ;;  %v1015_v54 = vpop.permute.xlu1 %1014 }
 0x281   :  { %v871_v55 = vpop.permute.xlu0 %870  ;;  %1028 = vst.msk [vmem:[#allocation2 + $0x50] sm:$0x3f] %vm7558_vm3, %v1015_v54  ;;  %vm7568_vm3 = vcmask 620096  }
 0x282   :  { %883 = vst.msk [vmem:[#allocation2 + $0x58] sm:$0x3f] %vm7559_vm4, %v871_v55  ;;  %vm7569_vm4 = vmmov %vm7564_vm9 }
 0x284   :  { %v1088_v56 = vpop.permute.xlu1 %1087 }
 0x285   :  { %v944_v52 = vpop.permute.xlu0 %943  ;;  %1101 = vst.msk [vmem:[#allocation2 + $0x50] sm:$0x3f] %vm7560_vm5, %v1088_v56  ;;  %vm7570_vm5 = vcmask 652896  }
 0x286   :  { %956 = vst.msk [vmem:[#allocation2 + $0x58] sm:$0x3f] %vm7561_vm6, %v944_v52  ;;  %vm7571_vm6 = vmmov %vm7566_vm10 }
 0x288   :  { %v1163_v44 = vpop.permute.xlu1 %1162 }
 0x289   :  { %v1017_v57 = vpop.permute.xlu0 %1016  ;;  %1176 = vst.msk [vmem:[#allocation2 + $0x50] sm:$0x3f] %vm7562_vm7, %v1163_v44  ;;  %vm7572_vm7 = vcmask 685696  }
 0x28a   :  { %1029 = vst.msk [vmem:[#allocation2 + $0x58] sm:$0x3f] %vm7563_vm8, %v1017_v57  ;;  %vm7573_vm8 = vmmov %vm7568_vm3 }
 0x28c   :  { %v1238_v58 = vpop.permute.xlu1 %1237 }
 0x28d   :  { %v1090_v59 = vpop.permute.xlu0 %1089  ;;  %1251 = vst.msk [vmem:[#allocation2 + $0x50] sm:$0x3f] %vm7564_vm9, %v1238_v58  ;;  %vm7574_vm9 = vmmov %vm7570_vm5 }
 0x28e   :  { %1102 = vst.msk [vmem:[#allocation2 + $0x58] sm:$0x3f] %vm7565_vm0, %v1090_v59  ;;  %vm7575_vm0 = vmmov %vm7572_vm7 }
 0x290   :  { %v1311_v60 = vpop.permute.xlu1 %1310 }
 0x291   :  { %v1165_v22 = vpop.permute.xlu0 %1164  ;;  %1324 = vst.msk [vmem:[#allocation2 + $0x50] sm:$0x3f] %vm7566_vm10, %v1311_v60  ;;  %vm7576_vm10 = vcmask 816896  }
 0x292   :  { %1177 = vst.msk [vmem:[#allocation2 + $0x58] sm:$0x3f] %vm7567_vm11, %v1165_v22  ;;  %vm7577_vm11 = vmmov %vm7576_vm10 }
 0x294   :  { %v1384_v61 = vpop.permute.xlu1 %1383 }
 0x295   :  { %v1240_v62 = vpop.permute.xlu0 %1239  ;;  %1397 = vst.msk [vmem:[#allocation2 + $0x50] sm:$0x3f] %vm7568_vm3, %v1384_v61  ;;  %vm3053_vm3 = vcmask 385344  }
 0x296   :  { %1252 = vst.msk [vmem:[#allocation2 + $0x58] sm:$0x3f] %vm7569_vm4, %v1240_v62  ;;  %vm3060_vm4 = vcmask 450944  }
 0x298   :  { %v1457_v63 = vpop.permute.xlu1 %1456 }
 0x299   :  { %v1313_v0 = vpop.permute.xlu0 %1312  ;;  %1470 = vst.msk [vmem:[#allocation2 + $0x50] sm:$0x3f] %vm7570_vm5, %v1457_v63  ;;  %vm3066_vm5 = vcmask 516544  }
 0x29a   :  { %1325 = vst.msk [vmem:[#allocation2 + $0x58] sm:$0x3f] %vm7571_vm6, %v1313_v0  ;;  %vm3073_vm6 = vcmask 582144  }
 0x29c   :  { %v1532_v1 = vpop.permute.xlu1 %1531 }
 0x29d   :  { %v1386_v2 = vpop.permute.xlu0 %1385  ;;  %1545 = vst.msk [vmem:[#allocation2 + $0x50] sm:$0x3f] %vm7572_vm7, %v1532_v1  ;;  %vm3086_vm7 = vcmask 647744  }
 0x29e   :  { %1398 = vst.msk [vmem:[#allocation2 + $0x58] sm:$0x3f] %vm7573_vm8, %v1386_v2  ;;  %vm3102_vm8 = vcmask 713344  }
 0x2a0   :  { %v1607_v3 = vpop.permute.xlu1 %1606 }
 0x2a1   :  { %v1459_v4 = vpop.permute.xlu0 %1458  ;;  %1620 = vst.msk [vmem:[#allocation2 + $0x50] sm:$0x3f] %vm1578_vm15, %v1607_v3 }
 0x2a2   :  { %1471 = vst.msk [vmem:[#allocation2 + $0x58] sm:$0x3f] %vm7574_vm9, %v1459_v4  ;;  %vm3109_vm9 = vcmask 778944  }
 0x2a4   :  { %v1680_v5 = vpop.permute.xlu1 %1679 }
 0x2a5   :  { %v1534_v6 = vpop.permute.xlu0 %1533  ;;  %1693 = vst.msk [vmem:[#allocation2 + $0x50] sm:$0x3f] %vm1652_vm2, %v1680_v5 }
 0x2a6   :  { %1546 = vst.msk [vmem:[#allocation2 + $0x58] sm:$0x3f] %vm7575_vm0, %v1534_v6  ;;  %vm3115_vm0 = vcmask 844544  }
 0x2a8   :  { %v1753_v7 = vpop.permute.xlu1 %1752 }
 0x2a9   :  { %v1609_v9 = vpop.permute.xlu0 %1608  ;;  %1766 = vst.msk [vmem:[#allocation2 + $0x50] sm:$0x3f] %vm1725_vm13, %v1753_v7 }
 0x2aa   :  { %1621 = vst.msk [vmem:[#allocation2 + $0x58] sm:$0x3f] %vm1578_vm15, %v1609_v9  ;;  %vm3024_vm15 = vcmask 254144  }
 0x2ac   :  { %v1826_v27 = vpop.permute.xlu1 %1825 }
 0x2ad   :  { %v1682_v10 = vpop.permute.xlu0 %1681  ;;  %1839 = vst.msk [vmem:[#allocation2 + $0x50] sm:$0x3f] %vm7576_vm10, %v1826_v27  ;;  %vm3122_vm10 = vcmask 910144  }
 0x2ae   :  { %1694 = vst.msk [vmem:[#allocation2 + $0x58] sm:$0x3f] %vm1652_vm2, %v1682_v10  ;;  %vm2996_vm2 = vcmask 57344  }
 0x2b0   :  { %v1828_v12 = vpop.permute.xlu1 %1827 }
 0x2b1   :  { %v1755_v11 = vpop.permute.xlu0 %1754 }
 0x2b2   :  { %1767 = vst.msk [vmem:[#allocation2 + $0x58] sm:$0x3f] %vm1725_vm13, %v1755_v11  ;;  %vm3011_vm13 = vcmask 122944  }
 0x2b3   :  { %1840 = vst.msk [vmem:[#allocation2 + $0x58] sm:$0x3f] %vm7577_vm11, %v1828_v12  ;;  %vm3135_vm11 = vcmask 975744  }
 0x2b4   :  { %v2786_v13 = vld [vmem:[#allocation2 + $0x50] sm:$0x3f] }
 0x2b5   :  { %4636 = vmatmul.mubr.msk.f32.vlgmr.msra.gmra.mrb[8].mxu0 %vm1862_vm14, %v2786_v13 }
 0x2ba   :  { %v2878_v15 = vld [vmem:[#allocation2 + $0x58] sm:$0x3f] }
 0x2bb   :  { %4665 = vmatmul.mubr.msk.f32.vlgmr.msra.gmra.mrb[12].mxu1 %vm1862_vm14, %v2878_v15  ;;  %vm3017_vm14 = vcmask 188544  }
 0x2bc   :  { %4671 = vmatprep.mubr.msk.f32.mxu1 %vm5014_vm1, %v5015_v36 }
 0x2c8   :  { %v2488_v16 = vpop.f32.mrb[4].mxu0 }
 0x2c9   :  { %v6930_v49 = vadd.f32 %v6785_v26, %v2488_v16  ;;  %v4521_v18 = vpop.f32.mrb[5].mxu0 }
 0x2cb   :  { %v2492_v20 = vsel %vm1940_vm12, %v6930_v49, 0.0  ;;  %v2500_v23 = vmul.f32 %v6930_v49, %v6930_v49 }
 0x2cc   :  { %v2493_v33 = vrot.slane %v2492_v20, 4 }
 0x2cd   :  { %v2501_v24 = vsel %vm1940_vm12, %v2500_v23, 0.0 }
 0x2ce   :  { %v2494_v31 = vadd.f32 %v2493_v33, %v2492_v20  ;;  %v2502_v32 = vrot.slane %v2501_v24, 4  ;;  %v2580_v30 = vpop.f32.mrb[8].mxu1 }
 0x2cf   :  { %v4550_v21 = vpop.f32.mrb[9].mxu1  ;;  %v6940_v46 = vadd.f32 %v6785_v26, %v2580_v30 }
 0x2d0   :  { %v2495_v17 = vrot.slane %v2494_v31, 2  ;;  %v2503_v8 = vadd.f32 %v2502_v32, %v2501_v24 }
 0x2d1   :  { %v2592_v47 = vmul.f32 %v6940_v46, %v6940_v46  ;;  %v2584_v48 = vsel %vm1940_vm12, %v6940_v46, 0.0 }
 0x2d2   :  { %v2496_v35 = vadd.f32 %v2495_v17, %v2494_v31  ;;  %v2504_v37 = vrot.slane %v2503_v8, 2  ;;  %v2585_v54 = vrot.slane %v2584_v48, 4 }
 0x2d3   :  { %v2593_v51 = vsel %vm1940_vm12, %v2592_v47, 0.0 }
 0x2d4   :  { %v2497_v38 = vrot.slane %v2496_v35, 1  ;;  %v2505_v41 = vadd.f32 %v2504_v37, %v2503_v8  ;;  %v2594_v55 = vrot.slane %v2593_v51, 4  ;;  %v2586_v56 = vadd.f32 %v2585_v54, %v2584_v48 }
 0x2d6   :  { %v2498_v39 = vadd.f32 %v2497_v38, %v2496_v35  ;;  %v2506_v42 = vrot.slane %v2505_v41, 1  ;;  %v2587_v59 = vrot.slane %v2586_v56, 2 }
 0x2d8   :  { %v2499_v43 = vadd.f32 %v2498_v39, %v6895_v50  ;;  %v2507_v45 = vadd.f32 %v2506_v42, %v2505_v41  ;;  %v2588_v0 = vadd.f32 %v2587_v59, %v2586_v56 }
 0x2da   :  { %v2508_v14 = vadd.f32 %v2507_v45, %v6897_v53  ;;  %v2595_v53 = vadd.f32 %v2594_v55, %v2593_v51  ;;  %v2589_v11 = vrot.slane %v2588_v0, 1 }
 0x2dc   :  { %v2596_v61 = vrot.slane %v2595_v53, 2  ;;  %v2590_v33 = vadd.f32 %v2589_v11, %v2588_v0 }
 0x2de   :  { %v2597_v6 = vadd.f32 %v2596_v61, %v2595_v53  ;;  %v2591_v35 = vadd.f32 %v2590_v33, %v2499_v43 }
 0x2e0   :  { %v2598_v16 = vrot.slane %v2597_v6, 1 }
 0x2e2   :  { %v2599_v30 = vadd.f32 %v2598_v16, %v2597_v6 }
 0x2e4   :  { %v2600_v39 = vadd.f32 %v2599_v30, %v2508_v14 }
 0x328   :  { %v2672_v52 = vpop.f32.mrb[6].mxu0 }
 0x329   :  { %v6948_v50 = vadd.f32 %v6785_v26, %v2672_v52  ;;  %v4579_v44 = vpop.f32.mrb[7].mxu0 }
 0x32b   :  { %v2676_v57 = vsel %vm1940_vm12, %v6948_v50, 0.0  ;;  %v2684_v58 = vmul.f32 %v6948_v50, %v6948_v50 }
 0x32c   :  { %v2677_v60 = vrot.slane %v2676_v57, 4 }
 0x32d   :  { %v2685_v22 = vsel %vm1940_vm12, %v2684_v58, 0.0 }
 0x32e   :  { %v2678_v62 = vadd.f32 %v2677_v60, %v2676_v57  ;;  %v2686_v63 = vrot.slane %v2685_v22, 4 }
 0x330   :  { %v2679_v1 = vrot.slane %v2678_v62, 2  ;;  %v2687_v2 = vadd.f32 %v2686_v63, %v2685_v22 }
 0x331   :  { %v2764_v3 = vpop.f32.mrb[10].mxu1 }
 0x332   :  { %v6956_v4 = vadd.f32 %v6785_v26, %v2764_v3  ;;  %v4608_v5 = vpop.f32.mrb[11].mxu1  ;;  %v2680_v7 = vadd.f32 %v2679_v1, %v2678_v62  ;;  %v2688_v9 = vrot.slane %v2687_v2, 2 }
 0x334   :  { %v2768_v27 = vsel %vm1940_vm12, %v6956_v4, 0.0  ;;  %v2776_v10 = vmul.f32 %v6956_v4, %v6956_v4  ;;  %v2689_v12 = vadd.f32 %v2688_v9, %v2687_v2  ;;  %v2681_v18 = vrot.slane %v2680_v7, 1 }
 0x335   :  { %v2769_v13 = vrot.slane %v2768_v27, 4 }
 0x336   :  { %v2777_v15 = vsel %vm1940_vm12, %v2776_v10, 0.0  ;;  %v2690_v24 = vrot.slane %v2689_v12, 1  ;;  %v2682_v21 = vadd.f32 %v2681_v18, %v2680_v7 }
 0x337   :  { %v2770_v20 = vadd.f32 %v2769_v13, %v2768_v27  ;;  %v2778_v23 = vrot.slane %v2777_v15, 4 }
 0x338   :  { %v2691_v37 = vadd.f32 %v2690_v24, %v2689_v12  ;;  %v2683_v42 = vadd.f32 %v2682_v21, %v2591_v35 }
 0x339   :  { %v2771_v31 = vrot.slane %v2770_v20, 2  ;;  %v2779_v32 = vadd.f32 %v2778_v23, %v2777_v15 }
 0x33a   :  { %v2692_v48 = vadd.f32 %v2691_v37, %v2600_v39 }
 0x33b   :  { %v2772_v17 = vadd.f32 %v2771_v31, %v2770_v20  ;;  %v2780_v8 = vrot.slane %v2779_v32, 2 }
 0x33d   :  { %v2773_v38 = vrot.slane %v2772_v17, 1  ;;  %v2781_v41 = vadd.f32 %v2780_v8, %v2779_v32 }
 0x33f   :  { %v2774_v45 = vadd.f32 %v2773_v38, %v2772_v17  ;;  %v2782_v47 = vrot.slane %v2781_v41, 1 }
 0x341   :  { %v2775_v51 = vadd.f32 %v2774_v45, %v2683_v42  ;;  %v2783_v54 = vadd.f32 %v2782_v47, %v2781_v41  ;;  %v2982_v42 = vlaneseq  ;;  %v2974_v47 = vld [vmem:[%s7578_s23] sm:$0x1] }
 0x343   :  { %v2784_v55 = vadd.f32 %v2783_v54, %v2692_v48  ;;  %v2983_v45 = vshrl.u32 %v2982_v42, 7  ;;  %v5020_v48 = vmov 1983009808  }
 0x345   :  { %v6977_v54 = vsub.s32 0, %v2983_v45 }
 0x388   :  { %v2856_v56 = vpop.f32.mrb[8].mxu0 }
 0x389   :  { %v6964_v52 = vadd.f32 %v6785_v26, %v2856_v56  ;;  %v4637_v44 = vpop.f32.mrb[9].mxu0 }
 0x38a   :  { %v2978_v44 = vld [vmem:[%s7579_s16] sm:$0x1]  ;;  %s5023_s16 = smov 120  }
 0x38b   :  { %v2860_v53 = vsel %vm1940_vm12, %v6964_v52, 0.0  ;;  %v2868_v43 = vmul.f32 %v6964_v52, %v6964_v52 }
 0x38c   :  { %v2861_v57 = vrot.slane %v2860_v53, 4 }
 0x38d   :  { %v2869_v14 = vsel %vm1940_vm12, %v2868_v43, 0.0 }
 0x38e   :  { %v2948_v58 = vpop.f32.mrb[12].mxu1  ;;  %v2862_v59 = vadd.f32 %v2861_v57, %v2860_v53  ;;  %v2870_v60 = vrot.slane %v2869_v14, 4 }
 0x38f   :  { %v2949_v22 = vadd.f32 %v6785_v26, %v2948_v58  ;;  %v4666_v61 = vpop.f32.mrb[13].mxu1 }
 0x390   :  { %v2863_v62 = vrot.slane %v2862_v59, 2  ;;  %v2871_v63 = vadd.f32 %v2870_v60, %v2869_v14 }
 0x391   :  { %v2952_v0 = vsel %vm1940_vm12, %v2949_v22, 0.0  ;;  %v2960_v1 = vmul.f32 %v2949_v22, %v2949_v22 }
 0x392   :  { %v2953_v2 = vrot.slane %v2952_v0, 4  ;;  %v2864_v3 = vadd.f32 %v2863_v62, %v2862_v59  ;;  %v2872_v5 = vrot.slane %v2871_v63, 2 }
 0x393   :  { %v2961_v6 = vsel %vm1940_vm12, %v2960_v1, 0.0  ;;  %vm3037_vm12 = vcmask 319744  }
 0x394   :  { %v2954_v7 = vadd.f32 %v2953_v2, %v2952_v0  ;;  %v2962_v9 = vrot.slane %v2961_v6, 4  ;;  %v2865_v27 = vrot.slane %v2864_v3, 1  ;;  %v2873_v10 = vadd.f32 %v2872_v5, %v2871_v63 }
 0x396   :  { %v2955_v11 = vrot.slane %v2954_v7, 2  ;;  %v2963_v12 = vadd.f32 %v2962_v9, %v2961_v6  ;;  %v2866_v13 = vadd.f32 %v2865_v27, %v2864_v3  ;;  %v2874_v15 = vrot.slane %v2873_v10, 1 }
 0x398   :  { %v2956_v26 = vadd.f32 %v2955_v11, %v2954_v7  ;;  %v2964_v16 = vrot.slane %v2963_v12, 2  ;;  %v2875_v18 = vadd.f32 %v2874_v15, %v2873_v10  ;;  %v2867_v20 = vadd.f32 %v2866_v13, %v2775_v51 }
 0x399   :  { %v3000_v51 = vunpack.c.l.s4 %v5020_v48 }
 0x39a   :  { %v2957_v23 = vrot.slane %v2956_v26, 1  ;;  %v2965_v33 = vadd.f32 %v2964_v16, %v2963_v12  ;;  %v2876_v24 = vadd.f32 %v2875_v18, %v2784_v55 }
 0x39b   :  { %v3001_v53 = vunpack.c.0.s8 %v3000_v51 }
 0x39c   :  { %v2958_v31 = vadd.f32 %v2957_v23, %v2956_v26  ;;  %v2966_v32 = vrot.slane %v2965_v33, 1 }
 0x39d   :  { %v6985_v60 = vsub.s32 %v3001_v53, %v2983_v45 }
 0x39e   :  { %v2959_v30 = vadd.f32 %v2958_v31, %v2867_v20  ;;  %v2967_v21 = vadd.f32 %v2966_v32, %v2965_v33 }
 0x3a0   :  { %v2968_v17 = vadd.f32 %v2967_v21, %v2876_v24  ;;  %v2969_v8 = vmul.f32 0.013888889, %v2959_v30 }
 0x3a2   :  { %v2970_v35 = vmul.f32 0.013888889, %v2968_v17  ;;  %v2971_v37 = vmul.f32 %v2969_v8, %v2969_v8 }
 0x3a4   :  { %v2972_v38 = vsub.f32 %v2970_v35, %v2971_v37 }
 0x3a6   :  { %v2973_v41 = vmax.f32 %v2972_v38, 0.0 }
 0x3a8   :  { %v2975_v39 = vadd.f32 1e-05, %v2973_v41 }
 0x3aa   :  { %4981 = vrsqrt.f32 %v2975_v39 }
 0x3b4   :  { %v4982_v55 = vpop.eup %4981 }
 0x3b5   :  { %v2977_v56 = vmul.f32 %v4982_v55, %v2974_v47 }
 0x3b7   :  { %v2979_v43 = vmul.f32 %v2977_v56, %v2969_v8  ;;  %v2985_v57 = vrot.slane %v2977_v56, %v6977_v54 }
 0x3b9   :  { %v2980_v14 = vsub.f32 %v2978_v44, %v2979_v43  ;;  %v3224_v58 = vmul.f32 %v2985_v57, %v6930_v49  ;;  %v2987_v59 = vmul.f32 %v2985_v57, %v6795_v29  ;;  %v3353_v22 = vmul.f32 %v2985_v57, %v6956_v4 }
 0x3ba   :  { %v3265_v62 = vmul.f32 %v2985_v57, %v6940_v46  ;;  %v3039_v63 = vmul.f32 %v2985_v57, %v6791_v28  ;;  %v3395_v0 = vmul.f32 %v2985_v57, %v6964_v52  ;;  %v3137_v1 = vmul.f32 %v2985_v57, %v6818_v40 }
 0x3bb   :  { %v2992_v61 = vrot.slane %v2980_v14, %v6977_v54  ;;  %v3088_v2 = vmul.f32 %v2985_v57, %v6799_v34  ;;  %v3309_v49 = vmul.f32 %v2985_v57, %v6948_v50  ;;  %v3180_v16 = vmul.f32 %v2985_v57, %v6860_v25 }
 0x3bd   :  { %v3225_v29 = vadd.f32 %v3224_v58, %v2992_v61  ;;  %v2994_v3 = vadd.f32 %v2992_v61, %v2987_v59  ;;  %v3266_v5 = vadd.f32 %v3265_v62, %v2992_v61  ;;  %v3040_v6 = vadd.f32 %v3039_v63, %v2992_v61 }
 0x3be   :  { %v3138_v4 = vadd.f32 %v3137_v1, %v2992_v61  ;;  %v3354_v7 = vadd.f32 %v3353_v22, %v2992_v61  ;;  %v3089_v9 = vadd.f32 %v3088_v2, %v2992_v61  ;;  %v3310_v27 = vadd.f32 %v3309_v49, %v2992_v61  ;;  %v3440_v49 = vld [vmem:[%s7580_s24] sm:$0xff] }
 0x3bf   :  { %v3226_v46 = vmax.f32 %v3225_v29, 0.0  ;;  %v2995_v10 = vmax.f32 %v2994_v3, 0.0  ;;  %v3181_v33 = vadd.f32 %v3180_v16, %v2992_v61  ;;  %v3396_v24 = vadd.f32 %v3395_v0, %v2992_v61  ;;  %v3441_v29 = vld [vmem:[%s7580_s24 + $0x8] sm:$0xff] }
 0x3c0   :  { %v7001_v50 = vmax.f32 %v3138_v4, 0.0  ;;  %v7003_v11 = vmax.f32 %v3089_v9, 0.0  ;;  %v7005_v15 = vmax.f32 %v3354_v7, 0.0  ;;  %v7007_v26 = vmax.f32 %v3310_v27, 0.0  ;;  %v3442_v7 = vld [vmem:[%s7580_s24 + $0x10] sm:$0xff]  ;;  %v3443_v9 = vld [vmem:[%s7580_s24 + $0x18] sm:$0xff] }
 0x3c1   :  { %v3235_v28 = vrot.slane %v3226_v46, %v6985_v60  ;;  %v3005_v52 = vrot.slane %v2995_v10, %v6985_v60  ;;  %3227 = vst.msk [vmem:[#allocation3 + $0x1] sm:$0x1] %vm2996_vm2, %v3226_v46  ;;  %2997 = vst.msk [vmem:[#allocation3] sm:$0x1] %vm2996_vm2, %v2995_v10  ;;  %v3253_v18 = vcombine.high %v3226_v46, %v3226_v46  ;;  %v7024_v17 = vmax.f32 %v3181_v33, 0.0 }
 0x3c2   :  { %v3026_v20 = vcombine.high %v2995_v10, %v2995_v10  ;;  %v7014_v23 = vrot.slane %v7001_v50, %v6985_v60  ;;  %v3124_v31 = vcombine.high %v7003_v11, %v7003_v11  ;;  %v7020_v25 = vrot.slane %v7005_v15, %v6985_v60 }
 0x3c3   :  { %v4125_v34 = vrot.slane %v3235_v28, 9  ;;  %v4115_v40 = vrot.slane %v3005_v52, 9  ;;  %v3242_v12 = vcombine.high %v3235_v28, %v3235_v28  ;;  %v3013_v13 = vcombine.high %v3005_v52, %v3005_v52  ;;  %v3444_v52 = vld [vmem:[%s7580_s24 + $0x20] sm:$0xff] }
 0x3c4   :  { %v3341_v21 = vcombine.high %v7007_v26, %v7007_v26  ;;  %v7026_v8 = vmax.f32 %v3396_v24, 0.0  ;;  %v7029_v35 = vrot.slane %v3124_v31, %v6985_v60  ;;  %v3267_v38 = vmax.f32 %v3266_v5, 0.0 }
 0x3c5   :  { %3238 = vrot.lane.b32.xlu1 %v4125_v34, %s7403_s5  ;;  %3008 = vrot.lane.b32.xlu0 %v4115_v40, %s7403_s5  ;;  %v4126_v32 = vrot.slane %v3242_v12, 9  ;;  %v4116_v30 = vrot.slane %v3013_v13, 9  ;;  %v3041_v41 = vmax.f32 %v3040_v6, 0.0  ;;  %v3212_v39 = vcombine.high %v7024_v17, %v7024_v17  ;;  %v3445_v34 = vld [vmem:[%s7580_s24 + $0x28] sm:$0xff] }
 0x3c6   :  { %v7034_v37 = vrot.slane %v3341_v21, %v6985_v60  ;;  %v3427_v42 = vcombine.high %v7026_v8, %v7026_v8  ;;  %v3260_v45 = vrot.slane %v3253_v18, %v6985_v60  ;;  %v3033_v47 = vrot.slane %v3026_v20, %v6985_v60  ;;  %v3448_v18 = vld [vmem:[%s7580_s24 + $0x40] sm:$0xff]  ;;  %v3449_v20 = vld [vmem:[%s7580_s24 + $0x48] sm:$0xff] }
 0x3c7   :  { %v4121_v48 = vrot.slane %v7014_v23, 9  ;;  %v4131_v51 = vrot.slane %v7020_v25, 9  ;;  %v7047_v55 = vrot.slane %v3212_v39, %v6985_v60  ;;  %v3275_v44 = vrot.slane %v3267_v38, %v6985_v60 }
 0x3c8   :  { %v7050_v56 = vrot.slane %v3427_v42, %v6985_v60  ;;  %v3049_v53 = vrot.slane %v3041_v41, %v6985_v60  ;;  %v3157_v59 = vcombine.high %v7014_v23, %v7014_v23  ;;  %v3372_v61 = vcombine.high %v7020_v25, %v7020_v25 }
 0x3c9   :  { %3243 = vrot.lane.b32.xlu1 %v3242_v12, %s7406_s2  ;;  %3014 = vrot.lane.b32.xlu0 %v3013_v13, %s7406_s2  ;;  %3156 = vst.msk [vmem:[#allocation3 + $0x2] sm:$0x1] %vm2996_vm2, %v4121_v48  ;;  %3371 = vst.msk [vmem:[#allocation3 + $0x3] sm:$0x1] %vm2996_vm2, %v4131_v51  ;;  %v4127_v43 = vrot.slane %v3275_v44, 9  ;;  %v3286_v14 = vcombine.high %v3275_v44, %v3275_v44  ;;  %v3075_v63 = vcombine.high %v3041_v41, %v3041_v41  ;;  %v3446_v12 = vld [vmem:[%s7580_s24 + $0x30] sm:$0xff] }
 0x3ca   :  { %v4117_v57 = vrot.slane %v3049_v53, 9  ;;  %v3062_v58 = vcombine.high %v3049_v53, %v3049_v53  ;;  %v4122_v0 = vrot.slane %v3157_v59, 9  ;;  %v3297_v2 = vcombine.high %v3267_v38, %v3267_v38  ;;  %v3447_v13 = vld [vmem:[%s7580_s24 + $0x38] sm:$0xff] }
 0x3cb   :  { %v4128_v62 = vrot.slane %v3286_v14, 9  ;;  %v3082_v1 = vrot.slane %v3075_v63, %v6985_v60  ;;  %v4902_v3 = vpack.c.bf16 %v3441_v29, %v3440_v49  ;;  %v4132_v5 = vrot.slane %v3372_v61, 9  ;;  %v3460_v63 = vld [vmem:[%s7580_s24 + $0xa0] sm:$0xff]  ;;  %v3463_v49 = vld [vmem:[%s7580_s24 + $0xb8] sm:$0xff] }
 0x3cc   :  { %v4118_v22 = vrot.slane %v3062_v58, 9  ;;  %v3304_v6 = vrot.slane %v3297_v2, %v6985_v60  ;;  %v3168_v4 = vcombine.high %v7001_v50, %v7001_v50  ;;  %v4905_v27 = vpack.c.bf16 %v3443_v9, %v3442_v7  ;;  %v3462_v2 = vld [vmem:[%s7580_s24 + $0xb0] sm:$0xff] }
 0x3cd   :  { %3249 = vrot.lane.b32.xlu1 %v4126_v32, %s7408_s6  ;;  %3021 = vrot.lane.b32.xlu0 %v4116_v30, %s7408_s6  ;;  %v3098_v10 = vrot.slane %v7003_v11, %v6985_v60  ;;  %v3383_v28 = vcombine.high %v7005_v15, %v7005_v15  ;;  %v4908_v40 = vpack.c.bf16 %v3445_v34, %v3444_v52  ;;  %v3450_v32 = vld [vmem:[%s7580_s24 + $0x50] sm:$0xff]  ;;  %v3451_v30 = vld [vmem:[%s7580_s24 + $0x58] sm:$0xff]  ;;  %vm3151_vm2 = vcmask 1041344  }
 0x3ce   :  { %4903 = vmatpush1.bf16.msra.mxu0 %v4902_v3  ;;  %v3175_v46 = vrot.slane %v3168_v4, %v6985_v60  ;;  %v3319_v11 = vrot.slane %v7007_v26, %v6985_v60  ;;  %v4911_v15 = vpack.c.bf16 %v3447_v13, %v3446_v12  ;;  %v3190_v16 = vrot.slane %v7024_v17, %v6985_v60 }
 0x3cf   :  { %4904 = vmatprep.subr.bf16.mxu0 %v5009_v19  ;;  %v3390_v50 = vrot.slane %v3383_v28, %v6985_v60  ;;  %v4119_v26 = vrot.slane %v3098_v10, 9  ;;  %v4914_v33 = vpack.c.bf16 %v3449_v20, %v3448_v18  ;;  %v3405_v24 = vrot.slane %v7026_v8, %v6985_v60  ;;  %v3452_v60 = vld [vmem:[%s7580_s24 + $0x60] sm:$0xff]  ;;  %v3453_v8 = vld [vmem:[%s7580_s24 + $0x68] sm:$0xff] }
 0x3d0   :  { %v4129_v31 = vrot.slane %v3319_v11, 9  ;;  %v4917_v21 = vpack.c.bf16 %v3451_v30, %v3450_v32  ;;  %v4123_v17 = vrot.slane %v3190_v16, 9  ;;  %v3111_v38 = vcombine.high %v3098_v10, %v3098_v10 }
 0x3d1   :  { %3261 = vrot.lane.b32.xlu1 %v3260_v45, %s7409_s4  ;;  %3034 = vrot.lane.b32.xlu0 %v3033_v47, %s7409_s4  ;;  %v4920_v41 = vpack.c.bf16 %v3453_v8, %v3452_v60  ;;  %v4133_v39 = vrot.slane %v3405_v24, 9  ;;  %v3330_v42 = vcombine.high %v3319_v11, %v3319_v11  ;;  %v3454_v45 = vld [vmem:[%s7580_s24 + $0x70] sm:$0xff]  ;;  %v3455_v47 = vld [vmem:[%s7580_s24 + $0x78] sm:$0xff]  ;;  %v3201_v51 = vcombine.high %v3190_v16, %v3190_v16 }
 0x3d2   :  { %4906 = vmatpush1.bf16.msra.mxu0 %v4905_v27  ;;  %v4923_v48 = vpack.c.bf16 %v3455_v47, %v3454_v45  ;;  %v4935_v3 = vpack.c.bf16 %v3463_v49, %v3462_v2 }
 0x3d3   :  { %4907 = vmatprep.subr.bf16.mxu0 %v5009_v19 }
 0x3d5   :  { %3276 = vrot.lane.b32.xlu1 %v3275_v44, %s7484_s7  ;;  %3050 = vrot.lane.b32.xlu0 %v3049_v53, %s7484_s7  ;;  %v4120_v44 = vrot.slane %v3111_v38, 9  ;;  %v3456_v53 = vld [vmem:[%s7580_s24 + $0x80] sm:$0xff] }
 0x3d6   :  { %4909 = vmatpush1.bf16.msra.mxu0 %v4908_v40 }
 0x3d7   :  { %4910 = vmatprep.subr.bf16.mxu0 %v5009_v19 }
 0x3d9   :  { %3282 = vrot.lane.b32.xlu1 %v4127_v43, %s7389_s18  ;;  %3057 = vrot.lane.b32.xlu0 %v4117_v57, %s7389_s18  ;;  %v3457_v43 = vld [vmem:[%s7580_s24 + $0x88] sm:$0xff] }
 0x3da   :  { %4912 = vmatpush1.bf16.msra.mxu0 %v4911_v15  ;;  %v4926_v57 = vpack.c.bf16 %v3457_v43, %v3456_v53 }
 0x3db   :  { %4913 = vmatprep.subr.bf16.mxu0 %v5009_v19 }
 0x3dd   :  { %3287 = vrot.lane.b32.xlu1 %v3286_v14, %s7391_s30  ;;  %3063 = vrot.lane.b32.xlu0 %v3062_v58, %s7391_s30  ;;  %v3416_v14 = vcombine.high %v3405_v24, %v3405_v24  ;;  %v4130_v58 = vrot.slane %v3330_v42, 9 }
 0x3de   :  { %4915 = vmatpush1.bf16.msra.mxu0 %v4914_v33 }
 0x3df   :  { %4916 = vmatprep.subr.bf16.mxu0 %v5009_v19  ;;  %v4134_v29 = vrot.slane %v3416_v14, 9 }
 0x3e1   :  { %3158 = vrot.lane.b32.xlu1 %v3157_v59, %s7403_s5  ;;  %3070 = vrot.lane.b32.xlu0 %v4118_v22, %s7393_s28  ;;  %v3458_v59 = vld [vmem:[%s7580_s24 + $0x90] sm:$0xff]  ;;  %v3459_v22 = vld [vmem:[%s7580_s24 + $0x98] sm:$0xff] }
 0x3e2   :  { %4918 = vmatpush1.bf16.msra.mxu0 %v4917_v21 }
 0x3e3   :  { %4919 = vmatprep.subr.bf16.mxu0 %v5009_v19 }
 0x3e5   :  { %3373 = vrot.lane.b32.xlu1 %v3372_v61, %s7403_s5  ;;  %3293 = vrot.lane.b32.xlu0 %v4128_v62, %s7393_s28  ;;  %v4929_v61 = vpack.c.bf16 %v3459_v22, %v3458_v59  ;;  %v4124_v62 = vrot.slane %v3201_v51, 9 }
 0x3e6   :  { %4921 = vmatpush1.bf16.msra.mxu0 %v4920_v41 }
 0x3e7   :  { %4922 = vmatprep.subr.bf16.mxu0 %v5009_v19 }
 0x3e9   :  { %3164 = vrot.lane.b32.xlu1 %v4122_v0, %s7406_s2  ;;  %3083 = vrot.lane.b32.xlu0 %v3082_v1, %s7395_s12  ;;  %v3461_v0 = vld [vmem:[%s7580_s24 + $0xa8] sm:$0xff] }
 0x3ea   :  { %4924 = vmatpush1.bf16.msra.mxu0 %v4923_v48  ;;  %v4932_v1 = vpack.c.bf16 %v3461_v0, %v3460_v63  ;;  %v4135_v0 = vld [vmem:[%s7583_s3] ss:$0 sm:$0xff] }
 0x3eb   :  { %4925 = vmatprep.subr.bf16.mxu0 %v5009_v19 }
 0x3ed   :  { %3379 = vrot.lane.b32.xlu1 %v4132_v5, %s7406_s2  ;;  %3305 = vrot.lane.b32.xlu0 %v3304_v6, %s7395_s12  ;;  %s5021_s2 = smov 104  }
 0x3ee   :  { %4927 = vmatpush1.bf16.msra.mxu0 %v4926_v57 }
 0x3ef   :  { %4928 = vmatprep.subr.bf16.mxu0 %v5009_v19 }
 0x3f1   :  { %3176 = vrot.lane.b32.xlu1 %v3175_v46, %s7408_s6  ;;  %3099 = vrot.lane.b32.xlu0 %v3098_v10, %s7397_s27 }
 0x3f2   :  { %4930 = vmatpush1.bf16.msra.mxu0 %v4929_v61 }
 0x3f3   :  { %4931 = vmatprep.subr.bf16.mxu0 %v5009_v19 }
 0x3f5   :  { %3391 = vrot.lane.b32.xlu1 %v3390_v50, %s7408_s6  ;;  %3320 = vrot.lane.b32.xlu0 %v3319_v11, %s7397_s27 }
 0x3f6   :  { %4933 = vmatpush1.bf16.msra.mxu0 %v4932_v1 }
 0x3f7   :  { %4934 = vmatprep.subr.bf16.mxu0 %v5009_v19 }
 0x3f9   :  { %3191 = vrot.lane.b32.xlu1 %v3190_v16, %s7409_s4  ;;  %3106 = vrot.lane.b32.xlu0 %v4119_v26, %s7399_s8 }
 0x3fa   :  { %4936 = vmatpush1.bf16.msra.mxu0 %v4935_v3 }
 0x3fb   :  { %3533 = vmatprep.subr.mxu0 %v5015_v36 }
 0x3fd   :  { %3406 = vrot.lane.b32.xlu1 %v3405_v24, %s7409_s4  ;;  %3326 = vrot.lane.b32.xlu0 %v4129_v31, %s7399_s8  ;;  %s7582_s4 = sld [smem:[#allocation10_spill]]  ;;  %s5025_s8 = smov 127  }
 0x401   :  { %3197 = vrot.lane.b32.xlu1 %v4123_v17, %s7484_s7  ;;  %3112 = vrot.lane.b32.xlu0 %v3111_v38, %s7401_s13 }
 0x403   :  { %v3679_v61 = vld [vmem:[%s7582_s4] sm:$0xff] }
 0x405   :  { %3412 = vrot.lane.b32.xlu1 %v4133_v39, %s7484_s7  ;;  %3331 = vrot.lane.b32.xlu0 %v3330_v42, %s7401_s13  ;;  %s7584_s13 = sld [smem:[#allocation12_spill]] }
 0x409   :  { %3202 = vrot.lane.b32.xlu1 %v3201_v51, %s7389_s18  ;;  %3119 = vrot.lane.b32.xlu0 %v4120_v44, %s5021_s2 }
 0x40d   :  { %3417 = vrot.lane.b32.xlu1 %v3416_v14, %s7389_s18  ;;  %3337 = vrot.lane.b32.xlu0 %v4130_v58, %s5021_s2 }
 0x411   :  { %3208 = vrot.lane.b32.xlu1 %v4124_v62, %s7391_s30  ;;  %3132 = vrot.lane.b32.xlu0 %v7029_v35, %s5022_s21  ;;  %v3464_v35 = vld [vmem:[%s7580_s24 + $0xc0] sm:$0xff]  ;;  %s7581_s24 = sld [smem:[#allocation9_spill]]  ;;  %v3680_v62 = vld [vmem:[%s7582_s4 + $0x8] sm:$0xff] }
 0x412   :  { %3534 = vmatpush1.msra.mxu0 %v3464_v35  ;;  %v4941_v63 = vpack.c.bf16 %v3680_v62, %v3679_v61 }
 0x413   :  { %4940 = vmatprep.subr.bf16.mxu0 %v5009_v19 }
 0x415   :  { %3423 = vrot.lane.b32.xlu1 %v4134_v29, %s7391_s30  ;;  %3349 = vrot.lane.b32.xlu0 %v7034_v37, %s5022_s21  ;;  %s7588_s30 = sld [smem:[#allocation16_spill]] }
 0x417   :  { %v3594_v58 = vld [vmem:[%s7581_s24] sm:$0xff]  ;;  %v3595_v59 = vld [vmem:[%s7581_s24 + $0x8] sm:$0xff] }
 0x418   :  { %v4938_v22 = vpack.c.bf16 %v3595_v59, %v3594_v58 }
 0x419   :  { %3220 = vrot.lane.b32.xlu1 %v7047_v55, %s7393_s28  ;;  %3148 = vrot.lane.b32.xlu0 %v7014_v23, %s5023_s16 }
 0x41a   :  { %4939 = vmatpush3.bf16.msra.mxu1 %v4938_v22 }
 0x41d   :  { %3435 = vrot.lane.b32.xlu1 %v7050_v56, %s7393_s28  ;;  %3364 = vrot.lane.b32.xlu0 %v7020_v25, %s5023_s16  ;;  %s7587_s16 = sld [smem:[#allocation15_spill]] }
 0x423   :  { %3678 = vst [vmem:[%s7587_s16] sm:$0x3] %v5015_v36 }
 0x437   :  { %v3239_v37 = vpop.permute.xlu1 %3238  ;;  %v3009_v55 = vpop.permute.xlu0 %3008 }
 0x438   :  { %3241 = vst.msk [vmem:[#allocation3 + $0x1] sm:$0x1] %vm3011_vm13, %v3239_v37  ;;  %3012 = vst.msk [vmem:[#allocation3] sm:$0x1] %vm3011_vm13, %v3009_v55 }
 0x43b   :  { %v3244_v23 = vpop.permute.xlu1 %3243  ;;  %v3015_v5 = vpop.permute.xlu0 %3014 }
 0x43c   :  { %3246 = vst.msk [vmem:[#allocation3 + $0x1] sm:$0x1] %vm3017_vm14, %v3244_v23  ;;  %3018 = vst.msk [vmem:[#allocation3] sm:$0x1] %vm3017_vm14, %v3015_v5 }
 0x43f   :  { %v3250_v56 = vpop.permute.xlu1 %3249  ;;  %v3022_v6 = vpop.permute.xlu0 %3021 }
 0x440   :  { %3252 = vst.msk [vmem:[#allocation3 + $0x1] sm:$0x1] %vm3024_vm15, %v3250_v56  ;;  %3025 = vst.msk [vmem:[#allocation3] sm:$0x1] %vm3024_vm15, %v3022_v6 }
 0x443   :  { %v3262_v25 = vpop.permute.xlu1 %3261  ;;  %v3035_v4 = vpop.permute.xlu0 %3034 }
 0x444   :  { %3264 = vst.msk [vmem:[#allocation3 + $0x1] sm:$0x1] %vm3037_vm12, %v3262_v25  ;;  %3038 = vst.msk [vmem:[#allocation3] sm:$0x1] %vm3037_vm12, %v3035_v4 }
 0x447   :  { %v3277_v7 = vpop.permute.xlu1 %3276  ;;  %v3051_v9 = vpop.permute.xlu0 %3050 }
 0x448   :  { %3279 = vst.msk [vmem:[#allocation3 + $0x1] sm:$0x1] %vm3053_vm3, %v3277_v7  ;;  %3054 = vst.msk [vmem:[#allocation3] sm:$0x1] %vm3053_vm3, %v3051_v9 }
 0x44b   :  { %v3283_v27 = vpop.permute.xlu1 %3282  ;;  %v3058_v46 = vpop.permute.xlu0 %3057 }
 0x44c   :  { %3285 = vst.msk [vmem:[#allocation3 + $0x1] sm:$0x1] %vm3060_vm4, %v3283_v27  ;;  %3061 = vst.msk [vmem:[#allocation3] sm:$0x1] %vm3060_vm4, %v3058_v46 }
 0x44f   :  { %v3288_v10 = vpop.permute.xlu1 %3287  ;;  %v3064_v28 = vpop.permute.xlu0 %3063 }
 0x450   :  { %3290 = vst.msk [vmem:[#allocation3 + $0x1] sm:$0x1] %vm3066_vm5, %v3288_v10  ;;  %3067 = vst.msk [vmem:[#allocation3] sm:$0x1] %vm3066_vm5, %v3064_v28 }
 0x453   :  { %v3159_v52 = vpop.permute.xlu1 %3158  ;;  %v3071_v34 = vpop.permute.xlu0 %3070 }
 0x454   :  { %3161 = vst.msk [vmem:[#allocation3 + $0x2] sm:$0x1] %vm3011_vm13, %v3159_v52 }
 0x455   :  { %3074 = vst.msk [vmem:[#allocation3] sm:$0x1] %vm3073_vm6, %v3071_v34  ;;  %v3574_v34 = vld [vmem:[%s7584_s13] sm:$0x1] }
 0x457   :  { %v3374_v40 = vpop.permute.xlu1 %3373  ;;  %v3294_v50 = vpop.permute.xlu0 %3293 }
 0x458   :  { %3376 = vst.msk [vmem:[#allocation3 + $0x3] sm:$0x1] %vm3011_vm13, %v3374_v40  ;;  %vm3482_vm13 = vcmask 588800  }
 0x459   :  { %3296 = vst.msk [vmem:[#allocation3 + $0x1] sm:$0x1] %vm3073_vm6, %v3294_v50 }
 0x45b   :  { %v3165_v11 = vpop.permute.xlu1 %3164  ;;  %v3084_v12 = vpop.permute.xlu0 %3083 }
 0x45c   :  { %3167 = vst.msk [vmem:[#allocation3 + $0x2] sm:$0x1] %vm3017_vm14, %v3165_v11 }
 0x45d   :  { %3087 = vst.msk [vmem:[#allocation3] sm:$0x1] %vm3086_vm7, %v3084_v12  ;;  %v4138_v12 = vld [vmem:[%s7585_s15] ss:$0 sm:$0xff] }
 0x45f   :  { %v3380_v13 = vpop.permute.xlu1 %3379  ;;  %v3306_v15 = vpop.permute.xlu0 %3305 }
 0x460   :  { %3382 = vst.msk [vmem:[#allocation3 + $0x3] sm:$0x1] %vm3017_vm14, %v3380_v13  ;;  %vm3603_vm14 = vcmask 130048  }
 0x461   :  { %3308 = vst.msk [vmem:[#allocation3 + $0x1] sm:$0x1] %vm3086_vm7, %v3306_v15  ;;  %vm3802_vm7 = vcmask 238784  }
 0x463   :  { %v3177_v16 = vpop.permute.xlu1 %3176  ;;  %v3100_v26 = vpop.permute.xlu0 %3099 }
 0x464   :  { %3179 = vst.msk [vmem:[#allocation3 + $0x2] sm:$0x1] %vm3024_vm15, %v3177_v16 }
 0x465   :  { %3103 = vst.msk [vmem:[#allocation3] sm:$0x1] %vm3102_vm8, %v3100_v26  ;;  %v3681_v26 = vld [vmem:[%s7582_s4 + $0x10] sm:$0xff] }
 0x467   :  { %v3392_v18 = vpop.permute.xlu1 %3391  ;;  %v3321_v20 = vpop.permute.xlu0 %3320 }
 0x468   :  { %3394 = vst.msk [vmem:[#allocation3 + $0x3] sm:$0x1] %vm3024_vm15, %v3392_v18  ;;  %v3682_v18 = vld [vmem:[%s7582_s4 + $0x18] sm:$0xff]  ;;  %vm3690_vm15 = vcmask 261120   ;;  %s5026_s4 = smov 15  }
 0x469   :  { %3323 = vst.msk [vmem:[#allocation3 + $0x1] sm:$0x1] %vm3102_vm8, %v3321_v20  ;;  %v4944_v20 = vpack.c.bf16 %v3682_v18, %v3681_v26 }
 0x46b   :  { %v3192_v33 = vpop.permute.xlu1 %3191  ;;  %v3107_v24 = vpop.permute.xlu0 %3106 }
 0x46c   :  { %3194 = vst.msk [vmem:[#allocation3 + $0x2] sm:$0x1] %vm3037_vm12, %v3192_v33 }
 0x46d   :  { %3110 = vst.msk [vmem:[#allocation3] sm:$0x1] %vm3109_vm9, %v3107_v24 }
 0x46f   :  { %v3407_v31 = vpop.permute.xlu1 %3406  ;;  %v3327_v32 = vpop.permute.xlu0 %3326 }
 0x470   :  { %3409 = vst.msk [vmem:[#allocation3 + $0x3] sm:$0x1] %vm3037_vm12, %v3407_v31  ;;  %vm3764_vm12 = vcmask 50184  }
 0x471   :  { %3329 = vst.msk [vmem:[#allocation3 + $0x1] sm:$0x1] %vm3109_vm9, %v3327_v32 }
 0x473   :  { %v3198_v30 = vpop.permute.xlu1 %3197  ;;  %v3113_v21 = vpop.permute.xlu0 %3112 }
 0x474   :  { %3200 = vst.msk [vmem:[#allocation3 + $0x2] sm:$0x1] %vm3053_vm3, %v3198_v30  ;;  %v4141_v30 = vld [vmem:[%s7588_s30] ss:$0 sm:$0xff] }
 0x475   :  { %3116 = vst.msk [vmem:[#allocation3] sm:$0x1] %vm3115_vm0, %v3113_v21 }
 0x477   :  { %v3413_v17 = vpop.permute.xlu1 %3412  ;;  %v3332_v38 = vpop.permute.xlu0 %3331 }
 0x478   :  { %3415 = vst.msk [vmem:[#allocation3 + $0x3] sm:$0x1] %vm3053_vm3, %v3413_v17  ;;  %vm3784_vm3 = vcmask 1024  }
 0x479   :  { %3334 = vst.msk [vmem:[#allocation3 + $0x1] sm:$0x1] %vm3115_vm0, %v3332_v38 }
 0x47b   :  { %v3203_v60 = vpop.permute.xlu1 %3202  ;;  %v3120_v8 = vpop.permute.xlu0 %3119 }
 0x47c   :  { %3205 = vst.msk [vmem:[#allocation3 + $0x2] sm:$0x1] %vm3060_vm4, %v3203_v60 }
 0x47d   :  { %3123 = vst.msk [vmem:[#allocation3] sm:$0x1] %vm3122_vm10, %v3120_v8 }
 0x47f   :  { %v3418_v41 = vpop.permute.xlu1 %3417  ;;  %v3338_v39 = vpop.permute.xlu0 %3337 }
 0x480   :  { %3420 = vst.msk [vmem:[#allocation3 + $0x3] sm:$0x1] %vm3060_vm4, %v3418_v41  ;;  %vm3790_vm4 = vcmask 107584  }
 0x481   :  { %3340 = vst.msk [vmem:[#allocation3 + $0x1] sm:$0x1] %vm3122_vm10, %v3338_v39 }
 0x483   :  { %v3209_v42 = vpop.permute.xlu1 %3208  ;;  %v3133_v45 = vpop.permute.xlu0 %3132 }
 0x484   :  { %3211 = vst.msk [vmem:[#allocation3 + $0x2] sm:$0x1] %vm3066_vm5, %v3209_v42 }
 0x485   :  { %3136 = vst.msk [vmem:[#allocation3] sm:$0x1] %vm3135_vm11, %v3133_v45 }
 0x487   :  { %v3424_v47 = vpop.permute.xlu1 %3423  ;;  %v3350_v48 = vpop.permute.xlu0 %3349 }
 0x488   :  { %3426 = vst.msk [vmem:[#allocation3 + $0x3] sm:$0x1] %vm3066_vm5, %v3424_v47  ;;  %vm3775_vm5 = vcmask 41984  }
 0x489   :  { %3352 = vst.msk [vmem:[#allocation3 + $0x1] sm:$0x1] %vm3135_vm11, %v3350_v48 }
 0x48b   :  { %v3221_v51 = vpop.permute.xlu1 %3220  ;;  %v3149_v44 = vpop.permute.xlu0 %3148 }
 0x48c   :  { %3223 = vst.msk [vmem:[#allocation3 + $0x2] sm:$0x1] %vm3073_vm6, %v3221_v51 }
 0x48d   :  { %3152 = vst.msk [vmem:[#allocation3] sm:$0x1] %vm3151_vm2, %v3149_v44 }
 0x48f   :  { %v3436_v53 = vpop.permute.xlu1 %3435  ;;  %v3365_v43 = vpop.permute.xlu0 %3364 }
 0x490   :  { %3438 = vst.msk [vmem:[#allocation3 + $0x3] sm:$0x1] %vm3073_vm6, %v3436_v53  ;;  %vm3796_vm6 = vcmask 173184  }
 0x491   :  { %3367 = vst.msk [vmem:[#allocation3 + $0x1] sm:$0x1] %vm3151_vm2, %v3365_v43 }
 0x498   :  { %v4136_v57 = vld.sshfl [vmem:[#allocation3] sm:$0x33 pattern:$0x76325410] }
 0x499   :  { %v3480_v14 = vcombine.high %v4136_v57, %v4136_v57 }
 0x49b   :  { %4137 = vmatprep.mubr.msk.f32.mxu0 %vm3482_vm13, %v3480_v14 }
 0x49c   :  { %3550 = vmatmul.mubr.f32.vlgmr.msra.gmra.mrb[10].mxu0 %v4136_v57 }
 0x49d   :  { %4682 = vmatprep.mubr.msk.f32.mxu0 %vm5014_vm1, %v5015_v36  ;;  %4942 = vmatpush3.bf16.msra.mxu0 %v4941_v63  ;;  %vm3555_vm1 = vcmask 123904  }
 0x49e   :  { %4943 = vmatprep.subr.bf16.mxu0 %v5009_v19 }
 0x4a1   :  { %4945 = vmatpush3.bf16.msra.mxu0 %v4944_v20 }
 0x56f   :  { %v3551_v1 = vpop.f32.mrb[10].mxu0 }
 0x570   :  { %v3552_v2 = vadd.f32 %v4135_v0, %v3551_v1  ;;  %v3553_v49 = vpop.f32.mrb[11].mxu0 }
 0x572   :  { %v3556_v29 = vsel %vm3555_vm1, %v3552_v2, 0.0 }
 0x573   :  { %v3557_v3 = vrot.slane %v3556_v29, 4 }
 0x575   :  { %v3558_v35 = vadd.f32 %v3557_v3, %v3556_v29 }
 0x577   :  { %v3559_v37 = vrot.slane %v3558_v35, 2 }
 0x579   :  { %v3560_v55 = vadd.f32 %v3559_v37, %v3558_v35 }
 0x57b   :  { %v3561_v23 = vrot.slane %v3560_v55, 1 }
 0x57d   :  { %v3562_v5 = vadd.f32 %v3561_v23, %v3560_v55 }
 0x57f   :  { %v3563_v56 = vmul.f32 0.5, %v3562_v5 }
 0x581   :  { %v3564_v6 = vsub.f32 %v3552_v2, %v3563_v56 }
 0x583   :  { %v3565_v25 = vmul.f32 %v3564_v6, %v3564_v6 }
 0x585   :  { %v3566_v4 = vsel %vm3555_vm1, %v3565_v25, 0.0 }
 0x586   :  { %v3567_v19 = vrot.slane %v3566_v4, 4 }
 0x588   :  { %v3568_v7 = vadd.f32 %v3567_v19, %v3566_v4 }
 0x58a   :  { %v3569_v9 = vrot.slane %v3568_v7, 2 }
 0x58c   :  { %v3570_v27 = vadd.f32 %v3569_v9, %v3568_v7 }
 0x58e   :  { %v3571_v46 = vrot.slane %v3570_v27, 1 }
 0x590   :  { %v3572_v10 = vadd.f32 %v3571_v46, %v3570_v27 }
 0x592   :  { %v3573_v28 = vmul.f32 0.5, %v3572_v10 }
 0x594   :  { %v3575_v52 = vadd.f32 1e-05, %v3573_v28 }
 0x596   :  { %4983 = vrsqrt.f32 %v3575_v52 }
 0x5a0   :  { %v4984_v40 = vpop.eup %4983 }
 0x5a1   :  { %v3577_v50 = vmul.f32 %v4984_v40, %v3574_v34 }
 0x5a3   :  { %v3582_v11 = vrot.slane %v3577_v50, %v6977_v54  ;;  %v4139_v54 = vld [vmem:[%s7586_s20] ss:$0 sm:$0xff] }
 0x5a5   :  { %v3584_v13 = vmul.f32 %v3582_v11, %v3564_v6 }
 0x5a7   :  { %v3592_v15 = vadd.f32 %v4138_v12, %v3584_v13 }
 0x5a9   :  { %v3593_v16 = vmax.f32 %v3592_v15, 0.0 }
 0x5ab   :  { %4672 = vmatmul.mubr.msk.f32.vlgmr.msra.gmra.mrb[14].mxu1 %vm3603_vm14, %v3593_v16 }
 0x67e   :  { %v3673_v33 = vpop.f32.mrb[14].mxu1 }
 0x67f   :  { %v3674_v24 = vadd.f32 %v4139_v54, %v3673_v33  ;;  %v4673_v31 = vpop.f32.mrb[15].mxu1 }
 0x681   :  { %v3677_v32 = vmax.f32 %v3674_v24, 0.0 }
 0x683   :  { %4683 = vmatmul.mubr.msk.f32.vlgmr.msra.gmra.mrb[12].mxu0 %vm3690_vm15, %v3677_v32 }
 0x756   :  { %v3760_v21 = vpop.f32.mrb[12].mxu0 }
 0x757   :  { %v3761_v17 = vadd.f32 %v4141_v30, %v3760_v21  ;;  %v4684_v38 = vpop.f32.mrb[13].mxu0 }
 0x759   :  { %v3765_v60 = vsel %vm3764_vm12, %v3761_v17, -inf  ;;  %3785 = vst.msk [vmem:[%s7587_s16] sm:$0x3] %vm3784_vm3, %v3761_v17 }
 0x75a   :  { %3766 = vmax.xlane.f32.xlu0 %v3765_v60 }
 0x770   :  { %3787 = vrot.lane.b32.xlu0 %v3761_v17, %s5024_s1 }
 0x7e7   :  { %v3767_v8 = vpop.xlane.xlu0 %3766 }
 0x7e8   :  { %v3768_v41 = vsub.f32 %v3761_v17, %v3767_v8 }
 0x7ea   :  { %v3769_v36 = vmul.f32 1.442695, %v3768_v41 }
 0x7eb   :  { %v3788_v39 = vpop.permute.xlu0 %3787 }
 0x7ec   :  { %4985 = vpow2.f32 %v3769_v36  ;;  %3791 = vst.msk [vmem:[%s7587_s16] sm:$0x3] %vm3790_vm4, %v3788_v39 }
 0x7f6   :  { %v4986_v42 = vpop.eup %4985 }
 0x7f7   :  { %3772 = vrot.lane.b32.xlu1 %v4986_v42, %s5025_s8 }
 0x869   :  { %v3773_v45 = vpop.permute.xlu1 %3772 }
 0x86a   :  { %v3776_v47 = vsel %vm3775_vm5, %v3773_v45, 0.0 }
 0x86b   :  { %3777 = vadd.xlane.f32.xlu1 %v3776_v47 }
 0x8f8   :  { %v3778_v48 = vpop.xlane.xlu1 %3777 }
 0x8f9   :  { %4987 = vrcp.f32 %v3778_v48 }
 0x8fa   :  { %4989 = vlog2.f32 %v3778_v48 }
 0x903   :  { %v4988_v51 = vpop.eup %4987 }
 0x904   :  { %v4990_v44 = vpop.eup %4989  ;;  %v3780_v53 = vmul.f32 %v4988_v51, %v4986_v42 }
 0x905   :  { %v3782_v43 = vmul.f32 0.6931472, %v4990_v44 }
 0x906   :  { %3793 = vrot.lane.b32.xlu1 %v3780_v53, %s5026_s4 }
 0x907   :  { %v3783_v57 = vsub.f32 %v3768_v41, %v3782_v43 }
 0x909   :  { %3799 = vrot.lane.b32.xlu0 %v3783_v57, %s5027_s19 }
 0x978   :  { %v3794_v14 = vpop.permute.xlu1 %3793 }
 0x979   :  { %3797 = vst.msk [vmem:[%s7587_s16] sm:$0x3] %vm3796_vm6, %v3794_v14 }
 0x97b   :  { %v3800_v58 = vpop.permute.xlu0 %3799 }
 0x97c   :  { %3803 = vst.msk [vmem:[%s7587_s16] sm:$0x3] %vm3802_vm7, %v3800_v58 }

</bundles_post_ra>
